<compile_context>
chip_gen: v5e
topology: v5e:2x2
jax: 0.10.0
libtpu: 0.0.40
codegen_flags: <defaults>
</compile_context>

<pallas_src>
import functools
import math

import jax
import jax.numpy as jnp
import numpy as np
from jax.experimental import pallas as pl
from jax.experimental.pallas import tpu as pltpu


def gtlayer_kernel(
    x_ref, pseudo_ref, DS_ref, Dt_ref, P_ref,
    Wq_ref, bq_ref, Wkv_ref, bkv_ref, wkvcs_ref,
    Wo1_ref, bo1_ref, g1_ref, be1_ref,
    Wi_ref, bi_ref,
    Wo2_ref, bo2_ref, g2_ref, be2_ref,
    Wgru_ref, bgru_ref,
    g3_ref, be3_ref,
    out_ref,
    *, time_step, dh, h_real, n_edges,
):
    inv_sqrt_dh = 1.0 / math.sqrt(dh)
    gelu_c = 1.0 / 1.41421            # matches the module's truncated sqrt(2)
    inv_h = 1.0 / h_real
    mxu_dtype = Wq_ref.dtype          # f32, or bf16 on v6e/v7x (accum stays f32)

    def dot(a, b):
        # MXU operands in mxu_dtype; accumulation always f32.
        return jnp.dot(a.astype(mxu_dtype), b.astype(mxu_dtype),
                       preferred_element_type=jnp.float32)

    def layernorm(v, g, b, eps=1e-12):
        # Padding lanes of v are exactly 0, so lane-sums divided by the real H
        # reproduce the unpadded statistics.  E[v^2]-mean^2 keeps the two XLU
        # reductions independent (they issue back-to-back).
        u = jnp.sum(v, axis=-1, keepdims=True) * inv_h
        m2 = jnp.sum(v * v, axis=-1, keepdims=True) * inv_h
        return g * ((v - u) * jax.lax.rsqrt(m2 - u * u + eps)) + b

    # ---- hoisted loads: the time loop below is fully unrolled, so loading
    #      weights/biases once avoids T-1 redundant VMEM loads / broadcasts.
    x = x_ref[...]                      # [N, Hp] node features (lanes >= H are 0)
    h = x                               # GRU hidden state, initialised with x
    DS = DS_ref[...]                    # [2E, N] one-hot: rows 0:E dst, E:2E src
    Dt = Dt_ref[...]                    # [N, E]  segment-sum at dst
    P = P_ref[...]                      # [Hp, Hp] per-head sum + lane broadcast

    Wq, bq = Wq_ref[...], bq_ref[...]
    Wkv, bkv = Wkv_ref[...], bkv_ref[...]                      # fused K | V
    Wo1, bo1 = Wo1_ref[...], bo1_ref[...]
    g1, be1 = g1_ref[...], be1_ref[...]
    Wi, bi = Wi_ref[...], bi_ref[...]
    Wo2, bo2 = Wo2_ref[...], bo2_ref[...]
    g2, be2 = g2_ref[...], be2_ref[...]
    Wgru, bgru = Wgru_ref[...], bgru_ref[...]                  # fused r|z|n_i|n_h
    g3, be3 = g3_ref[...], be3_ref[...]

    E = n_edges
    Hp = x.shape[-1]

    # pseudo folded into the K|V matmul: (x_j + pseudo) @ Wkv
    #   = x_j @ Wkv + pseudo * colsum(Wkv).   Built once, outside the unroll.
    pseudo_kv = pseudo_ref[...] * wkvcs_ref[...]               # [E, 2Hp]

    # time_step is small -> full Python unroll keeps LLO scheduler visibility.
    # (Switch to lax.fori_loop(..., unroll=True) for T >= 8 to bound vreg
    #  live ranges.)
    for _ in range(time_step):
        # ---------------- GraphAttentionConv (message passing) ----------------
        gath = dot(DS, x)                            # fused dst|src gather [2E,Hp]
        x_i = gath[:E]                               # gather at dst
        x_j = gath[E:]                               # gather at src
        q = dot(x_i, Wq) + bq                        # [E, Hp]
        kv = dot(x_j, Wkv) + pseudo_kv + bkv         # [E, 2Hp]   K | V
        k = kv[:, :Hp]                               # 128-aligned lane slices
        v = kv[:, Hp:]

        # Per-head logits kept lane-dense: P sums each head's dh lanes and
        # broadcasts the sum back across them, so alpha stays [E, Hp].
        alpha = dot(q * k, P) * inv_sqrt_dh
        # Global max instead of PyG's per-group max: the constant cancels
        # exactly in the num/denom ratio below, so values match the reference;
        # only the numerical stabilisation differs (fine at these ranges).
        ea = jnp.exp(alpha - jnp.max(alpha))
        # Softmax denominator factored out of the segment sum; numerator and
        # denominator fused into a single [N, 2Hp] matmul.
        nd = dot(Dt, jnp.concatenate([ea, ea * v], axis=-1))    # [N, 2Hp]
        attn = nd[:, Hp:] * pl.reciprocal(nd[:, :Hp] + 1e-16, approx=True)

        # ---------------- AttentionOut: dense + residual + LN -----------------
        ao = layernorm(dot(attn, Wo1) + bo1 + x, g1, be1)

        # ---------------- Intermediate: Linear(H,4H) + bias_gelu --------------
        zi = dot(ao, Wi) + bi
        inter = zi * 0.5 * (1.0 + jax.lax.erf(zi * gelu_c))

        # ---------------- GTOut: Linear(4H,H) + residual + LN -----------------
        m = layernorm(dot(inter, Wo2) + bo2 + ao, g2, be2)

        # ---------------- GRU single step, all gate matmuls fused -------------
        gr = dot(jnp.concatenate([m, h], axis=-1), Wgru) + bgru  # [N, 4Hp]
        r = jax.nn.sigmoid(gr[:, :Hp])
        z = jax.nn.sigmoid(gr[:, Hp:2 * Hp])
        n = jnp.tanh(gr[:, 2 * Hp:3 * Hp] + r * gr[:, 3 * Hp:])
        h = (1.0 - z) * n + z * h

        # ---------------- final LayerNorm on GRU output -----------------------
        x = layernorm(h, g3, be3)

    out_ref[...] = x            # [N, Hp] lane-dense (unmasked) store


def gtlayer_pallas(inputs, N, Hp, H, E, time_step, heads):
    kernel = functools.partial(
        gtlayer_kernel, time_step=time_step, dh=H // heads,
        h_real=H, n_edges=E)
    out_p = pl.pallas_call(
        kernel,
        out_shape=jax.ShapeDtypeStruct((N, Hp), jnp.float32),
        in_specs=[pl.BlockSpec(memory_space=pltpu.MemorySpace.VMEM)] * len(inputs),
        out_specs=pl.BlockSpec(memory_space=pltpu.MemorySpace.VMEM),
        # Explicit scoped-VMEM bump (v5e default ~16 MiB).  32 MiB fits every
        # generation incl. v7x (64 MiB physical) with headroom; re-derive this
        # per-generation once the edge-tiled (BlockSpec-pipelined) path lands.
        compiler_params=pltpu.CompilerParams(vmem_limit_bytes=32 * 1024 * 1024),
    )(*inputs)
    return out_p[:, :H]         # strip lane padding (layout plumbing, not compute)


# --------------------- host-side packing (padding + fusion) -------------------
def pack_inputs(x0, src, dst, edge_attr, p, N, E, H, heads,
                mxu_dtype=jnp.float32):
    """Pads H to a 128-lane multiple, fuses K|V, GRU gates, gathers, and folds
    pseudo / biases so every in-kernel lane slice is 128-aligned."""
    f32 = jnp.float32
    Hp = ((H + 127) // 128) * 128
    Ip = ((4 * H + 127) // 128) * 128
    dh = H // heads

    def pad2(a, rows, cols):
        a = jnp.asarray(a, f32)
        return jnp.zeros((rows, cols), f32).at[:a.shape[0], :a.shape[1]].set(a)

    # graph glue (one-hot gather/scatter matrices; fine at toy scale)
    D = jax.nn.one_hot(dst, N, dtype=f32)                      # [E, N]
    S = jax.nn.one_hot(src, N, dtype=f32)                      # [E, N]
    DS = jnp.concatenate([D, S], axis=0)                       # [2E, N] fused gather
    Dt = D.T                                                   # [N, E] segment-sum
    P = pad2(jnp.kron(jnp.eye(heads, dtype=f32),
                      jnp.ones((dh, dh), f32)), Hp, Hp)        # head sum+broadcast

    x0_p = pad2(x0, N, Hp)
    pseudo = jnp.asarray(edge_attr, f32).reshape(E, 1)

    Wq = pad2(p['Wq'], Hp, Hp)
    bq = pad2(p['bq'], 1, Hp)
    Wkv = (jnp.zeros((Hp, 2 * Hp), f32)
           .at[:H, :H].set(p['Wk'])
           .at[:H, Hp:Hp + H].set(p['Wv']))
    bkv = (jnp.zeros((1, 2 * Hp), f32)
           .at[:, :H].set(p['bk'])
           .at[:, Hp:Hp + H].set(p['bv']))
    wkv_cs = jnp.sum(Wkv, axis=0, keepdims=True)               # pseudo fold term

    Wo1 = pad2(p['Wo1'], Hp, Hp); bo1 = pad2(p['bo1'], 1, Hp)
    g1 = pad2(p['g1'], 1, Hp);   be1 = pad2(p['be1'], 1, Hp)
    Wi = pad2(p['Wi'], Hp, Ip);  bi = pad2(p['bi'], 1, Ip)
    Wo2 = pad2(p['Wo2'], Ip, Hp); bo2 = pad2(p['bo2'], 1, Hp)
    g2 = pad2(p['g2'], 1, Hp);   be2 = pad2(p['be2'], 1, Hp)

    # Fused GRU weights: concat([m, h]) @ Wgru -> r | z | n_i | n_h blocks,
    # each block 128-lane aligned.
    Wgru = (jnp.zeros((2 * Hp, 4 * Hp), f32)
            .at[:H, 0:H].set(p['Wir']).at[Hp:Hp + H, 0:H].set(p['Whr'])
            .at[:H, Hp:Hp + H].set(p['Wiz']).at[Hp:Hp + H, Hp:Hp + H].set(p['Whz'])
            .at[:H, 2 * Hp:2 * Hp + H].set(p['Win'])
            .at[Hp:Hp + H, 3 * Hp:3 * Hp + H].set(p['Whn']))
    bgru = (jnp.zeros((1, 4 * Hp), f32)
            .at[:, 0:H].set(p['bir'] + p['bhr'])
            .at[:, Hp:Hp + H].set(p['biz'] + p['bhz'])
            .at[:, 2 * Hp:2 * Hp + H].set(p['bin'])
            .at[:, 3 * Hp:3 * Hp + H].set(p['bhn']))

    g3 = pad2(p['g3'], 1, Hp); be3 = pad2(p['be3'], 1, Hp)

    md = mxu_dtype
    # Matmul operands in md (bf16 on v6e/v7x; 0/1 gather matrices are exact in
    # bf16).  Activations, biases, gains stay f32 (VPU/EUP path, v5e-safe).
    inputs = (
        x0_p, pseudo,
        DS.astype(md), Dt.astype(md), P.astype(md),
        Wq.astype(md), bq, Wkv.astype(md), bkv, wkv_cs,
        Wo1.astype(md), bo1, g1, be1,
        Wi.astype(md), bi,
        Wo2.astype(md), bo2, g2, be2,
        Wgru.astype(md), bgru,
        g3, be3,
    )
    return inputs, Hp


# ------------------------- pure-JAX reference (unfused params) ----------------
def ref_forward(x0, src, dst, edge_attr, p, T, heads, H):
    dh = H // heads

    def layernorm(v, g, b, eps=1e-12):
        u = jnp.mean(v, axis=-1, keepdims=True)
        s = jnp.mean((v - u) ** 2, axis=-1, keepdims=True)
        return g * ((v - u) / jnp.sqrt(s + eps)) + b

    x, h = x0, x0
    N = x0.shape[0]
    for _ in range(T):
        x_i, x_j = x[dst], x[src]
        xp = x_j + edge_attr[:, None]
        q = (x_i @ p['Wq'] + p['bq']).reshape(-1, heads, dh)
        k = (xp @ p['Wk'] + p['bk']).reshape(-1, heads, dh)
        v = (xp @ p['Wv'] + p['bv']).reshape(-1, heads, dh)
        alpha = (q * k).sum(-1) / math.sqrt(dh)
        ea = jnp.exp(alpha - jnp.max(alpha))
        denom = jax.ops.segment_sum(ea, dst, num_segments=N)
        alpha_n = ea / (denom[dst] + 1e-16)
        msg = alpha_n[:, :, None] * v
        attn = jax.ops.segment_sum(msg, dst, num_segments=N).reshape(-1, H)

        ao = layernorm(attn @ p['Wo1'] + p['bo1'] + x, p['g1'], p['be1'])
        zi = ao @ p['Wi'] + p['bi']
        inter = zi * 0.5 * (1.0 + jax.lax.erf(zi / 1.41421))
        m = layernorm(inter @ p['Wo2'] + p['bo2'] + ao, p['g2'], p['be2'])

        r = jax.nn.sigmoid(m @ p['Wir'] + p['bir'] + h @ p['Whr'] + p['bhr'])
        z = jax.nn.sigmoid(m @ p['Wiz'] + p['biz'] + h @ p['Whz'] + p['bhz'])
        n = jnp.tanh(m @ p['Win'] + p['bin'] + r * (h @ p['Whn'] + p['bhn']))
        h = (1.0 - z) * n + z * h
        x = layernorm(h, p['g3'], p['be3'])
    return x


if __name__ == "__main__":
    # Small, module-consistent shapes: N nodes, E edges, hidden, heads, steps.
    # (N and E kept multiples of 8 for sublane-aligned gather slices.)
    N, E, H, heads, T = 8, 16, 32, 4, 2
    dh = H // heads

    key = jax.random.PRNGKey(0)
    ks = iter(jax.random.split(key, 64))

    def mat(shape, scale=0.1):
        return (scale * jax.random.normal(next(ks), shape)).astype(jnp.float32)

    # graph data (deterministic)
    x0 = mat((N, H), 1.0)
    src = (jnp.arange(E) % N).astype(jnp.int32)
    dst = ((jnp.arange(E) * 3 + 1) % N).astype(jnp.int32)
    edge_attr = mat((E,), 0.5)                         # 1-D edge attr -> pseudo [E,1]

    # deterministic synthetic parameters (weights stored as [in, out])
    p = dict(
        Wq=mat((H, H)), bq=mat((1, H)), Wk=mat((H, H)), bk=mat((1, H)),
        Wv=mat((H, H)), bv=mat((1, H)),
        Wo1=mat((H, H)), bo1=mat((1, H)),
        g1=1.0 + mat((1, H)), be1=mat((1, H)),
        Wi=mat((H, 4 * H)), bi=mat((1, 4 * H)),
        Wo2=mat((4 * H, H)), bo2=mat((1, H)),
        g2=1.0 + mat((1, H)), be2=mat((1, H)),
        Wir=mat((H, H)), Wiz=mat((H, H)), Win=mat((H, H)),
        Whr=mat((H, H)), Whz=mat((H, H)), Whn=mat((H, H)),
        bir=mat((1, H)), biz=mat((1, H)), bin=mat((1, H)),
        bhr=mat((1, H)), bhz=mat((1, H)), bhn=mat((1, H)),
        g3=1.0 + mat((1, H)), be3=mat((1, H)),
    )

    ref = jax.block_until_ready(ref_forward(x0, src, dst, edge_attr, p, T, heads, H))

    # ---- f32 MXU operands (v5e-safe baseline): strict check ----
    inputs_f32, Hp = pack_inputs(x0, src, dst, edge_attr, p, N, E, H, heads,
                                 mxu_dtype=jnp.float32)
    out = jax.block_until_ready(gtlayer_pallas(inputs_f32, N, Hp, H, E, T, heads))
    np.testing.assert_allclose(np.asarray(out), np.asarray(ref), rtol=2e-3, atol=2e-3)

    # ---- bf16 MXU operands (v6e/v7x fast path; f32 accumulation & elementwise):
    #      looser tolerance reflects bf16 operand rounding only.
    inputs_bf16, _ = pack_inputs(x0, src, dst, edge_attr, p, N, E, H, heads,
                                 mxu_dtype=jnp.bfloat16)
    out_bf16 = jax.block_until_ready(gtlayer_pallas(inputs_bf16, N, Hp, H, E, T, heads))
    np.testing.assert_allclose(np.asarray(out_bf16), np.asarray(ref), rtol=5e-2, atol=5e-2)

    print("KERNEL_OK")
</pallas_src>

<mosaic_0001>
module attributes {stable_mosaic.version = 11 : i64} {
  func.func @gtlayer_kernel(%arg0: memref<8x128xf32, #tpu.memory_space<vmem>>, %arg1: memref<16x1xf32, #tpu.memory_space<vmem>>, %arg2: memref<32x8xf32, #tpu.memory_space<vmem>>, %arg3: memref<8x16xf32, #tpu.memory_space<vmem>>, %arg4: memref<128x128xf32, #tpu.memory_space<vmem>>, %arg5: memref<128x128xf32, #tpu.memory_space<vmem>>, %arg6: memref<1x128xf32, #tpu.memory_space<vmem>>, %arg7: memref<128x256xf32, #tpu.memory_space<vmem>>, %arg8: memref<1x256xf32, #tpu.memory_space<vmem>>, %arg9: memref<1x256xf32, #tpu.memory_space<vmem>>, %arg10: memref<128x128xf32, #tpu.memory_space<vmem>>, %arg11: memref<1x128xf32, #tpu.memory_space<vmem>>, %arg12: memref<1x128xf32, #tpu.memory_space<vmem>>, %arg13: memref<1x128xf32, #tpu.memory_space<vmem>>, %arg14: memref<128x128xf32, #tpu.memory_space<vmem>>, %arg15: memref<1x128xf32, #tpu.memory_space<vmem>>, %arg16: memref<128x128xf32, #tpu.memory_space<vmem>>, %arg17: memref<1x128xf32, #tpu.memory_space<vmem>>, %arg18: memref<1x128xf32, #tpu.memory_space<vmem>>, %arg19: memref<1x128xf32, #tpu.memory_space<vmem>>, %arg20: memref<256x512xf32, #tpu.memory_space<vmem>>, %arg21: memref<1x512xf32, #tpu.memory_space<vmem>>, %arg22: memref<1x128xf32, #tpu.memory_space<vmem>>, %arg23: memref<1x128xf32, #tpu.memory_space<vmem>>, %arg24: memref<8x128xf32, #tpu.memory_space<vmem>>) attributes {dimension_semantics = [], scalar_prefetch = 0 : i64, scratch_operands = 0 : i64, tpu.core_type = #tpu.core_type<tc>} {
    %c0 = arith.constant 0 : index
    %c0_0 = arith.constant 0 : index
    %0 = vector.load %arg0[%c0, %c0_0] : memref<8x128xf32, #tpu.memory_space<vmem>>, vector<8x128xf32>
    %c0_1 = arith.constant 0 : index
    %c0_2 = arith.constant 0 : index
    %1 = vector.load %arg2[%c0_1, %c0_2] : memref<32x8xf32, #tpu.memory_space<vmem>>, vector<32x8xf32>
    %c0_3 = arith.constant 0 : index
    %c0_4 = arith.constant 0 : index
    %2 = vector.load %arg3[%c0_3, %c0_4] : memref<8x16xf32, #tpu.memory_space<vmem>>, vector<8x16xf32>
    %c0_5 = arith.constant 0 : index
    %c0_6 = arith.constant 0 : index
    %3 = vector.load %arg4[%c0_5, %c0_6] : memref<128x128xf32, #tpu.memory_space<vmem>>, vector<128x128xf32>
    %c0_7 = arith.constant 0 : index
    %c0_8 = arith.constant 0 : index
    %4 = vector.load %arg5[%c0_7, %c0_8] : memref<128x128xf32, #tpu.memory_space<vmem>>, vector<128x128xf32>
    %c0_9 = arith.constant 0 : index
    %c0_10 = arith.constant 0 : index
    %5 = vector.load %arg6[%c0_9, %c0_10] : memref<1x128xf32, #tpu.memory_space<vmem>>, vector<1x128xf32>
    %c0_11 = arith.constant 0 : index
    %c0_12 = arith.constant 0 : index
    %6 = vector.load %arg7[%c0_11, %c0_12] : memref<128x256xf32, #tpu.memory_space<vmem>>, vector<128x256xf32>
    %c0_13 = arith.constant 0 : index
    %c0_14 = arith.constant 0 : index
    %7 = vector.load %arg8[%c0_13, %c0_14] : memref<1x256xf32, #tpu.memory_space<vmem>>, vector<1x256xf32>
    %c0_15 = arith.constant 0 : index
    %c0_16 = arith.constant 0 : index
    %8 = vector.load %arg10[%c0_15, %c0_16] : memref<128x128xf32, #tpu.memory_space<vmem>>, vector<128x128xf32>
    %c0_17 = arith.constant 0 : index
    %c0_18 = arith.constant 0 : index
    %9 = vector.load %arg11[%c0_17, %c0_18] : memref<1x128xf32, #tpu.memory_space<vmem>>, vector<1x128xf32>
    %c0_19 = arith.constant 0 : index
    %c0_20 = arith.constant 0 : index
    %10 = vector.load %arg12[%c0_19, %c0_20] : memref<1x128xf32, #tpu.memory_space<vmem>>, vector<1x128xf32>
    %c0_21 = arith.constant 0 : index
    %c0_22 = arith.constant 0 : index
    %11 = vector.load %arg13[%c0_21, %c0_22] : memref<1x128xf32, #tpu.memory_space<vmem>>, vector<1x128xf32>
    %c0_23 = arith.constant 0 : index
    %c0_24 = arith.constant 0 : index
    %12 = vector.load %arg14[%c0_23, %c0_24] : memref<128x128xf32, #tpu.memory_space<vmem>>, vector<128x128xf32>
    %c0_25 = arith.constant 0 : index
    %c0_26 = arith.constant 0 : index
    %13 = vector.load %arg15[%c0_25, %c0_26] : memref<1x128xf32, #tpu.memory_space<vmem>>, vector<1x128xf32>
    %c0_27 = arith.constant 0 : index
    %c0_28 = arith.constant 0 : index
    %14 = vector.load %arg16[%c0_27, %c0_28] : memref<128x128xf32, #tpu.memory_space<vmem>>, vector<128x128xf32>
    %c0_29 = arith.constant 0 : index
    %c0_30 = arith.constant 0 : index
    %15 = vector.load %arg17[%c0_29, %c0_30] : memref<1x128xf32, #tpu.memory_space<vmem>>, vector<1x128xf32>
    %c0_31 = arith.constant 0 : index
    %c0_32 = arith.constant 0 : index
    %16 = vector.load %arg18[%c0_31, %c0_32] : memref<1x128xf32, #tpu.memory_space<vmem>>, vector<1x128xf32>
    %c0_33 = arith.constant 0 : index
    %c0_34 = arith.constant 0 : index
    %17 = vector.load %arg19[%c0_33, %c0_34] : memref<1x128xf32, #tpu.memory_space<vmem>>, vector<1x128xf32>
    %c0_35 = arith.constant 0 : index
    %c0_36 = arith.constant 0 : index
    %18 = vector.load %arg20[%c0_35, %c0_36] : memref<256x512xf32, #tpu.memory_space<vmem>>, vector<256x512xf32>
    %c0_37 = arith.constant 0 : index
    %c0_38 = arith.constant 0 : index
    %19 = vector.load %arg21[%c0_37, %c0_38] : memref<1x512xf32, #tpu.memory_space<vmem>>, vector<1x512xf32>
    %c0_39 = arith.constant 0 : index
    %c0_40 = arith.constant 0 : index
    %20 = vector.load %arg22[%c0_39, %c0_40] : memref<1x128xf32, #tpu.memory_space<vmem>>, vector<1x128xf32>
    %c0_41 = arith.constant 0 : index
    %c0_42 = arith.constant 0 : index
    %21 = vector.load %arg23[%c0_41, %c0_42] : memref<1x128xf32, #tpu.memory_space<vmem>>, vector<1x128xf32>
    %c0_43 = arith.constant 0 : index
    %c0_44 = arith.constant 0 : index
    %22 = vector.load %arg1[%c0_43, %c0_44] : memref<16x1xf32, #tpu.memory_space<vmem>>, vector<16x1xf32>
    %c0_45 = arith.constant 0 : index
    %c0_46 = arith.constant 0 : index
    %23 = vector.load %arg9[%c0_45, %c0_46] : memref<1x256xf32, #tpu.memory_space<vmem>>, vector<1x256xf32>
    %24 = vector.broadcast %22 : vector<16x1xf32> to vector<16x256xf32>
    %25 = vector.broadcast %23 : vector<1x256xf32> to vector<16x256xf32>
    %26 = arith.mulf %24, %25 : vector<16x256xf32>
    %cst = arith.constant dense<0.000000e+00> : vector<32x128xf32>
    %27 = tpu.matmul %1, %0, %cst {dimension_numbers = #tpu.dot_dimension_numbers<[1], [0], [0], [1], [0, 0, 1, 1], [], []>} : vector<32x8xf32>, vector<8x128xf32>, vector<32x128xf32> -> vector<32x128xf32>
    %28 = vector.extract_strided_slice %27 {offsets = [0, 0], sizes = [16, 128], strides = [1, 1]} : vector<32x128xf32> to vector<16x128xf32>
    %29 = vector.extract_strided_slice %27 {offsets = [16, 0], sizes = [16, 128], strides = [1, 1]} : vector<32x128xf32> to vector<16x128xf32>
    %cst_47 = arith.constant dense<0.000000e+00> : vector<16x128xf32>
    %30 = tpu.matmul %28, %4, %cst_47 {dimension_numbers = #tpu.dot_dimension_numbers<[1], [0], [0], [1], [0, 0, 1, 1], [], []>} : vector<16x128xf32>, vector<128x128xf32>, vector<16x128xf32> -> vector<16x128xf32>
    %31 = vector.broadcast %5 : vector<1x128xf32> to vector<16x128xf32>
    %32 = arith.addf %30, %31 : vector<16x128xf32>
    %cst_48 = arith.constant dense<0.000000e+00> : vector<16x256xf32>
    %33 = tpu.matmul %29, %6, %cst_48 {dimension_numbers = #tpu.dot_dimension_numbers<[1], [0], [0], [1], [0, 0, 1, 1], [], []>} : vector<16x128xf32>, vector<128x256xf32>, vector<16x256xf32> -> vector<16x256xf32>
    %34 = arith.addf %33, %26 : vector<16x256xf32>
    %35 = vector.broadcast %7 : vector<1x256xf32> to vector<16x256xf32>
    %36 = arith.addf %34, %35 : vector<16x256xf32>
    %37 = vector.extract_strided_slice %36 {offsets = [0, 0], sizes = [16, 128], strides = [1, 1]} : vector<16x256xf32> to vector<16x128xf32>
    %38 = vector.extract_strided_slice %36 {offsets = [0, 128], sizes = [16, 128], strides = [1, 1]} : vector<16x256xf32> to vector<16x128xf32>
    %39 = arith.mulf %32, %37 : vector<16x128xf32>
    %cst_49 = arith.constant dense<0.000000e+00> : vector<16x128xf32>
    %40 = tpu.matmul %39, %3, %cst_49 {dimension_numbers = #tpu.dot_dimension_numbers<[1], [0], [0], [1], [0, 0, 1, 1], [], []>} : vector<16x128xf32>, vector<128x128xf32>, vector<16x128xf32> -> vector<16x128xf32>
    %cst_50 = arith.constant 0.353553385 : f32
    %41 = vector.broadcast %cst_50 : f32 to vector<16x128xf32>
    %42 = arith.mulf %40, %41 : vector<16x128xf32>
    %43 = vector.shape_cast %42 : vector<16x128xf32> to vector<1x16x128xf32>
    %cst_51 = arith.constant dense<0xFF800000> : vector<1xf32>
    %44 = vector.multi_reduction <maximumf>, %43, %cst_51 [1, 2] : vector<1x16x128xf32> to vector<1xf32>
    %45 = vector.shape_cast %44 : vector<1xf32> to vector<1x1x1xf32>
    %46 = vector.extract %45[0, 0, 0] : f32 from vector<1x1x1xf32>
    %47 = vector.broadcast %46 : f32 to vector<16x128xf32>
    %48 = arith.subf %42, %47 : vector<16x128xf32>
    %49 = math.exp %48 : vector<16x128xf32>
    %50 = arith.mulf %49, %38 : vector<16x128xf32>
    %51 = tpu.concatenate %49, %50 in 1 : vector<16x128xf32>, vector<16x128xf32> -> vector<16x256xf32>
    %cst_52 = arith.constant dense<0.000000e+00> : vector<8x256xf32>
    %52 = tpu.matmul %2, %51, %cst_52 {dimension_numbers = #tpu.dot_dimension_numbers<[1], [0], [0], [1], [0, 0, 1, 1], [], []>} : vector<8x16xf32>, vector<16x256xf32>, vector<8x256xf32> -> vector<8x256xf32>
    %53 = vector.extract_strided_slice %52 {offsets = [0, 128], sizes = [8, 128], strides = [1, 1]} : vector<8x256xf32> to vector<8x128xf32>
    %54 = vector.extract_strided_slice %52 {offsets = [0, 0], sizes = [8, 128], strides = [1, 1]} : vector<8x256xf32> to vector<8x128xf32>
    %cst_53 = arith.constant 1.000000e-16 : f32
    %55 = vector.broadcast %cst_53 : f32 to vector<8x128xf32>
    %56 = arith.addf %54, %55 : vector<8x128xf32>
    %57 = tpu.reciprocal %56 {approx = true} : vector<8x128xf32> -> vector<8x128xf32>
    %58 = arith.mulf %53, %57 : vector<8x128xf32>
    %cst_54 = arith.constant dense<0.000000e+00> : vector<8x128xf32>
    %59 = tpu.matmul %58, %8, %cst_54 {dimension_numbers = #tpu.dot_dimension_numbers<[1], [0], [0], [1], [0, 0, 1, 1], [], []>} : vector<8x128xf32>, vector<128x128xf32>, vector<8x128xf32> -> vector<8x128xf32>
    %60 = vector.broadcast %9 : vector<1x128xf32> to vector<8x128xf32>
    %61 = arith.addf %59, %60 : vector<8x128xf32>
    %62 = arith.addf %61, %0 : vector<8x128xf32>
    %cst_55 = arith.constant dense<0.000000e+00> : vector<8xf32>
    %63 = vector.multi_reduction <add>, %62, %cst_55 [1] : vector<8x128xf32> to vector<8xf32>
    %64 = vector.shape_cast %63 : vector<8xf32> to vector<8x1xf32>
    %cst_56 = arith.constant 3.125000e-02 : f32
    %65 = vector.broadcast %cst_56 : f32 to vector<8x1xf32>
    %66 = arith.mulf %64, %65 : vector<8x1xf32>
    %67 = arith.mulf %62, %62 : vector<8x128xf32>
    %cst_57 = arith.constant dense<0.000000e+00> : vector<8xf32>
    %68 = vector.multi_reduction <add>, %67, %cst_57 [1] : vector<8x128xf32> to vector<8xf32>
    %69 = vector.shape_cast %68 : vector<8xf32> to vector<8x1xf32>
    %cst_58 = arith.constant 3.125000e-02 : f32
    %70 = vector.broadcast %cst_58 : f32 to vector<8x1xf32>
    %71 = arith.mulf %69, %70 : vector<8x1xf32>
    %72 = vector.broadcast %66 : vector<8x1xf32> to vector<8x128xf32>
    %73 = arith.subf %62, %72 : vector<8x128xf32>
    %74 = arith.mulf %66, %66 : vector<8x1xf32>
    %75 = arith.subf %71, %74 : vector<8x1xf32>
    %cst_59 = arith.constant 9.99999996E-13 : f32
    %76 = vector.broadcast %cst_59 : f32 to vector<8x1xf32>
    %77 = arith.addf %75, %76 : vector<8x1xf32>
    %78 = math.rsqrt %77 : vector<8x1xf32>
    %79 = vector.broadcast %78 : vector<8x1xf32> to vector<8x128xf32>
    %80 = arith.mulf %73, %79 : vector<8x128xf32>
    %81 = vector.broadcast %10 : vector<1x128xf32> to vector<8x128xf32>
    %82 = arith.mulf %81, %80 : vector<8x128xf32>
    %83 = vector.broadcast %11 : vector<1x128xf32> to vector<8x128xf32>
    %84 = arith.addf %82, %83 : vector<8x128xf32>
    %cst_60 = arith.constant dense<0.000000e+00> : vector<8x128xf32>
    %85 = tpu.matmul %84, %12, %cst_60 {dimension_numbers = #tpu.dot_dimension_numbers<[1], [0], [0], [1], [0, 0, 1, 1], [], []>} : vector<8x128xf32>, vector<128x128xf32>, vector<8x128xf32> -> vector<8x128xf32>
    %86 = vector.broadcast %13 : vector<1x128xf32> to vector<8x128xf32>
    %87 = arith.addf %85, %86 : vector<8x128xf32>
    %cst_61 = arith.constant 5.000000e-01 : f32
    %88 = vector.broadcast %cst_61 : f32 to vector<8x128xf32>
    %89 = arith.mulf %87, %88 : vector<8x128xf32>
    %cst_62 = arith.constant 0.707108557 : f32
    %90 = vector.broadcast %cst_62 : f32 to vector<8x128xf32>
    %91 = arith.mulf %87, %90 : vector<8x128xf32>
    %92 = math.erf %91 : vector<8x128xf32>
    %cst_63 = arith.constant 1.000000e+00 : f32
    %93 = vector.broadcast %cst_63 : f32 to vector<8x128xf32>
    %94 = arith.addf %93, %92 : vector<8x128xf32>
    %95 = arith.mulf %89, %94 : vector<8x128xf32>
    %cst_64 = arith.constant dense<0.000000e+00> : vector<8x128xf32>
    %96 = tpu.matmul %95, %14, %cst_64 {dimension_numbers = #tpu.dot_dimension_numbers<[1], [0], [0], [1], [0, 0, 1, 1], [], []>} : vector<8x128xf32>, vector<128x128xf32>, vector<8x128xf32> -> vector<8x128xf32>
    %97 = vector.broadcast %15 : vector<1x128xf32> to vector<8x128xf32>
    %98 = arith.addf %96, %97 : vector<8x128xf32>
    %99 = arith.addf %98, %84 : vector<8x128xf32>
    %cst_65 = arith.constant dense<0.000000e+00> : vector<8xf32>
    %100 = vector.multi_reduction <add>, %99, %cst_65 [1] : vector<8x128xf32> to vector<8xf32>
    %101 = vector.shape_cast %100 : vector<8xf32> to vector<8x1xf32>
    %cst_66 = arith.constant 3.125000e-02 : f32
    %102 = vector.broadcast %cst_66 : f32 to vector<8x1xf32>
    %103 = arith.mulf %101, %102 : vector<8x1xf32>
    %104 = arith.mulf %99, %99 : vector<8x128xf32>
    %cst_67 = arith.constant dense<0.000000e+00> : vector<8xf32>
    %105 = vector.multi_reduction <add>, %104, %cst_67 [1] : vector<8x128xf32> to vector<8xf32>
    %106 = vector.shape_cast %105 : vector<8xf32> to vector<8x1xf32>
    %cst_68 = arith.constant 3.125000e-02 : f32
    %107 = vector.broadcast %cst_68 : f32 to vector<8x1xf32>
    %108 = arith.mulf %106, %107 : vector<8x1xf32>
    %109 = vector.broadcast %103 : vector<8x1xf32> to vector<8x128xf32>
    %110 = arith.subf %99, %109 : vector<8x128xf32>
    %111 = arith.mulf %103, %103 : vector<8x1xf32>
    %112 = arith.subf %108, %111 : vector<8x1xf32>
    %cst_69 = arith.constant 9.99999996E-13 : f32
    %113 = vector.broadcast %cst_69 : f32 to vector<8x1xf32>
    %114 = arith.addf %112, %113 : vector<8x1xf32>
    %115 = math.rsqrt %114 : vector<8x1xf32>
    %116 = vector.broadcast %115 : vector<8x1xf32> to vector<8x128xf32>
    %117 = arith.mulf %110, %116 : vector<8x128xf32>
    %118 = vector.broadcast %16 : vector<1x128xf32> to vector<8x128xf32>
    %119 = arith.mulf %118, %117 : vector<8x128xf32>
    %120 = vector.broadcast %17 : vector<1x128xf32> to vector<8x128xf32>
    %121 = arith.addf %119, %120 : vector<8x128xf32>
    %122 = tpu.concatenate %121, %0 in 1 : vector<8x128xf32>, vector<8x128xf32> -> vector<8x256xf32>
    %cst_70 = arith.constant dense<0.000000e+00> : vector<8x512xf32>
    %123 = tpu.matmul %122, %18, %cst_70 {dimension_numbers = #tpu.dot_dimension_numbers<[1], [0], [0], [1], [0, 0, 1, 1], [], []>} : vector<8x256xf32>, vector<256x512xf32>, vector<8x512xf32> -> vector<8x512xf32>
    %124 = vector.broadcast %19 : vector<1x512xf32> to vector<8x512xf32>
    %125 = arith.addf %123, %124 : vector<8x512xf32>
    %126 = vector.extract_strided_slice %125 {offsets = [0, 0], sizes = [8, 128], strides = [1, 1]} : vector<8x512xf32> to vector<8x128xf32>
    %127 = arith.negf %126 : vector<8x128xf32>
    %128 = math.exp %127 : vector<8x128xf32>
    %cst_71 = arith.constant 1.000000e+00 : f32
    %129 = vector.broadcast %cst_71 : f32 to vector<8x128xf32>
    %130 = arith.addf %129, %128 : vector<8x128xf32>
    %131 = arith.divf %129, %130 : vector<8x128xf32>
    %132 = vector.extract_strided_slice %125 {offsets = [0, 128], sizes = [8, 128], strides = [1, 1]} : vector<8x512xf32> to vector<8x128xf32>
    %133 = arith.negf %132 : vector<8x128xf32>
    %134 = math.exp %133 : vector<8x128xf32>
    %cst_72 = arith.constant 1.000000e+00 : f32
    %135 = vector.broadcast %cst_72 : f32 to vector<8x128xf32>
    %136 = arith.addf %135, %134 : vector<8x128xf32>
    %137 = arith.divf %135, %136 : vector<8x128xf32>
    %138 = vector.extract_strided_slice %125 {offsets = [0, 256], sizes = [8, 128], strides = [1, 1]} : vector<8x512xf32> to vector<8x128xf32>
    %139 = vector.extract_strided_slice %125 {offsets = [0, 384], sizes = [8, 128], strides = [1, 1]} : vector<8x512xf32> to vector<8x128xf32>
    %140 = arith.mulf %131, %139 : vector<8x128xf32>
    %141 = arith.addf %138, %140 : vector<8x128xf32>
    %142 = math.tanh %141 : vector<8x128xf32>
    %cst_73 = arith.constant 1.000000e+00 : f32
    %143 = vector.broadcast %cst_73 : f32 to vector<8x128xf32>
    %144 = arith.subf %143, %137 : vector<8x128xf32>
    %145 = arith.mulf %144, %142 : vector<8x128xf32>
    %146 = arith.mulf %137, %0 : vector<8x128xf32>
    %147 = arith.addf %145, %146 : vector<8x128xf32>
    %cst_74 = arith.constant dense<0.000000e+00> : vector<8xf32>
    %148 = vector.multi_reduction <add>, %147, %cst_74 [1] : vector<8x128xf32> to vector<8xf32>
    %149 = vector.shape_cast %148 : vector<8xf32> to vector<8x1xf32>
    %cst_75 = arith.constant 3.125000e-02 : f32
    %150 = vector.broadcast %cst_75 : f32 to vector<8x1xf32>
    %151 = arith.mulf %149, %150 : vector<8x1xf32>
    %152 = arith.mulf %147, %147 : vector<8x128xf32>
    %cst_76 = arith.constant dense<0.000000e+00> : vector<8xf32>
    %153 = vector.multi_reduction <add>, %152, %cst_76 [1] : vector<8x128xf32> to vector<8xf32>
    %154 = vector.shape_cast %153 : vector<8xf32> to vector<8x1xf32>
    %cst_77 = arith.constant 3.125000e-02 : f32
    %155 = vector.broadcast %cst_77 : f32 to vector<8x1xf32>
    %156 = arith.mulf %154, %155 : vector<8x1xf32>
    %157 = vector.broadcast %151 : vector<8x1xf32> to vector<8x128xf32>
    %158 = arith.subf %147, %157 : vector<8x128xf32>
    %159 = arith.mulf %151, %151 : vector<8x1xf32>
    %160 = arith.subf %156, %159 : vector<8x1xf32>
    %cst_78 = arith.constant 9.99999996E-13 : f32
    %161 = vector.broadcast %cst_78 : f32 to vector<8x1xf32>
    %162 = arith.addf %160, %161 : vector<8x1xf32>
    %163 = math.rsqrt %162 : vector<8x1xf32>
    %164 = vector.broadcast %163 : vector<8x1xf32> to vector<8x128xf32>
    %165 = arith.mulf %158, %164 : vector<8x128xf32>
    %166 = vector.broadcast %20 : vector<1x128xf32> to vector<8x128xf32>
    %167 = arith.mulf %166, %165 : vector<8x128xf32>
    %168 = vector.broadcast %21 : vector<1x128xf32> to vector<8x128xf32>
    %169 = arith.addf %167, %168 : vector<8x128xf32>
    %cst_79 = arith.constant dense<0.000000e+00> : vector<32x128xf32>
    %170 = tpu.matmul %1, %169, %cst_79 {dimension_numbers = #tpu.dot_dimension_numbers<[1], [0], [0], [1], [0, 0, 1, 1], [], []>} : vector<32x8xf32>, vector<8x128xf32>, vector<32x128xf32> -> vector<32x128xf32>
    %171 = vector.extract_strided_slice %170 {offsets = [0, 0], sizes = [16, 128], strides = [1, 1]} : vector<32x128xf32> to vector<16x128xf32>
    %172 = vector.extract_strided_slice %170 {offsets = [16, 0], sizes = [16, 128], strides = [1, 1]} : vector<32x128xf32> to vector<16x128xf32>
    %cst_80 = arith.constant dense<0.000000e+00> : vector<16x128xf32>
    %173 = tpu.matmul %171, %4, %cst_80 {dimension_numbers = #tpu.dot_dimension_numbers<[1], [0], [0], [1], [0, 0, 1, 1], [], []>} : vector<16x128xf32>, vector<128x128xf32>, vector<16x128xf32> -> vector<16x128xf32>
    %174 = vector.broadcast %5 : vector<1x128xf32> to vector<16x128xf32>
    %175 = arith.addf %173, %174 : vector<16x128xf32>
    %cst_81 = arith.constant dense<0.000000e+00> : vector<16x256xf32>
    %176 = tpu.matmul %172, %6, %cst_81 {dimension_numbers = #tpu.dot_dimension_numbers<[1], [0], [0], [1], [0, 0, 1, 1], [], []>} : vector<16x128xf32>, vector<128x256xf32>, vector<16x256xf32> -> vector<16x256xf32>
    %177 = arith.addf %176, %26 : vector<16x256xf32>
    %178 = vector.broadcast %7 : vector<1x256xf32> to vector<16x256xf32>
    %179 = arith.addf %177, %178 : vector<16x256xf32>
    %180 = vector.extract_strided_slice %179 {offsets = [0, 0], sizes = [16, 128], strides = [1, 1]} : vector<16x256xf32> to vector<16x128xf32>
    %181 = vector.extract_strided_slice %179 {offsets = [0, 128], sizes = [16, 128], strides = [1, 1]} : vector<16x256xf32> to vector<16x128xf32>
    %182 = arith.mulf %175, %180 : vector<16x128xf32>
    %cst_82 = arith.constant dense<0.000000e+00> : vector<16x128xf32>
    %183 = tpu.matmul %182, %3, %cst_82 {dimension_numbers = #tpu.dot_dimension_numbers<[1], [0], [0], [1], [0, 0, 1, 1], [], []>} : vector<16x128xf32>, vector<128x128xf32>, vector<16x128xf32> -> vector<16x128xf32>
    %cst_83 = arith.constant 0.353553385 : f32
    %184 = vector.broadcast %cst_83 : f32 to vector<16x128xf32>
    %185 = arith.mulf %183, %184 : vector<16x128xf32>
    %186 = vector.shape_cast %185 : vector<16x128xf32> to vector<1x16x128xf32>
    %cst_84 = arith.constant dense<0xFF800000> : vector<1xf32>
    %187 = vector.multi_reduction <maximumf>, %186, %cst_84 [1, 2] : vector<1x16x128xf32> to vector<1xf32>
    %188 = vector.shape_cast %187 : vector<1xf32> to vector<1x1x1xf32>
    %189 = vector.extract %188[0, 0, 0] : f32 from vector<1x1x1xf32>
    %190 = vector.broadcast %189 : f32 to vector<16x128xf32>
    %191 = arith.subf %185, %190 : vector<16x128xf32>
    %192 = math.exp %191 : vector<16x128xf32>
    %193 = arith.mulf %192, %181 : vector<16x128xf32>
    %194 = tpu.concatenate %192, %193 in 1 : vector<16x128xf32>, vector<16x128xf32> -> vector<16x256xf32>
    %cst_85 = arith.constant dense<0.000000e+00> : vector<8x256xf32>
    %195 = tpu.matmul %2, %194, %cst_85 {dimension_numbers = #tpu.dot_dimension_numbers<[1], [0], [0], [1], [0, 0, 1, 1], [], []>} : vector<8x16xf32>, vector<16x256xf32>, vector<8x256xf32> -> vector<8x256xf32>
    %196 = vector.extract_strided_slice %195 {offsets = [0, 128], sizes = [8, 128], strides = [1, 1]} : vector<8x256xf32> to vector<8x128xf32>
    %197 = vector.extract_strided_slice %195 {offsets = [0, 0], sizes = [8, 128], strides = [1, 1]} : vector<8x256xf32> to vector<8x128xf32>
    %cst_86 = arith.constant 1.000000e-16 : f32
    %198 = vector.broadcast %cst_86 : f32 to vector<8x128xf32>
    %199 = arith.addf %197, %198 : vector<8x128xf32>
    %200 = tpu.reciprocal %199 {approx = true} : vector<8x128xf32> -> vector<8x128xf32>
    %201 = arith.mulf %196, %200 : vector<8x128xf32>
    %cst_87 = arith.constant dense<0.000000e+00> : vector<8x128xf32>
    %202 = tpu.matmul %201, %8, %cst_87 {dimension_numbers = #tpu.dot_dimension_numbers<[1], [0], [0], [1], [0, 0, 1, 1], [], []>} : vector<8x128xf32>, vector<128x128xf32>, vector<8x128xf32> -> vector<8x128xf32>
    %203 = vector.broadcast %9 : vector<1x128xf32> to vector<8x128xf32>
    %204 = arith.addf %202, %203 : vector<8x128xf32>
    %205 = arith.addf %204, %169 : vector<8x128xf32>
    %cst_88 = arith.constant dense<0.000000e+00> : vector<8xf32>
    %206 = vector.multi_reduction <add>, %205, %cst_88 [1] : vector<8x128xf32> to vector<8xf32>
    %207 = vector.shape_cast %206 : vector<8xf32> to vector<8x1xf32>
    %cst_89 = arith.constant 3.125000e-02 : f32
    %208 = vector.broadcast %cst_89 : f32 to vector<8x1xf32>
    %209 = arith.mulf %207, %208 : vector<8x1xf32>
    %210 = arith.mulf %205, %205 : vector<8x128xf32>
    %cst_90 = arith.constant dense<0.000000e+00> : vector<8xf32>
    %211 = vector.multi_reduction <add>, %210, %cst_90 [1] : vector<8x128xf32> to vector<8xf32>
    %212 = vector.shape_cast %211 : vector<8xf32> to vector<8x1xf32>
    %cst_91 = arith.constant 3.125000e-02 : f32
    %213 = vector.broadcast %cst_91 : f32 to vector<8x1xf32>
    %214 = arith.mulf %212, %213 : vector<8x1xf32>
    %215 = vector.broadcast %209 : vector<8x1xf32> to vector<8x128xf32>
    %216 = arith.subf %205, %215 : vector<8x128xf32>
    %217 = arith.mulf %209, %209 : vector<8x1xf32>
    %218 = arith.subf %214, %217 : vector<8x1xf32>
    %cst_92 = arith.constant 9.99999996E-13 : f32
    %219 = vector.broadcast %cst_92 : f32 to vector<8x1xf32>
    %220 = arith.addf %218, %219 : vector<8x1xf32>
    %221 = math.rsqrt %220 : vector<8x1xf32>
    %222 = vector.broadcast %221 : vector<8x1xf32> to vector<8x128xf32>
    %223 = arith.mulf %216, %222 : vector<8x128xf32>
    %224 = vector.broadcast %10 : vector<1x128xf32> to vector<8x128xf32>
    %225 = arith.mulf %224, %223 : vector<8x128xf32>
    %226 = vector.broadcast %11 : vector<1x128xf32> to vector<8x128xf32>
    %227 = arith.addf %225, %226 : vector<8x128xf32>
    %cst_93 = arith.constant dense<0.000000e+00> : vector<8x128xf32>
    %228 = tpu.matmul %227, %12, %cst_93 {dimension_numbers = #tpu.dot_dimension_numbers<[1], [0], [0], [1], [0, 0, 1, 1], [], []>} : vector<8x128xf32>, vector<128x128xf32>, vector<8x128xf32> -> vector<8x128xf32>
    %229 = vector.broadcast %13 : vector<1x128xf32> to vector<8x128xf32>
    %230 = arith.addf %228, %229 : vector<8x128xf32>
    %cst_94 = arith.constant 5.000000e-01 : f32
    %231 = vector.broadcast %cst_94 : f32 to vector<8x128xf32>
    %232 = arith.mulf %230, %231 : vector<8x128xf32>
    %cst_95 = arith.constant 0.707108557 : f32
    %233 = vector.broadcast %cst_95 : f32 to vector<8x128xf32>
    %234 = arith.mulf %230, %233 : vector<8x128xf32>
    %235 = math.erf %234 : vector<8x128xf32>
    %cst_96 = arith.constant 1.000000e+00 : f32
    %236 = vector.broadcast %cst_96 : f32 to vector<8x128xf32>
    %237 = arith.addf %236, %235 : vector<8x128xf32>
    %238 = arith.mulf %232, %237 : vector<8x128xf32>
    %cst_97 = arith.constant dense<0.000000e+00> : vector<8x128xf32>
    %239 = tpu.matmul %238, %14, %cst_97 {dimension_numbers = #tpu.dot_dimension_numbers<[1], [0], [0], [1], [0, 0, 1, 1], [], []>} : vector<8x128xf32>, vector<128x128xf32>, vector<8x128xf32> -> vector<8x128xf32>
    %240 = vector.broadcast %15 : vector<1x128xf32> to vector<8x128xf32>
    %241 = arith.addf %239, %240 : vector<8x128xf32>
    %242 = arith.addf %241, %227 : vector<8x128xf32>
    %cst_98 = arith.constant dense<0.000000e+00> : vector<8xf32>
    %243 = vector.multi_reduction <add>, %242, %cst_98 [1] : vector<8x128xf32> to vector<8xf32>
    %244 = vector.shape_cast %243 : vector<8xf32> to vector<8x1xf32>
    %cst_99 = arith.constant 3.125000e-02 : f32
    %245 = vector.broadcast %cst_99 : f32 to vector<8x1xf32>
    %246 = arith.mulf %244, %245 : vector<8x1xf32>
    %247 = arith.mulf %242, %242 : vector<8x128xf32>
    %cst_100 = arith.constant dense<0.000000e+00> : vector<8xf32>
    %248 = vector.multi_reduction <add>, %247, %cst_100 [1] : vector<8x128xf32> to vector<8xf32>
    %249 = vector.shape_cast %248 : vector<8xf32> to vector<8x1xf32>
    %cst_101 = arith.constant 3.125000e-02 : f32
    %250 = vector.broadcast %cst_101 : f32 to vector<8x1xf32>
    %251 = arith.mulf %249, %250 : vector<8x1xf32>
    %252 = vector.broadcast %246 : vector<8x1xf32> to vector<8x128xf32>
    %253 = arith.subf %242, %252 : vector<8x128xf32>
    %254 = arith.mulf %246, %246 : vector<8x1xf32>
    %255 = arith.subf %251, %254 : vector<8x1xf32>
    %cst_102 = arith.constant 9.99999996E-13 : f32
    %256 = vector.broadcast %cst_102 : f32 to vector<8x1xf32>
    %257 = arith.addf %255, %256 : vector<8x1xf32>
    %258 = math.rsqrt %257 : vector<8x1xf32>
    %259 = vector.broadcast %258 : vector<8x1xf32> to vector<8x128xf32>
    %260 = arith.mulf %253, %259 : vector<8x128xf32>
    %261 = vector.broadcast %16 : vector<1x128xf32> to vector<8x128xf32>
    %262 = arith.mulf %261, %260 : vector<8x128xf32>
    %263 = vector.broadcast %17 : vector<1x128xf32> to vector<8x128xf32>
    %264 = arith.addf %262, %263 : vector<8x128xf32>
    %265 = tpu.concatenate %264, %147 in 1 : vector<8x128xf32>, vector<8x128xf32> -> vector<8x256xf32>
    %cst_103 = arith.constant dense<0.000000e+00> : vector<8x512xf32>
    %266 = tpu.matmul %265, %18, %cst_103 {dimension_numbers = #tpu.dot_dimension_numbers<[1], [0], [0], [1], [0, 0, 1, 1], [], []>} : vector<8x256xf32>, vector<256x512xf32>, vector<8x512xf32> -> vector<8x512xf32>
    %267 = vector.broadcast %19 : vector<1x512xf32> to vector<8x512xf32>
    %268 = arith.addf %266, %267 : vector<8x512xf32>
    %269 = vector.extract_strided_slice %268 {offsets = [0, 0], sizes = [8, 128], strides = [1, 1]} : vector<8x512xf32> to vector<8x128xf32>
    %270 = arith.negf %269 : vector<8x128xf32>
    %271 = math.exp %270 : vector<8x128xf32>
    %cst_104 = arith.constant 1.000000e+00 : f32
    %272 = vector.broadcast %cst_104 : f32 to vector<8x128xf32>
    %273 = arith.addf %272, %271 : vector<8x128xf32>
    %274 = arith.divf %272, %273 : vector<8x128xf32>
    %275 = vector.extract_strided_slice %268 {offsets = [0, 128], sizes = [8, 128], strides = [1, 1]} : vector<8x512xf32> to vector<8x128xf32>
    %276 = arith.negf %275 : vector<8x128xf32>
    %277 = math.exp %276 : vector<8x128xf32>
    %cst_105 = arith.constant 1.000000e+00 : f32
    %278 = vector.broadcast %cst_105 : f32 to vector<8x128xf32>
    %279 = arith.addf %278, %277 : vector<8x128xf32>
    %280 = arith.divf %278, %279 : vector<8x128xf32>
    %281 = vector.extract_strided_slice %268 {offsets = [0, 256], sizes = [8, 128], strides = [1, 1]} : vector<8x512xf32> to vector<8x128xf32>
    %282 = vector.extract_strided_slice %268 {offsets = [0, 384], sizes = [8, 128], strides = [1, 1]} : vector<8x512xf32> to vector<8x128xf32>
    %283 = arith.mulf %274, %282 : vector<8x128xf32>
    %284 = arith.addf %281, %283 : vector<8x128xf32>
    %285 = math.tanh %284 : vector<8x128xf32>
    %cst_106 = arith.constant 1.000000e+00 : f32
    %286 = vector.broadcast %cst_106 : f32 to vector<8x128xf32>
    %287 = arith.subf %286, %280 : vector<8x128xf32>
    %288 = arith.mulf %287, %285 : vector<8x128xf32>
    %289 = arith.mulf %280, %147 : vector<8x128xf32>
    %290 = arith.addf %288, %289 : vector<8x128xf32>
    %cst_107 = arith.constant dense<0.000000e+00> : vector<8xf32>
    %291 = vector.multi_reduction <add>, %290, %cst_107 [1] : vector<8x128xf32> to vector<8xf32>
    %292 = vector.shape_cast %291 : vector<8xf32> to vector<8x1xf32>
    %cst_108 = arith.constant 3.125000e-02 : f32
    %293 = vector.broadcast %cst_108 : f32 to vector<8x1xf32>
    %294 = arith.mulf %292, %293 : vector<8x1xf32>
    %295 = arith.mulf %290, %290 : vector<8x128xf32>
    %cst_109 = arith.constant dense<0.000000e+00> : vector<8xf32>
    %296 = vector.multi_reduction <add>, %295, %cst_109 [1] : vector<8x128xf32> to vector<8xf32>
    %297 = vector.shape_cast %296 : vector<8xf32> to vector<8x1xf32>
    %cst_110 = arith.constant 3.125000e-02 : f32
    %298 = vector.broadcast %cst_110 : f32 to vector<8x1xf32>
    %299 = arith.mulf %297, %298 : vector<8x1xf32>
    %300 = vector.broadcast %294 : vector<8x1xf32> to vector<8x128xf32>
    %301 = arith.subf %290, %300 : vector<8x128xf32>
    %302 = arith.mulf %294, %294 : vector<8x1xf32>
    %303 = arith.subf %299, %302 : vector<8x1xf32>
    %cst_111 = arith.constant 9.99999996E-13 : f32
    %304 = vector.broadcast %cst_111 : f32 to vector<8x1xf32>
    %305 = arith.addf %303, %304 : vector<8x1xf32>
    %306 = math.rsqrt %305 : vector<8x1xf32>
    %307 = vector.broadcast %306 : vector<8x1xf32> to vector<8x128xf32>
    %308 = arith.mulf %301, %307 : vector<8x128xf32>
    %309 = vector.broadcast %20 : vector<1x128xf32> to vector<8x128xf32>
    %310 = arith.mulf %309, %308 : vector<8x128xf32>
    %311 = vector.broadcast %21 : vector<1x128xf32> to vector<8x128xf32>
    %312 = arith.addf %310, %311 : vector<8x128xf32>
    %c0_112 = arith.constant 0 : index
    %c0_113 = arith.constant 0 : index
    %313 = vector.load %arg24[%c0_112, %c0_113] : memref<8x128xf32, #tpu.memory_space<vmem>>, vector<8x128xf32>
    tpu.vector_store %arg24[%c0_112, %c0_113], %312 {strides = array<i32>} : memref<8x128xf32, #tpu.memory_space<vmem>>, vector<8x128xf32>,
    return
  }
}

</mosaic_0001>

<bundles_post_ra>
// kernel: tpu_custom_call.1
= control target key start
LH: loop header
LB: loop body
LE: loop exit
PB: predicated region body
PF: predicated region fallthrough
CT: control target
= control target key end

     0   :  { %s2994_s0 = inlined_call_operand.vmem [shape: f32[8,128], index: 0, kind: input, shape index: {}]   ;;  %s2995_s1 = inlined_call_operand.vmem [shape: f32[16,1], index: 1, kind: input, shape index: {}]   ;;  %s2996_s2 = inlined_call_operand.vmem [shape: f32[32,8], index: 2, kind: input, shape index: {}]   ;;  %s2997_s3 = inlined_call_operand.vmem [shape: f32[8,16], index: 3, kind: input, shape index: {}]   ;;  %s2998_s4 = inlined_call_operand.hbm [shape: f32[128,128], index: 4, kind: input, shape index: {}]   ;;  %s2999_s5 = inlined_call_operand.hbm [shape: f32[128,128], index: 5, kind: input, shape index: {}]   ;;  %s3000_s6 = inlined_call_operand.vmem [shape: f32[1,128], index: 6, kind: input, shape index: {}]   ;;  %s3001_s7 = inlined_call_operand.hbm [shape: f32[128,256], index: 7, kind: input, shape index: {}]   ;;  %s3002_s8 = inlined_call_operand.vmem [shape: f32[1,256], index: 8, kind: input, shape index: {}]   ;;  %s3003_s9 = inlined_call_operand.vmem [shape: f32[1,256], index: 9, kind: input, shape index: {}]   ;;  %s3004_s10 = inlined_call_operand.hbm [shape: f32[128,128], index: 10, kind: input, shape index: {}]   ;;  %s3005_s11 = inlined_call_operand.vmem [shape: f32[1,128], index: 11, kind: input, shape index: {}]   ;;  %s3006_s12 = inlined_call_operand.vmem [shape: f32[1,128], index: 12, kind: input, shape index: {}]   ;;  %s3007_s13 = inlined_call_operand.vmem [shape: f32[1,128], index: 13, kind: input, shape index: {}]   ;;  %s3008_s14 = inlined_call_operand.hbm [shape: f32[128,128], index: 14, kind: input, shape index: {}]   ;;  %s3009_s15 = inlined_call_operand.vmem [shape: f32[1,128], index: 15, kind: input, shape index: {}]   ;;  %s3010_s16 = inlined_call_operand.hbm [shape: f32[128,128], index: 16, kind: input, shape index: {}]   ;;  %s3011_s17 = inlined_call_operand.vmem [shape: f32[1,128], index: 17, kind: input, shape index: {}]   ;;  %s3012_s18 = inlined_call_operand.vmem [shape: f32[1,128], index: 18, kind: input, shape index: {}]   ;;  %s3013_s19 = inlined_call_operand.vmem [shape: f32[1,128], index: 19, kind: input, shape index: {}]   ;;  %s3014_s20 = inlined_call_operand.hbm [shape: f32[256,512], index: 20, kind: input, shape index: {}]   ;;  %s3015_s21 = inlined_call_operand.vmem [shape: f32[1,512], index: 21, kind: input, shape index: {}]   ;;  %s3016_s22 = inlined_call_operand.vmem [shape: f32[1,128], index: 22, kind: input, shape index: {}]   ;;  %s3017_s23 = inlined_call_operand.vmem [shape: f32[1,128], index: 23, kind: input, shape index: {}]   ;;  %s3018_s24 = inlined_call_operand.hbm [shape: f32[8,128], index: 24, kind: output, shape index: {}]  }
   0x1   :  { %3096 = sst [smem:[#allocation90_spill]] %s2994_s0 }
   0x2   :  { %3097 = sst [smem:[#allocation91_spill]] %s2995_s1 }
   0x3   :  { %3098 = sst [smem:[#allocation92_spill]] %s2996_s2 }
   0x4   :  { %3099 = sst [smem:[#allocation93_spill]] %s2997_s3 }
   0x5   :  { %3100 = sst [smem:[#allocation94_spill]] %s2998_s4 }
   0x6   :  { %3101 = sst [smem:[#allocation95_spill]] %s2999_s5 }
   0x7   :  { %3102 = sst [smem:[#allocation96_spill]] %s3000_s6 }
   0x8   :  { %3103 = sst [smem:[#allocation97_spill]] %s3001_s7 }
   0x9   :  { %3104 = sst [smem:[#allocation98_spill]] %s3002_s8 }
   0xa   :  { %29 = vsyncpa [#allocation3], 0 }
   0xb   :  { %30 = vsyncpa [#allocation6], 0 }
   0xc   :  { %31 = vsyncpa [#allocation9], 0 }
   0xd   :  { %32 = vsyncpa [#allocation12], 0 }
   0xe   :  { %33 = vsyncpa [#allocation4], 0  ;;  %s3105_s27 = sld [smem:[#allocation95_spill]]  ;;  %s2138_s6 = smov [#allocation5]  }
   0xf   :  { %s61_s2 = sshll.u32 %s2138_s6, 4  ;;  %s91_s7 = sshll.u32 %s3004_s10, 4  ;;  %s62_s2 = int_to_ptr.vmem [resolvable:$true] %s61_s2  ;;  %s92_s7 = int_to_ptr.hbm [resolvable:$true] %s91_s7 }
  0x10   :  { %s2139_s30 = smov 128   ;;  %s2140_s3 = smov 8  }
  0x11   :  { %s2141_s25 = smov [#allocation8]   ;;  %s125_s5 = sshll.u32 %s3010_s16, 4  ;;  %s126_s5 = int_to_ptr.hbm [resolvable:$true] %s125_s5 }
  0x12   :  { %s93_s8 = sshll.u32 %s2141_s25, 4  ;;  %s2142_s29 = smov [#allocation11]   ;;  %s94_s8 = int_to_ptr.vmem [resolvable:$true] %s93_s8 }
  0x13   :  { %99 = dma.hbm_to_vmem [thread:$0]  %s92_s7, 2048, %s94_s8, [#allocation9], %s2139_s30, %s2139_s30, %s2140_s3  }
  0x14   :  { %s59_s28 = sshll.u32 %s3105_s27, 4  ;;  %s3106_s27 = sld [smem:[#allocation94_spill]]  ;;  %s60_s28 = int_to_ptr.hbm [resolvable:$true] %s59_s28 }
  0x15   :  { %67 = dma.hbm_to_vmem [thread:$0]  %s60_s28, 2048, %s62_s2, [#allocation6], %s2139_s30, %s2139_s30, %s2140_s3  }
  0x16   :  { %s127_s0 = sshll.u32 %s2142_s29, 4  ;;  %s2143_s28 = smov [#allocation2]   ;;  %s128_s0 = int_to_ptr.vmem [resolvable:$true] %s127_s0 }
  0x17   :  { %133 = dma.hbm_to_vmem [thread:$0]  %s126_s5, 2048, %s128_s0, [#allocation12], %s2139_s30, %s2139_s30, %s2140_s3  }
  0x18   :  { %s48_s16 = sshll.u32 %s2143_s28, 4  ;;  %s3107_s4 = sld [smem:[#allocation97_spill]]  ;;  %s49_s16 = int_to_ptr.vmem [resolvable:$true] %s48_s16 }
  0x19   :  { %s2144_s7 = smov [#allocation7]   ;;  %s2145_s5 = smov 256  }
  0x1a   :  { %s46_s6 = sshll.u32 %s3106_s27, 4  ;;  %s76_s8 = sshll.u32 %s2144_s7, 4  ;;  %s47_s6 = int_to_ptr.hbm [resolvable:$true] %s46_s6  ;;  %s77_s8 = int_to_ptr.vmem [resolvable:$true] %s76_s8 }
  0x1b   :  { %54 = dma.hbm_to_vmem [thread:$0]  %s47_s6, 2048, %s49_s16, [#allocation3], %s2139_s30, %s2139_s30, %s2140_s3  }
  0x1c   :  { %s110_s27 = sshll.u32 %s3008_s14, 4  ;;  %s2146_s29 = smov 16   ;;  %s111_s27 = int_to_ptr.hbm [resolvable:$true] %s110_s27 }
  0x1d   :  { %s2147_s0 = smov [#allocation10]   ;;  %s2148_s6 = smov [#allocation13]  }
  0x1e   :  { %s74_s1 = sshll.u32 %s3107_s4, 4  ;;  %s112_s28 = sshll.u32 %s2147_s0, 4  ;;  %s75_s1 = int_to_ptr.hbm [resolvable:$true] %s74_s1  ;;  %s113_s28 = int_to_ptr.vmem [resolvable:$true] %s112_s28 }
  0x1f   :  { %82 = dma.hbm_to_vmem [thread:$0]  %s75_s1, 4096, %s77_s8, [#allocation6], %s2145_s5, %s2145_s5, %s2146_s29  }
  0x20   :  { %s144_s4 = sshll.u32 %s3014_s20, 4  ;;  %s146_s16 = sshll.u32 %s2148_s6, 4  ;;  %s145_s4 = int_to_ptr.hbm [resolvable:$true] %s144_s4  ;;  %s147_s16 = int_to_ptr.vmem [resolvable:$true] %s146_s16 }
  0x21   :  { %118 = dma.hbm_to_vmem [thread:$0]  %s111_s27, 2048, %s113_s28, [#allocation9], %s2139_s30, %s2139_s30, %s2140_s3  }
  0x22   :  { %s2149_s14 = smov 512   ;;  %s2150_s7 = smov 32  }
  0x23   :  { %152 = dma.hbm_to_vmem [thread:$0]  %s145_s4, 16384, %s147_s16, [#allocation12], %s2149_s14, %s2149_s14, %s2150_s7  }
  0x24   :  { %2128 = dma.done.wait [#allocation3], 2048  }
  0x25   :  { %2129 = vsyncadd [#allocation3], 4294965248 }
  0x26   :  { %2130 = dma.done.wait [#allocation6], 6144  }
  0x27   :  { %2131 = vsyncadd [#allocation6], 4294961152 }
  0x28   :  { %2132 = dma.done.wait [#allocation9], 4096  }
  0x29   :  { %2133 = vsyncadd [#allocation9], 4294963200 }
  0x2a   :  { %2134 = dma.done.wait [#allocation12], 18432  }
  0x2b   :  { %2135 = vsyncadd [#allocation12], 4294948864  ;;  %vm467_vm0 = vcmask 64512   ;;  %s3108_s8 = sld [smem:[#allocation90_spill]]  ;;  %v224_v2 = vld [vmem:[#allocation5 + $0x78] sm:$0xff]  ;;  %v223_v3 = vld [vmem:[#allocation5 + $0x70] sm:$0xff] }
  0x2c   :  { %s3109_s10 = sld [smem:[#allocation92_spill]]  ;;  %512 = vmatpush.msra.mxu1 %v224_v2  ;;  %v222_v4 = vld [vmem:[#allocation5 + $0x68] sm:$0xff]  ;;  %v256_v5 = vld [vmem:[#allocation7 + $0xf0] sm:$0xff]  ;;  %v221_v6 = vld [vmem:[#allocation5 + $0x60] sm:$0xff]  ;;  %v2151_v54 = vmov 0   ;;  %vm636_vm1 = vcmask 130048  }
  0x2d   :  { %v257_v7 = vld [vmem:[#allocation7 + $0xf8] sm:$0xff]  ;;  %v254_v8 = vld [vmem:[#allocation7 + $0xe0] sm:$0xff]  ;;  %v255_v9 = vld [vmem:[#allocation7 + $0xe8] sm:$0xff]  ;;  %s3110_s4 = sld [smem:[#allocation91_spill]]  ;;  %1734 = vset.pattern.permute.xlu0 %v2151_v54  ;;  %s1684_s25 = sshll.u32 %s3018_s24, 4  ;;  %s1685_s25 = int_to_ptr.hbm [resolvable:$true] %s1684_s25 }
  0x2e   :  { %513 = vmatpush.msra.mxu1 %v223_v3  ;;  %558 = vmatpush.msra.mxu3 %v257_v7  ;;  %v252_v10 = vld [vmem:[#allocation7 + $0xd0] sm:$0xff]  ;;  %v220_v12 = vld [vmem:[#allocation5 + $0x58] sm:$0xff]  ;;  %v250_v14 = vld [vmem:[#allocation7 + $0xc0] sm:$0xff]  ;;  %s3112_s1 = sld [smem:[#allocation98_spill]] }
  0x2f   :  { %v253_v13 = vld [vmem:[#allocation7 + $0xd8] sm:$0xff]  ;;  %v219_v15 = vld [vmem:[#allocation5 + $0x50] sm:$0xff]  ;;  %v218_v16 = vld [vmem:[#allocation5 + $0x48] sm:$0xff]  ;;  %s3114_s26 = sld [smem:[#allocation96_spill]] }
  0x30   :  { %514 = vmatpush.msra.mxu1 %v222_v4  ;;  %559 = vmatpush.msra.mxu3 %v255_v9  ;;  %v251_v17 = vld [vmem:[#allocation7 + $0xc8] sm:$0xff]  ;;  %v248_v18 = vld [vmem:[#allocation7 + $0xb0] sm:$0xff]  ;;  %v249_v19 = vld [vmem:[#allocation7 + $0xb8] sm:$0xff]  ;;  %s3119_s0 = sld [smem:[#allocation93_spill]] }
  0x31   :  { %v2317_v0 = vld [vmem:[%s3108_s8] sm:$0xff]  ;;  %v247_v22 = vld [vmem:[#allocation7 + $0xa8] sm:$0xff]  ;;  %v244_v23 = vld [vmem:[#allocation7 + $0x90] sm:$0xff] }
  0x32   :  { %v188_v1 = vld [vmem:[%s3109_s10] sm:$0xff]  ;;  %495 = vmatpush.msra.mxu2 %v2317_v0  ;;  %v189_v11 = vld [vmem:[%s3109_s10 + $0x8] sm:$0xff]  ;;  %515 = vmatpush.msra.mxu1 %v221_v6  ;;  %v190_v24 = vld [vmem:[%s3109_s10 + $0x10] sm:$0xff] }
  0x33   :  { %1697 = vmatmul.msk.f32.vlgmr.msra.gmra.mxu2 %vm467_vm0, %v188_v1  ;;  %v217_v20 = vld [vmem:[#allocation5 + $0x40] sm:$0xff]  ;;  %560 = vmatpush.msra.mxu3 %v253_v13  ;;  %v216_v25 = vld [vmem:[#allocation5 + $0x38] sm:$0xff]  ;;  %v215_v27 = vld [vmem:[#allocation5 + $0x30] sm:$0xff] }
  0x34   :  { %535 = vmatpush.msrb.mxu2 %v256_v5  ;;  %516 = vmatpush.msra.mxu1 %v220_v12  ;;  %v246_v21 = vld [vmem:[#allocation7 + $0xa0] sm:$0xff]  ;;  %v245_v26 = vld [vmem:[#allocation7 + $0x98] sm:$0xff]  ;;  %v214_v28 = vld [vmem:[#allocation5 + $0x28] sm:$0xff] }
  0x35   :  { %561 = vmatpush.msra.mxu3 %v251_v17  ;;  %v213_v29 = vld [vmem:[#allocation5 + $0x20] sm:$0xff]  ;;  %v191_v30 = vld [vmem:[%s3109_s10 + $0x18] sm:$0xff]  ;;  %v211_v32 = vld [vmem:[#allocation5 + $0x10] sm:$0xff] }
  0x36   :  { %536 = vmatpush.msrb.mxu2 %v254_v8  ;;  %517 = vmatpush.msra.mxu1 %v219_v15  ;;  %v212_v31 = vld [vmem:[#allocation5 + $0x18] sm:$0xff]  ;;  %v210_v33 = vld [vmem:[#allocation5 + $0x8] sm:$0xff]  ;;  %v209_v34 = vld [vmem:[#allocation5] sm:$0xff] }
  0x37   :  { %562 = vmatpush.msra.mxu3 %v249_v19  ;;  %v242_v35 = vld [vmem:[#allocation7 + $0x80] sm:$0xff]  ;;  %v243_v36 = vld [vmem:[#allocation7 + $0x88] sm:$0xff]  ;;  %v240_v37 = vld [vmem:[#allocation7 + $0x70] sm:$0xff] }
  0x38   :  { %537 = vmatpush.msrb.mxu2 %v252_v10  ;;  %518 = vmatpush.msra.mxu1 %v218_v16  ;;  %v241_v38 = vld [vmem:[#allocation7 + $0x78] sm:$0xff]  ;;  %v238_v39 = vld [vmem:[#allocation7 + $0x60] sm:$0xff]  ;;  %v239_v40 = vld [vmem:[#allocation7 + $0x68] sm:$0xff] }
  0x39   :  { %563 = vmatpush.msra.mxu3 %v247_v22  ;;  %v236_v41 = vld [vmem:[#allocation7 + $0x50] sm:$0xff]  ;;  %v237_v42 = vld [vmem:[#allocation7 + $0x58] sm:$0xff]  ;;  %v234_v43 = vld [vmem:[#allocation7 + $0x40] sm:$0xff] }
  0x3a   :  { %538 = vmatpush.msrb.mxu2 %v250_v14  ;;  %519 = vmatpush.msra.mxu1 %v217_v20  ;;  %v235_v44 = vld [vmem:[#allocation7 + $0x48] sm:$0xff]  ;;  %v232_v45 = vld [vmem:[#allocation7 + $0x30] sm:$0xff]  ;;  %v233_v46 = vld [vmem:[#allocation7 + $0x38] sm:$0xff] }
  0x3b   :  { %1698 = vmatmul.msk.f32.gmra.mxu2 %vm467_vm0, %v189_v11  ;;  %564 = vmatpush.msra.mxu3 %v245_v26  ;;  %v230_v47 = vld [vmem:[#allocation7 + $0x20] sm:$0xff]  ;;  %v231_v48 = vld [vmem:[#allocation7 + $0x28] sm:$0xff]  ;;  %v228_v49 = vld [vmem:[#allocation7 + $0x10] sm:$0xff] }
  0x3c   :  { %539 = vmatpush.msrb.mxu2 %v248_v18  ;;  %520 = vmatpush.msra.mxu1 %v216_v25  ;;  %v229_v50 = vld [vmem:[#allocation7 + $0x18] sm:$0xff]  ;;  %v226_v51 = vld [vmem:[#allocation7] sm:$0xff]  ;;  %v227_v52 = vld [vmem:[#allocation7 + $0x8] sm:$0xff] }
  0x3d   :  { %565 = vmatpush.msra.mxu3 %v243_v36  ;;  %v445_v53 = vld [vmem:[%s3110_s4] sm:$0xff]  ;;  %v446_v55 = vld [vmem:[%s3110_s4 + $0x8] sm:$0xff]  ;;  %v208_v56 = vld [vmem:[#allocation2 + $0x78] sm:$0xff] }
  0x3e   :  { %540 = vmatpush.msrb.mxu2 %v246_v21  ;;  %521 = vmatpush.msra.mxu1 %v215_v27  ;;  %v207_v61 = vld [vmem:[#allocation2 + $0x70] sm:$0xff]  ;;  %v206_v62 = vld [vmem:[#allocation2 + $0x68] sm:$0xff]  ;;  %v205_v63 = vld [vmem:[#allocation2 + $0x60] sm:$0xff] }
  0x3f   :  { %566 = vmatpush.msra.mxu3 %v241_v38  ;;  %450 = vperm.xlu0 %1734, %v445_v53   ;;  %v204_v1 = vld [vmem:[#allocation2 + $0x58] sm:$0xff]  ;;  %v203_v2 = vld [vmem:[#allocation2 + $0x50] sm:$0xff]  ;;  %v202_v3 = vld [vmem:[#allocation2 + $0x48] sm:$0xff] }
  0x40   :  { %541 = vmatpush.msrb.mxu2 %v244_v23  ;;  %522 = vmatpush.msra.mxu1 %v214_v28  ;;  %v2345_v4 = vld [vmem:[%s3003_s9] sm:$0x3]  ;;  %v200_v8 = vld [vmem:[#allocation2 + $0x38] sm:$0xff]  ;;  %v199_v10 = vld [vmem:[#allocation2 + $0x30] sm:$0xff] }
  0x41   :  { %567 = vmatpush.msra.mxu3 %v239_v40  ;;  %592 = vmatpush.msra.mxu0 %v208_v56  ;;  %v201_v5 = vld [vmem:[#allocation2 + $0x40] sm:$0xff]  ;;  %v460_v6 = vperm.slane %v2345_v4, 1  ;;  %v198_v11 = vld [vmem:[#allocation2 + $0x28] sm:$0xff]  ;;  %v196_v13 = vld [vmem:[#allocation2 + $0x18] sm:$0xff]  ;;  %v459_v17 = vperm.slane %v2345_v4, 0 }
  0x42   :  { %523 = vmatpush.msra.mxu1 %v213_v29  ;;  %542 = vmatpush.msrb.mxu2 %v242_v35  ;;  %v197_v12 = vld [vmem:[#allocation2 + $0x20] sm:$0xff]  ;;  %v195_v14 = vld [vmem:[#allocation2 + $0x10] sm:$0xff]  ;;  %v194_v15 = vld [vmem:[#allocation2 + $0x8] sm:$0xff] }
  0x43   :  { %1699 = vmatmul.msk.f32.gmra.mxu2 %vm467_vm0, %v190_v24  ;;  %568 = vmatpush.msra.mxu3 %v237_v42  ;;  %v193_v16 = vld [vmem:[#allocation2] sm:$0xff]  ;;  %v270_v53 = vld [vmem:[#allocation8 + $0x58] sm:$0xff] }
  0x44   :  { %524 = vmatpush.msra.mxu1 %v212_v31  ;;  %543 = vmatpush.msrb.mxu2 %v240_v37  ;;  %v2356_v18 = vld [vmem:[%s3112_s1] sm:$0x3] }
  0x45   :  { %569 = vmatpush.msra.mxu3 %v235_v44  ;;  %593 = vmatpush.msra.mxu0 %v207_v61  ;;  %v1735_v21 = vld [vmem:[%s3114_s26] ss:$0 sm:$0xff]  ;;  %v2364_v22 = vperm.slane %v2356_v18, 0 }
  0x46   :  { %525 = vmatpush.msra.mxu1 %v211_v32  ;;  %544 = vmatpush.msrb.mxu2 %v238_v39 }
  0x47   :  { %570 = vmatpush.msra.mxu3 %v233_v46  ;;  %455 = vperm.xlu0 %1734, %v446_v55   ;;  %3115 = vst [vmem:[#allocation22_spill] sm:$0xff] %v2364_v22  ;;  %v269_v55 = vld [vmem:[#allocation8 + $0x50] sm:$0xff] }
  0x48   :  { %526 = vmatpush.msra.mxu1 %v210_v33  ;;  %545 = vmatpush.msrb.mxu2 %v236_v41 }
  0x49   :  { %571 = vmatpush.msra.mxu3 %v231_v48  ;;  %594 = vmatpush.msra.mxu0 %v206_v62  ;;  %v274_v48 = vld [vmem:[#allocation8 + $0x78] sm:$0xff]  ;;  %v267_v62 = vld [vmem:[#allocation8 + $0x40] sm:$0xff] }
  0x4a   :  { %527 = vmatpush.msra.mxu1 %v209_v34  ;;  %546 = vmatpush.msrb.mxu2 %v234_v43 }
  0x4b   :  { %1700 = vmatmul.msk.f32.gmra.mxu2 %vm467_vm0, %v191_v30  ;;  %572 = vmatpush.msra.mxu3 %v229_v50 }
  0x4c   :  { %547 = vmatpush.msrb.mxu2 %v232_v45  ;;  %595 = vmatpush.msra.mxu0 %v205_v63 }
  0x4d   :  { %573 = vmatpush.msra.mxu3 %v227_v52  ;;  %v271_v52 = vld [vmem:[#allocation8 + $0x60] sm:$0xff] }
  0x4e   :  { %548 = vmatpush.msrb.mxu2 %v230_v47  ;;  %596 = vmatpush.msra.mxu0 %v204_v1  ;;  %v266_v1 = vld [vmem:[#allocation8 + $0x38] sm:$0xff] }
  0x4f   :  { %686 = vmatpush.msrb.mxu3 %v274_v48 }
  0x50   :  { %549 = vmatpush.msrb.mxu2 %v228_v49  ;;  %597 = vmatpush.msra.mxu0 %v203_v2  ;;  %v273_v49 = vld [vmem:[#allocation8 + $0x70] sm:$0xff] }
  0x51   :  { %687 = vmatpush.msrb.mxu3 %v273_v49 }
  0x52   :  { %550 = vmatpush.msrb.mxu2 %v226_v51  ;;  %598 = vmatpush.msra.mxu0 %v202_v3  ;;  %v272_v51 = vld [vmem:[#allocation8 + $0x68] sm:$0xff]  ;;  %v265_v3 = vld [vmem:[#allocation8 + $0x30] sm:$0xff] }
  0x53   :  { %688 = vmatpush.msrb.mxu3 %v272_v51 }
  0x54   :  { %599 = vmatpush.msra.mxu0 %v201_v5  ;;  %v2378_v5 = vperm.slane %v2356_v18, 1  ;;  %v260_v18 = vld [vmem:[#allocation8 + $0x8] sm:$0xff] }
  0x55   :  { %689 = vmatpush.msrb.mxu3 %v271_v52 }
  0x56   :  { %600 = vmatpush.msra.mxu0 %v200_v8  ;;  %3118 = vst [vmem:[#allocation25_spill] sm:$0xff] %v2378_v5 }
  0x57   :  { %690 = vmatpush.msrb.mxu3 %v270_v53 }
  0x58   :  { %601 = vmatpush.msra.mxu0 %v199_v10 }
  0x59   :  { %691 = vmatpush.msrb.mxu3 %v269_v55 }
  0x5a   :  { %602 = vmatpush.msra.mxu0 %v198_v11 }
  0x5c   :  { %603 = vmatpush.msra.mxu0 %v197_v12 }
  0x5e   :  { %604 = vmatpush.msra.mxu0 %v196_v13 }
  0x60   :  { %605 = vmatpush.msra.mxu0 %v195_v14  ;;  %v264_v14 = vld [vmem:[#allocation8 + $0x28] sm:$0xff] }
  0x62   :  { %606 = vmatpush.msra.mxu0 %v194_v15  ;;  %v263_v15 = vld [vmem:[#allocation8 + $0x20] sm:$0xff] }
  0x64   :  { %607 = vmatpush.msra.mxu0 %v193_v16  ;;  %v262_v16 = vld [vmem:[#allocation8 + $0x18] sm:$0xff] }
  0xb1   :  { %v451_v7 = vpop.permute.xlu0 %450 }
  0xb2   :  { %v2350_v9 = vmul.f32 %v460_v6, %v451_v7  ;;  %v2358_v19 = vmul.f32 %v459_v17, %v451_v7 }
  0xb4   :  { %3111 = vst [vmem:[#allocation20_spill] sm:$0xff] %v2350_v9 }
  0xb5   :  { %3113 = vst [vmem:[#allocation21_spill] sm:$0xff] %v2358_v19 }
  0xb6   :  { %v497_v57 = vpop.f32.mrf.mxu2 }
  0xb7   :  { %528 = vmatmul.f32.vlgmr.msra.gmra.mxu1 %v497_v57 }
  0xb9   :  { %v456_v27 = vpop.permute.xlu0 %455 }
  0xba   :  { %v2368_v29 = vmul.f32 %v459_v17, %v456_v27  ;;  %v2374_v63 = vmul.f32 %v460_v6, %v456_v27  ;;  %v192_v6 = vld [vmem:[%s3119_s0] sm:$0xff]  ;;  %v261_v17 = vld [vmem:[#allocation8 + $0x10] sm:$0xff] }
  0xbb   :  { %v1736_v27 = vld [vmem:[%s3005_s11] ss:$0 sm:$0xff] }
  0xbc   :  { %3116 = vst [vmem:[#allocation23_spill] sm:$0xff] %v2368_v29 }
  0xbd   :  { %3117 = vst [vmem:[#allocation24_spill] sm:$0xff] %v2374_v63 }
  0xbe   :  { %v500_v58 = vpop.f32.mrf.mxu2 }
  0xbf   :  { %531 = vmatmul.f32.gmra.mxu1 %v500_v58  ;;  %v268_v58 = vld [vmem:[#allocation8 + $0x48] sm:$0xff] }
  0xc0   :  { %692 = vmatpush.msrb.mxu3 %v268_v58 }
  0xc2   :  { %693 = vmatpush.msrb.mxu3 %v267_v62  ;;  %v1737_v62 = vld [vmem:[%s3006_s12] ss:$0 sm:$0xff] }
  0xc4   :  { %694 = vmatpush.msrb.mxu3 %v266_v1 }
  0xc6   :  { %v503_v59 = vpop.f32.mrf.mxu2  ;;  %695 = vmatpush.msrb.mxu3 %v265_v3  ;;  %v1738_v3 = vld [vmem:[%s3007_s13] ss:$0 sm:$0xff] }
  0xc7   :  { %551 = vmatmul.f32.vlgmr.msrb.gmra.mxu2 %v503_v59  ;;  %574 = vmatmul.f32.vlgmr.msra.gmra.mxu3 %v503_v59 }
  0xc8   :  { %696 = vmatpush.msrb.mxu3 %v264_v14 }
  0xca   :  { %697 = vmatpush.msrb.mxu3 %v263_v15 }
  0xcc   :  { %698 = vmatpush.msrb.mxu3 %v262_v16  ;;  %v2469_v16 = vld [vmem:[#allocation11 + $0x50] sm:$0xff] }
  0xce   :  { %v506_v60 = vpop.f32.mrf.mxu2  ;;  %699 = vmatpush.msrb.mxu3 %v261_v17 }
  0xcf   :  { %554 = vmatmul.f32.gmra.mxu2 %v506_v60  ;;  %577 = vmatmul.f32.gmra.mxu3 %v506_v60 }
  0xd0   :  { %700 = vmatpush.msrb.mxu3 %v260_v18  ;;  %v2473_v18 = vld [vmem:[#allocation11 + $0x48] sm:$0xff] }
 0x134   :  { %v529_v20 = vpop.f32.mrf.mxu1 }
 0x135   :  { %v530_v25 = vadd.f32 %v1735_v21, %v529_v20  ;;  %v259_v20 = vld [vmem:[#allocation8] sm:$0xff] }
 0x136   :  { %701 = vmatpush.msrb.mxu3 %v259_v20 }
 0x13c   :  { %v532_v30 = vpop.f32.mrf.mxu1 }
 0x13d   :  { %v533_v33 = vadd.f32 %v1735_v21, %v532_v30 }
 0x14a   :  { %v552_v23 = vpop.f32.mrf.mxu2  ;;  %v575_v50 = vpop.f32.mrf.mxu3 }
 0x14b   :  { %v553_v24 = vadd.f32 %v552_v23, %v2358_v19  ;;  %v576_v7 = vadd.f32 %v575_v50, %v2350_v9  ;;  %v2606_v19 = vld [vmem:[#allocation13 + $0x240] sm:$0xff] }
 0x14c   :  { %3137 = vst [vmem:[#allocation43_spill] sm:$0xff] %v2606_v19 }
 0x14d   :  { %v586_v26 = vadd.f32 %v2364_v22, %v553_v24  ;;  %v587_v12 = vadd.f32 %v2378_v5, %v576_v7 }
 0x14f   :  { %v590_v28 = vmul.f32 %v586_v26, %v530_v25 }
 0x151   :  { %608 = vmatmul.f32.vlgmr.msra.gmra.mxu0 %v590_v28 }
 0x152   :  { %v555_v31 = vpop.f32.mrf.mxu2  ;;  %v578_v60 = vpop.f32.mrf.mxu3 }
 0x153   :  { %v556_v32 = vadd.f32 %v555_v31, %v2368_v29  ;;  %v579_v2 = vadd.f32 %v578_v60, %v2374_v63  ;;  %v2584_v29 = vld [vmem:[#allocation13 + $0x2a8] sm:$0xff] }
 0x154   :  { %3130 = vst [vmem:[#allocation36_spill] sm:$0xff] %v2584_v29 }
 0x155   :  { %v588_v34 = vadd.f32 %v2364_v22, %v556_v32  ;;  %v589_v8 = vadd.f32 %v2378_v5, %v579_v2  ;;  %v2564_v5 = vld [vmem:[#allocation13 + $0xa8] sm:$0xff] }
 0x156   :  { %3127 = vst [vmem:[#allocation33_spill] sm:$0xff] %v2564_v5  ;;  %v2599_v22 = vld [vmem:[#allocation13 + $0x48] sm:$0xff] }
 0x157   :  { %v591_v35 = vmul.f32 %v588_v34, %v533_v33  ;;  %v2392_v33 = vld [vmem:[#allocation10 + $0x78] sm:$0xff]  ;;  %v2395_v34 = vld [vmem:[#allocation10 + $0x70] sm:$0xff]  ;;  %3135 = vst [vmem:[#allocation41_spill] sm:$0xff] %v2599_v22 }
 0x158   :  { %740 = vmatpush.msrb.mxu0 %v2392_v33 }
 0x159   :  { %611 = vmatmul.f32.gmra.mxu0 %v591_v35  ;;  %v2398_v35 = vld [vmem:[#allocation10 + $0x68] sm:$0xff] }
 0x15a   :  { %741 = vmatpush.msrb.mxu0 %v2395_v34 }
 0x15c   :  { %742 = vmatpush.msrb.mxu0 %v2398_v35 }
 0x1ce   :  { %v609_v36 = vpop.f32.mrf.mxu0 }
 0x1cf   :  { %v615_v38 = vmul.f32 0.35355338, %v609_v36  ;;  %v2401_v36 = vld [vmem:[#allocation10 + $0x60] sm:$0xff] }
 0x1d0   :  { %743 = vmatpush.msrb.mxu0 %v2401_v36 }
 0x1d6   :  { %v612_v37 = vpop.f32.mrf.mxu0 }
 0x1d7   :  { %v616_v39 = vmul.f32 0.35355338, %v612_v37  ;;  %v2407_v37 = vld [vmem:[#allocation10 + $0x50] sm:$0xff] }
 0x1d9   :  { %v617_v40 = vmax.f32 %v615_v38, %v616_v39 }
 0x1db   :  { %618 = vmax.xlane.f32.xlu1 %v617_v40  ;;  %v2416_v40 = vld [vmem:[#allocation10 + $0x38] sm:$0xff] }
 0x24e   :  { %v619_v41 = vpop.xlane.xlu1 %618 }
 0x24f   :  { %v620_v42 = vrot.slane %v619_v41, 4 }
 0x251   :  { %v621_v43 = vmax.f32 %v619_v41, %v620_v42  ;;  %v2419_v41 = vld [vmem:[#allocation10 + $0x30] sm:$0xff]  ;;  %v2422_v42 = vld [vmem:[#allocation10 + $0x28] sm:$0xff] }
 0x253   :  { %v622_v44 = vrot.slane %v621_v43, 2 }
 0x255   :  { %v623_v45 = vmax.f32 %v621_v43, %v622_v44  ;;  %v2425_v43 = vld [vmem:[#allocation10 + $0x20] sm:$0xff]  ;;  %v2427_v44 = vld [vmem:[#allocation10 + $0x18] sm:$0xff] }
 0x257   :  { %v624_v46 = vrot.slane %v623_v45, 1 }
 0x259   :  { %v625_v47 = vmax.f32 %v623_v45, %v624_v46  ;;  %v2430_v45 = vld [vmem:[#allocation10 + $0x10] sm:$0xff]  ;;  %v2433_v46 = vld [vmem:[#allocation10 + $0x8] sm:$0xff] }
 0x25b   :  { %1715 = vpush %v625_v47  ;;  %v2436_v47 = vld [vmem:[#allocation10] sm:$0xff] }
 0x28c   :  { %s1716_s27 = spop %1715 }
 0x28d   :  { %v627_v54 = vstv %s1716_s27 }
 0x28e   :  { %v628_v56 = vsub.f32 %v615_v38, %v627_v54  ;;  %v629_v57 = vsub.f32 %v616_v39, %v627_v54  ;;  %v2410_v38 = vld [vmem:[#allocation10 + $0x48] sm:$0xff]  ;;  %v2413_v39 = vld [vmem:[#allocation10 + $0x40] sm:$0xff] }
 0x290   :  { %v632_v59 = vmul.f32 1.442695, %v629_v57  ;;  %v630_v61 = vmul.f32 1.442695, %v628_v56 }
 0x292   :  { %1745 = vpow2.f32 %v632_v59 }
 0x293   :  { %1747 = vpow2.f32 %v630_v61 }
 0x298   :  { %v1746_v4 = vpop.eup %1745 }
 0x299   :  { %654 = vmatpush.msra.mxu2 %v1746_v4  ;;  %v635_v10 = vmul.f32 %v1746_v4, %v589_v8  ;;  %v1748_v11 = vpop.eup %1747  ;;  %v2449_v4 = vld [vmem:[#allocation11 + $0x78] sm:$0xff] }
 0x29a   :  { %v634_v13 = vmul.f32 %v1748_v11, %v587_v12  ;;  %807 = vmatpush.msrb.mxu1 %v2449_v4  ;;  %v2461_v12 = vld [vmem:[#allocation11 + $0x60] sm:$0xff] }
 0x29b   :  { %655 = vmatpush.msra.mxu2 %v1748_v11  ;;  %v1739_v11 = vld [vmem:[%s3009_s15] ss:$0 sm:$0xff] }
 0x29c   :  { %1701 = vmatmul.msk.f32.vlgmr.msra.gmra.mxu2 %vm636_vm1, %v192_v6 }
 0x29d   :  { %674 = vmatpush.msrb.mxu2 %v635_v10  ;;  %v2455_v10 = vld [vmem:[#allocation11 + $0x68] sm:$0xff] }
 0x29f   :  { %675 = vmatpush.msrb.mxu2 %v634_v13  ;;  %v2464_v13 = vld [vmem:[#allocation11 + $0x58] sm:$0xff] }
 0x2a4   :  { %1702 = vmatmul.msk.f32.vlgmr.msrb.gmra.mxu2 %vm636_vm1, %v192_v6  ;;  %v2452_v6 = vld [vmem:[#allocation11 + $0x70] sm:$0xff] }
 0x2a5   :  { %808 = vmatpush.msrb.mxu1 %v2452_v6 }
 0x2a7   :  { %809 = vmatpush.msrb.mxu1 %v2455_v10 }
 0x2a9   :  { %810 = vmatpush.msrb.mxu1 %v2461_v12 }
 0x2ab   :  { %811 = vmatpush.msrb.mxu1 %v2464_v13 }
 0x2ad   :  { %812 = vmatpush.msrb.mxu1 %v2469_v16 }
 0x2af   :  { %813 = vmatpush.msrb.mxu1 %v2473_v18 }
 0x31f   :  { %v657_v21 = vpop.f32.mrf.mxu2 }
 0x320   :  { %v680_v23 = vadd.f32 1e-16, %v657_v21  ;;  %v2476_v21 = vld [vmem:[#allocation11 + $0x40] sm:$0xff] }
 0x321   :  { %814 = vmatpush.msrb.mxu1 %v2476_v21 }
 0x322   :  { %1749 = vrcp.f32 %v680_v23 }
 0x327   :  { %v677_v24 = vpop.f32.mrf.mxu2 }
 0x328   :  { %v1750_v25 = vpop.eup %1749 }
 0x329   :  { %v682_v26 = vmul.f32 %v1750_v25, %v677_v24  ;;  %v2479_v24 = vld [vmem:[#allocation11 + $0x38] sm:$0xff] }
 0x32a   :  { %815 = vmatpush.msrb.mxu1 %v2479_v24 }
 0x32b   :  { %702 = vmatmul.f32.vlgmr.msrb.gmra.mxu3 %v682_v26 }
 0x3ae   :  { %v703_v28 = vpop.f32.mrf.mxu3 }
 0x3af   :  { %v704_v30 = vadd.f32 %v1736_v27, %v703_v28  ;;  %v2482_v27 = vld [vmem:[#allocation11 + $0x30] sm:$0xff] }
 0x3b0   :  { %816 = vmatpush.msrb.mxu1 %v2482_v27 }
 0x3b1   :  { %v706_v31 = vadd.f32 %v704_v30, %v2317_v0  ;;  %v2404_v0 = vld [vmem:[#allocation10 + $0x58] sm:$0xff] }
 0x3b2   :  { %744 = vmatpush.msrb.mxu0 %v2404_v0 }
 0x3b3   :  { %707 = vadd.xlane.f32.xlu1 %v706_v31  ;;  %v710_v32 = vmul.f32 %v706_v31, %v706_v31 }
 0x3b4   :  { %745 = vmatpush.msrb.mxu0 %v2407_v37 }
 0x3b5   :  { %711 = vadd.xlane.f32.xlu2 %v710_v32 }
 0x3b6   :  { %746 = vmatpush.msrb.mxu0 %v2410_v38 }
 0x3b8   :  { %747 = vmatpush.msrb.mxu0 %v2413_v39 }
 0x3ba   :  { %748 = vmatpush.msrb.mxu0 %v2416_v40 }
 0x3bc   :  { %749 = vmatpush.msrb.mxu0 %v2419_v41 }
 0x3be   :  { %750 = vmatpush.msrb.mxu0 %v2422_v42 }
 0x3c0   :  { %751 = vmatpush.msrb.mxu0 %v2425_v43 }
 0x3c2   :  { %752 = vmatpush.msrb.mxu0 %v2427_v44 }
 0x3c4   :  { %753 = vmatpush.msrb.mxu0 %v2430_v45 }
 0x3c6   :  { %754 = vmatpush.msrb.mxu0 %v2433_v46 }
 0x3c8   :  { %755 = vmatpush.msrb.mxu0 %v2436_v47 }
 0x426   :  { %v708_v48 = vpop.xlane.xlu1 %707 }
 0x427   :  { %v709_v49 = vmul.f32 0.03125, %v708_v48 }
 0x428   :  { %v712_v50 = vpop.xlane.xlu2 %711 }
 0x429   :  { %v715_v51 = vmul.f32 %v709_v49, %v709_v49  ;;  %v713_v52 = vmul.f32 0.03125, %v712_v50  ;;  %v714_v61 = vsub.f32 %v706_v31, %v709_v49  ;;  %v2485_v31 = vld [vmem:[#allocation11 + $0x28] sm:$0xff]  ;;  %v2488_v49 = vld [vmem:[#allocation11 + $0x20] sm:$0xff]  ;;  %v2491_v50 = vld [vmem:[#allocation11 + $0x18] sm:$0xff] }
 0x42a   :  { %817 = vmatpush.msrb.mxu1 %v2485_v31 }
 0x42b   :  { %v716_v53 = vsub.f32 %v713_v52, %v715_v51  ;;  %v2493_v52 = vld [vmem:[#allocation11 + $0x10] sm:$0xff] }
 0x42c   :  { %818 = vmatpush.msrb.mxu1 %v2488_v49 }
 0x42d   :  { %v717_v54 = vadd.f32 1e-12, %v716_v53 }
 0x42e   :  { %819 = vmatpush.msrb.mxu1 %v2491_v50 }
 0x42f   :  { %1751 = vrsqrt.f32 %v717_v54  ;;  %vm724_vm3 = vweird.f32 %v717_v54 }
 0x430   :  { %820 = vmatpush.msrb.mxu1 %v2493_v52 }
 0x435   :  { %v1752_v55 = vpop.eup %1751 }
 0x436   :  { %v719_v56 = vmul.f32 %v1752_v55, %v717_v54  ;;  %vm725_vm2 = vweird.f32 %v1752_v55 }
 0x437   :  { %vm726_vm4 = vmor %vm724_vm3, %vm725_vm2 }
 0x438   :  { %v720_v57 = vmul.f32 %v1752_v55, %v719_v56 }
 0x43a   :  { %v721_v58 = vmul.f32 0.5, %v720_v57  ;;  %v2499_v57 = vld [vmem:[#allocation11] sm:$0xff] }
 0x43c   :  { %v722_v59 = vsub.f32 1.5, %v721_v58 }
 0x43e   :  { %v723_v60 = vmul.f32 %v1752_v55, %v722_v59 }
 0x440   :  { %v727_v1 = vsel %vm726_vm4, %v1752_v55, %v723_v60  ;;  %v2496_v55 = vld [vmem:[#allocation11 + $0x8] sm:$0xff] }
 0x441   :  { %v728_v2 = vmul.f32 %v727_v1, %v714_v61  ;;  %821 = vmatpush.msrb.mxu1 %v2496_v55 }
 0x443   :  { %v732_v7 = vmul.f32 %v1737_v62, %v728_v2  ;;  %822 = vmatpush.msrb.mxu1 %v2499_v57 }
 0x445   :  { %v2446_v8 = vadd.f32 %v1738_v3, %v732_v7 }
 0x447   :  { %756 = vmatmul.f32.vlgmr.msrb.gmra.mxu0 %v2446_v8 }
 0x4c4   :  { %v757_v14 = vpop.f32.mrf.mxu0 }
 0x4c5   :  { %v2467_v15 = vadd.f32 %v1739_v11, %v757_v14 }
 0x4c7   :  { %v761_v17 = vmul.f32 0.70710856, %v2467_v15 }
 0x4c9   :  { %v762_v20 = vmul.f32 %v761_v17, %v761_v17 }
 0x4cb   :  { %v763_v23 = vmin.f32 %v762_v20, 16.0 }
 0x4cd   :  { %v764_v25 = vmul.f32 2.1237322e-06, %v763_v23  ;;  %v775_v26 = vmul.f32 3.8918573e-05, %v763_v23 }
 0x4cf   :  { %v765_v28 = vadd.f32 0.00028619796, %v764_v25  ;;  %v776_v30 = vadd.f32 0.001143296, %v775_v26 }
 0x4d1   :  { %v766_v32 = vmul.f32 %v765_v28, %v763_v23  ;;  %v777_v48 = vmul.f32 %v776_v30, %v763_v23 }
 0x4d3   :  { %v778_v51 = vadd.f32 0.014752088, %v777_v48  ;;  %v767_v53 = vadd.f32 0.0036580483, %v766_v32 }
 0x4d5   :  { %v779_v54 = vmul.f32 %v778_v51, %v763_v23  ;;  %v768_v58 = vmul.f32 %v767_v53, %v763_v23 }
 0x4d7   :  { %v780_v56 = vadd.f32 0.112945676, %v779_v54  ;;  %v769_v61 = vadd.f32 0.05243302, %v768_v58 }
 0x4d9   :  { %v781_v59 = vmul.f32 %v780_v56, %v763_v23  ;;  %v770_v2 = vmul.f32 %v769_v61, %v763_v23  ;;  %v374_v61 = vld [vmem:[#allocation13 + $0x1e0] sm:$0xff] }
 0x4da   :  { %867 = vmatpush.msra.mxu2 %v374_v61  ;;  %v2535_v61 = vld [vmem:[#allocation13 + $0x128] sm:$0xff] }
 0x4db   :  { %v782_v60 = vadd.f32 0.4994258, %v781_v59  ;;  %v771_v3 = vadd.f32 0.18741608, %v770_v2  ;;  %v760_v59 = vmul.f32 0.5, %v2467_v15  ;;  %v370_v2 = vld [vmem:[#allocation13 + $0x1c0] sm:$0xff] }
 0x4dc   :  { %v2511_v15 = vld [vmem:[#allocation13 + $0x1a8] sm:$0xff]  ;;  %868 = vmatpush.msra.mxu2 %v370_v2 }
 0x4dd   :  { %v783_v62 = vmul.f32 %v782_v60, %v763_v23  ;;  %v772_v11 = vmul.f32 %v771_v3, %v763_v23  ;;  %v2504_v3 = vld [vmem:[#allocation13 + $0x3e0] sm:$0xff]  ;;  %v415_v2 = vld [vmem:[#allocation13 + $0x328] sm:$0xff] }
 0x4de   :  { %887 = vmatpush.msra.mxu3 %v2504_v3 }
 0x4df   :  { %v784_v1 = vadd.f32 1.0, %v783_v62  ;;  %v773_v26 = vadd.f32 1.1283791, %v772_v11  ;;  %v375_v62 = vld [vmem:[#allocation13 + $0x1e8] sm:$0xff]  ;;  %v2509_v11 = vld [vmem:[#allocation13 + $0x3c0] sm:$0xff] }
 0x4e0   :  { %907 = vmatpush.msra.mxu0 %v375_v62  ;;  %888 = vmatpush.msra.mxu3 %v2509_v11  ;;  %v2538_v62 = vld [vmem:[#allocation13 + $0x320] sm:$0xff] }
 0x4e1   :  { %1753 = vrcp.f32 %v784_v1  ;;  %v796_v25 = vand.u32 2147483648, %v784_v1  ;;  %v794_v30 = vand.u32 2147483647, %v784_v1  ;;  %vm790_vm6 = vweird.f32 %v784_v1 }
 0x4e2   :  { %v774_v51 = vmul.f32 %v773_v26, %v761_v17  ;;  %v439_v17 = vld [vmem:[#allocation13 + $0x3e8] sm:$0xff] }
 0x4e3   :  { %v797_v48 = vor.u32 1.1754944e-38, %v796_v25  ;;  %vm795_vm8 = vcmp.eq.f32.partialorder %v794_v30, 8.507059e+37  ;;  %927 = vmatpush.msra.mxu1 %v439_v17  ;;  %v362_v25 = vld [vmem:[#allocation13 + $0x180] sm:$0xff]  ;;  %v2517_v26 = vld [vmem:[#allocation13 + $0x188] sm:$0xff] }
 0x4e4   :  { %v2520_v30 = vld [vmem:[#allocation13 + $0x380] sm:$0xff] }
 0x4e5   :  { %v346_v17 = vld [vmem:[#allocation13 + $0x100] sm:$0xff] }
 0x4e7   :  { %v1754_v7 = vpop.eup %1753 }
 0x4e8   :  { %v786_v14 = vmul.f32 %v1754_v7, %v784_v1  ;;  %vm791_vm5 = vweird.f32 %v1754_v7  ;;  %v2506_v1 = vld [vmem:[#allocation13 + $0x1c8] sm:$0xff] }
 0x4e9   :  { %vm792_vm7 = vmor %vm790_vm6, %vm791_vm5  ;;  %908 = vmatpush.msra.mxu0 %v2506_v1 }
 0x4ea   :  { %v787_v20 = vsub.f32 1.0, %v786_v14  ;;  %v435_v14 = vld [vmem:[#allocation13 + $0x3c8] sm:$0xff] }
 0x4eb   :  { %928 = vmatpush.msra.mxu1 %v435_v14  ;;  %909 = vmatpush.msra.mxu0 %v2511_v15  ;;  %v2544_v14 = vld [vmem:[#allocation13 + $0x300] sm:$0xff] }
 0x4ec   :  { %v788_v28 = vmul.f32 %v1754_v7, %v787_v20  ;;  %v2514_v20 = vld [vmem:[#allocation13 + $0x3a0] sm:$0xff] }
 0x4ed   :  { %889 = vmatpush.msra.mxu3 %v2514_v20  ;;  %910 = vmatpush.msra.mxu0 %v2517_v26 }
 0x4ee   :  { %v789_v32 = vadd.f32 %v1754_v7, %v788_v28  ;;  %v431_v28 = vld [vmem:[#allocation13 + $0x3a8] sm:$0xff] }
 0x4ef   :  { %929 = vmatpush.msra.mxu1 %v431_v28  ;;  %890 = vmatpush.msra.mxu3 %v2520_v30  ;;  %v342_v28 = vld [vmem:[#allocation13 + $0xe0] sm:$0xff] }
 0x4f0   :  { %v793_v53 = vsel %vm792_vm7, %v1754_v7, %v789_v32  ;;  %v366_v7 = vld [vmem:[#allocation13 + $0x1a0] sm:$0xff]  ;;  %v427_v32 = vld [vmem:[#allocation13 + $0x388] sm:$0xff] }
 0x4f1   :  { %v798_v54 = vsel %vm795_vm8, %v797_v48, %v793_v53  ;;  %869 = vmatpush.msra.mxu2 %v366_v7  ;;  %v358_v48 = vld [vmem:[#allocation13 + $0x160] sm:$0xff]  ;;  %930 = vmatpush.msra.mxu1 %v427_v32  ;;  %v2541_v7 = vld [vmem:[#allocation13 + $0x108] sm:$0xff] }
 0x4f2   :  { %v799_v56 = vmul.f32 %v798_v54, %v774_v51  ;;  %v2523_v51 = vld [vmem:[#allocation13 + $0x168] sm:$0xff]  ;;  %v2526_v53 = vld [vmem:[#allocation13 + $0x360] sm:$0xff]  ;;  %3120 = vst [vmem:[#allocation26_spill] sm:$0xff] %v2541_v7 }
 0x4f3   :  { %870 = vmatpush.msra.mxu2 %v362_v25  ;;  %v423_v54 = vld [vmem:[#allocation13 + $0x368] sm:$0xff]  ;;  %911 = vmatpush.msra.mxu0 %v2523_v51 }
 0x4f4   :  { %v1703_v58 = vclamps-f32 %v799_v56, 1.0  ;;  %v354_v56 = vld [vmem:[#allocation13 + $0x140] sm:$0xff]  ;;  %891 = vmatpush.msra.mxu3 %v2526_v53  ;;  %931 = vmatpush.msra.mxu1 %v423_v54  ;;  %v411_v25 = vld [vmem:[#allocation13 + $0x308] sm:$0xff] }
 0x4f5   :  { %871 = vmatpush.msra.mxu2 %v358_v48  ;;  %v2547_v32 = vld [vmem:[#allocation13 + $0xe8] sm:$0xff]  ;;  %v2550_v48 = vld [vmem:[#allocation13 + $0x2e0] sm:$0xff] }
 0x4f6   :  { %v802_v23 = vadd.f32 1.0, %v1703_v58  ;;  %v2529_v58 = vld [vmem:[#allocation13 + $0x148] sm:$0xff]  ;;  %3121 = vst [vmem:[#allocation27_spill] sm:$0xff] %v2547_v32 }
 0x4f7   :  { %872 = vmatpush.msra.mxu2 %v354_v56  ;;  %912 = vmatpush.msra.mxu0 %v2529_v58  ;;  %3122 = vst [vmem:[#allocation28_spill] sm:$0xff] %v2550_v48  ;;  %v2552_v54 = vld [vmem:[#allocation13 + $0x2e8] sm:$0xff]  ;;  %v338_v56 = vld [vmem:[#allocation13 + $0xc0] sm:$0xff] }
 0x4f8   :  { %v803_v60 = vmul.f32 %v802_v23, %v760_v59  ;;  %v2532_v59 = vld [vmem:[#allocation13 + $0x340] sm:$0xff]  ;;  %v419_v23 = vld [vmem:[#allocation13 + $0x348] sm:$0xff]  ;;  %3123 = vst [vmem:[#allocation29_spill] sm:$0xff] %v2552_v54 }
 0x4f9   :  { %892 = vmatpush.msra.mxu3 %v2532_v59  ;;  %932 = vmatpush.msra.mxu1 %v419_v23  ;;  %v2555_v23 = vld [vmem:[#allocation13 + $0xc8] sm:$0xff] }
 0x4fa   :  { %823 = vmatmul.f32.vlgmr.msrb.gmra.mxu1 %v803_v60  ;;  %v350_v60 = vld [vmem:[#allocation13 + $0x120] sm:$0xff]  ;;  %913 = vmatpush.msra.mxu0 %v2535_v61  ;;  %3124 = vst [vmem:[#allocation30_spill] sm:$0xff] %v2555_v23 }
 0x4fb   :  { %873 = vmatpush.msra.mxu2 %v350_v60  ;;  %893 = vmatpush.msra.mxu3 %v2538_v62  ;;  %v2558_v60 = vld [vmem:[#allocation13 + $0x2c0] sm:$0xff] }
 0x4fc   :  { %933 = vmatpush.msra.mxu1 %v415_v2  ;;  %914 = vmatpush.msra.mxu0 %v2541_v7  ;;  %3125 = vst [vmem:[#allocation31_spill] sm:$0xff] %v2558_v60  ;;  %v2560_v2 = vld [vmem:[#allocation13 + $0x2c8] sm:$0xff] }
 0x4fd   :  { %874 = vmatpush.msra.mxu2 %v346_v17  ;;  %894 = vmatpush.msra.mxu3 %v2544_v14  ;;  %3126 = vst [vmem:[#allocation32_spill] sm:$0xff] %v2560_v2  ;;  %v334_v17 = vld [vmem:[#allocation13 + $0xa0] sm:$0xff] }
 0x4fe   :  { %934 = vmatpush.msra.mxu1 %v411_v25  ;;  %915 = vmatpush.msra.mxu0 %v2547_v32  ;;  %v1740_v25 = vld [vmem:[%s3011_s17] ss:$0 sm:$0xff]  ;;  %v393_v32 = vld [vmem:[#allocation13 + $0x278] sm:$0xff] }
 0x4ff   :  { %875 = vmatpush.msra.mxu2 %v342_v28  ;;  %895 = vmatpush.msra.mxu3 %v2550_v48  ;;  %v1801_v48 = vld [vmem:[#allocation2 + $0x60] sm:$0xff] }
 0x500   :  { %935 = vmatpush.msra.mxu1 %v2552_v54  ;;  %916 = vmatpush.msra.mxu0 %v2555_v23  ;;  %v330_v54 = vld [vmem:[#allocation13 + $0x80] sm:$0xff] }
 0x501   :  { %876 = vmatpush.msra.mxu2 %v338_v56  ;;  %896 = vmatpush.msra.mxu3 %v2558_v60 }
 0x502   :  { %936 = vmatpush.msra.mxu1 %v2560_v2  ;;  %917 = vmatpush.msra.mxu0 %v2564_v5  ;;  %v2579_v2 = vld [vmem:[#allocation13 + $0x2a0] sm:$0xff]  ;;  %v369_v5 = vld [vmem:[#allocation13 + $0x1b8] sm:$0xff] }
 0x503   :  { %877 = vmatpush.msra.mxu2 %v334_v17  ;;  %3128 = vst [vmem:[#allocation34_spill] sm:$0xff] %v2579_v2  ;;  %v2581_v17 = vld [vmem:[#allocation13 + $0x88] sm:$0xff]  ;;  %897 = vmatpush.msra.mxu3 %v2579_v2  ;;  %v2681_v2 = vld [vmem:[#allocation13 + $0x2f0] sm:$0xff] }
 0x504   :  { %3129 = vst [vmem:[#allocation35_spill] sm:$0xff] %v2581_v17  ;;  %918 = vmatpush.msra.mxu0 %v2581_v17  ;;  %937 = vmatpush.msra.mxu1 %v2584_v29  ;;  %v2602_v29 = vld [vmem:[#allocation13 + $0x268] sm:$0xff]  ;;  %v2634_v17 = vld [vmem:[#allocation13 + $0x1d0] sm:$0xff] }
 0x505   :  { %878 = vmatpush.msra.mxu2 %v330_v54  ;;  %v322_v54 = vld [vmem:[#allocation13 + $0x40] sm:$0xff]  ;;  %3136 = vst [vmem:[#allocation42_spill] sm:$0xff] %v2602_v29 }
 0x506   :  { %3147 = vst [vmem:[#allocation53_spill] sm:$0xff] %v2634_v17 }
 0x507   :  { %3163 = vst [vmem:[#allocation69_spill] sm:$0xff] %v2681_v2 }
 0x577   :  { %v824_v28 = vpop.f32.mrf.mxu1 }
 0x578   :  { %v825_v9 = vadd.f32 %v1740_v25, %v824_v28  ;;  %v2590_v25 = vld [vmem:[#allocation13 + $0x68] sm:$0xff] }
 0x579   :  { %3132 = vst [vmem:[#allocation38_spill] sm:$0xff] %v2590_v25  ;;  %v2593_v28 = vld [vmem:[#allocation13 + $0x288] sm:$0xff]  ;;  %919 = vmatpush.msra.mxu0 %v2590_v25 }
 0x57a   :  { %v2574_v63 = vadd.f32 %v825_v9, %v2446_v8  ;;  %v326_v9 = vld [vmem:[#allocation13 + $0x60] sm:$0xff]  ;;  %3133 = vst [vmem:[#allocation39_spill] sm:$0xff] %v2593_v28  ;;  %938 = vmatpush.msra.mxu1 %v2593_v28  ;;  %v2608_v25 = vld [vmem:[#allocation13 + $0x28] sm:$0xff] }
 0x57b   :  { %v2588_v8 = vld [vmem:[#allocation13 + $0x280] sm:$0xff]  ;;  %879 = vmatpush.msra.mxu2 %v326_v9  ;;  %920 = vmatpush.msra.mxu0 %v2599_v22  ;;  %3138 = vst [vmem:[#allocation44_spill] sm:$0xff] %v2608_v25  ;;  %v2611_v28 = vld [vmem:[#allocation13 + $0x248] sm:$0xff] }
 0x57c   :  { %828 = vadd.xlane.f32.xlu2 %v2574_v63  ;;  %v831_v56 = vmul.f32 %v2574_v63, %v2574_v63  ;;  %3131 = vst [vmem:[#allocation37_spill] sm:$0xff] %v2588_v8  ;;  %898 = vmatpush.msra.mxu3 %v2588_v8  ;;  %v318_v9 = vld [vmem:[#allocation13 + $0x20] sm:$0xff]  ;;  %v2619_v22 = vld [vmem:[#allocation13 + $0x8] sm:$0xff]  ;;  %v441_v8 = vld [vmem:[#allocation13 + $0x3f8] sm:$0xff] }
 0x57d   :  { %880 = vmatpush.msra.mxu2 %v322_v54  ;;  %939 = vmatpush.msra.mxu1 %v2602_v29  ;;  %3139 = vst [vmem:[#allocation45_spill] sm:$0xff] %v2611_v28  ;;  %v2615_v54 = vld [vmem:[#allocation13] sm:$0xff]  ;;  %v2623_v29 = vld [vmem:[#allocation13 + $0x228] sm:$0xff] }
 0x57e   :  { %832 = vadd.xlane.f32.xlu0 %v831_v56  ;;  %v2597_v56 = vld [vmem:[#allocation13 + $0x260] sm:$0xff]  ;;  %921 = vmatpush.msra.mxu0 %v2608_v25  ;;  %3140 = vst [vmem:[#allocation46_spill] sm:$0xff] %v2615_v54  ;;  %v2631_v25 = vld [vmem:[#allocation13 + $0x208] sm:$0xff] }
 0x57f   :  { %3134 = vst [vmem:[#allocation40_spill] sm:$0xff] %v2597_v56  ;;  %899 = vmatpush.msra.mxu3 %v2597_v56  ;;  %881 = vmatpush.msra.mxu2 %v318_v9  ;;  %v2617_v56 = vld [vmem:[#allocation13 + $0x220] sm:$0xff]  ;;  %v2625_v9 = vld [vmem:[#allocation13 + $0x1f0] sm:$0xff] }
 0x580   :  { %940 = vmatpush.msra.mxu1 %v2611_v28  ;;  %3141 = vst [vmem:[#allocation47_spill] sm:$0xff] %v2617_v56  ;;  %922 = vmatpush.msra.mxu0 %v2619_v22  ;;  %v2629_v28 = vld [vmem:[#allocation13 + $0x200] sm:$0xff] }
 0x581   :  { %900 = vmatpush.msra.mxu3 %v2606_v19  ;;  %3142 = vst [vmem:[#allocation48_spill] sm:$0xff] %v2619_v22  ;;  %882 = vmatpush.msra.mxu2 %v2615_v54  ;;  %v377_v19 = vld [vmem:[#allocation13 + $0x1f8] sm:$0xff]  ;;  %v440_v54 = vld [vmem:[#allocation13 + $0x3f0] sm:$0xff] }
 0x582   :  { %3143 = vst [vmem:[#allocation49_spill] sm:$0xff] %v2623_v29  ;;  %941 = vmatpush.msra.mxu1 %v2623_v29  ;;  %987 = vmatpush.msrb.mxu0 %v377_v19  ;;  %v2639_v29 = vld [vmem:[#allocation13 + $0x1b0] sm:$0xff]  ;;  %v437_v19 = vld [vmem:[#allocation13 + $0x3d8] sm:$0xff] }
 0x583   :  { %901 = vmatpush.msra.mxu3 %v2617_v56  ;;  %3144 = vst [vmem:[#allocation50_spill] sm:$0xff] %v2625_v9  ;;  %947 = vmatpush.msrb.mxu2 %v2625_v9  ;;  %v373_v56 = vld [vmem:[#allocation13 + $0x1d8] sm:$0xff]  ;;  %v2641_v22 = vld [vmem:[#allocation13 + $0x3d0] sm:$0xff] }
 0x584   :  { %3145 = vst [vmem:[#allocation51_spill] sm:$0xff] %v2629_v28  ;;  %942 = vmatpush.msra.mxu1 %v2631_v25  ;;  %988 = vmatpush.msrb.mxu0 %v373_v56  ;;  %v2645_v9 = vld [vmem:[#allocation13 + $0x190] sm:$0xff]  ;;  %v361_v56 = vld [vmem:[#allocation13 + $0x178] sm:$0xff] }
 0x585   :  { %3146 = vst [vmem:[#allocation52_spill] sm:$0xff] %v2631_v25  ;;  %902 = vmatpush.msra.mxu3 %v2629_v28  ;;  %948 = vmatpush.msrb.mxu2 %v2634_v17  ;;  %v2647_v28 = vld [vmem:[#allocation13 + $0x3b0] sm:$0xff]  ;;  %v365_v25 = vld [vmem:[#allocation13 + $0x198] sm:$0xff] }
 0x586   :  { %3148 = vst [vmem:[#allocation54_spill] sm:$0xff] %v2639_v29  ;;  %1007 = vmatpush.msrb.mxu1 %v441_v8  ;;  %989 = vmatpush.msrb.mxu0 %v369_v5  ;;  %v2651_v17 = vld [vmem:[#allocation13 + $0x170] sm:$0xff] }
 0x587   :  { %967 = vmatpush.msrb.mxu3 %v440_v54  ;;  %3149 = vst [vmem:[#allocation55_spill] sm:$0xff] %v2641_v22  ;;  %949 = vmatpush.msrb.mxu2 %v2639_v29  ;;  %v433_v54 = vld [vmem:[#allocation13 + $0x3b8] sm:$0xff]  ;;  %v2653_v8 = vld [vmem:[#allocation13 + $0x390] sm:$0xff] }
 0x588   :  { %3150 = vst [vmem:[#allocation56_spill] sm:$0xff] %v2645_v9  ;;  %1008 = vmatpush.msrb.mxu1 %v437_v19  ;;  %990 = vmatpush.msrb.mxu0 %v365_v25  ;;  %v2657_v29 = vld [vmem:[#allocation13 + $0x150] sm:$0xff]  ;;  %v357_v19 = vld [vmem:[#allocation13 + $0x158] sm:$0xff] }
 0x589   :  { %968 = vmatpush.msrb.mxu3 %v2641_v22  ;;  %3151 = vst [vmem:[#allocation57_spill] sm:$0xff] %v2647_v28  ;;  %950 = vmatpush.msrb.mxu2 %v2645_v9  ;;  %v429_v22 = vld [vmem:[#allocation13 + $0x398] sm:$0xff]  ;;  %v2659_v5 = vld [vmem:[#allocation13 + $0x370] sm:$0xff] }
 0x58a   :  { %3152 = vst [vmem:[#allocation58_spill] sm:$0xff] %v2651_v17  ;;  %1009 = vmatpush.msrb.mxu1 %v433_v54  ;;  %991 = vmatpush.msrb.mxu0 %v361_v56  ;;  %v2663_v9 = vld [vmem:[#allocation13 + $0x130] sm:$0xff]  ;;  %v353_v54 = vld [vmem:[#allocation13 + $0x138] sm:$0xff] }
 0x58b   :  { %969 = vmatpush.msrb.mxu3 %v2647_v28  ;;  %3153 = vst [vmem:[#allocation59_spill] sm:$0xff] %v2653_v8  ;;  %951 = vmatpush.msrb.mxu2 %v2651_v17  ;;  %v425_v28 = vld [vmem:[#allocation13 + $0x378] sm:$0xff]  ;;  %v2665_v25 = vld [vmem:[#allocation13 + $0x350] sm:$0xff] }
 0x58c   :  { %3154 = vst [vmem:[#allocation60_spill] sm:$0xff] %v2657_v29  ;;  %1010 = vmatpush.msrb.mxu1 %v429_v22  ;;  %992 = vmatpush.msrb.mxu0 %v357_v19  ;;  %v2669_v17 = vld [vmem:[#allocation13 + $0x110] sm:$0xff]  ;;  %v349_v56 = vld [vmem:[#allocation13 + $0x118] sm:$0xff] }
 0x58d   :  { %970 = vmatpush.msrb.mxu3 %v2653_v8  ;;  %3155 = vst [vmem:[#allocation61_spill] sm:$0xff] %v2659_v5  ;;  %952 = vmatpush.msrb.mxu2 %v2657_v29  ;;  %v421_v8 = vld [vmem:[#allocation13 + $0x358] sm:$0xff]  ;;  %v2671_v22 = vld [vmem:[#allocation13 + $0x330] sm:$0xff] }
 0x58e   :  { %3156 = vst [vmem:[#allocation62_spill] sm:$0xff] %v2663_v9  ;;  %1011 = vmatpush.msrb.mxu1 %v425_v28  ;;  %993 = vmatpush.msrb.mxu0 %v353_v54  ;;  %v2675_v29 = vld [vmem:[#allocation13 + $0xf0] sm:$0xff]  ;;  %v345_v19 = vld [vmem:[#allocation13 + $0xf8] sm:$0xff] }
 0x58f   :  { %971 = vmatpush.msrb.mxu3 %v2659_v5  ;;  %3157 = vst [vmem:[#allocation63_spill] sm:$0xff] %v2665_v25  ;;  %953 = vmatpush.msrb.mxu2 %v2663_v9  ;;  %v417_v5 = vld [vmem:[#allocation13 + $0x338] sm:$0xff]  ;;  %v2677_v28 = vld [vmem:[#allocation13 + $0x310] sm:$0xff] }
 0x590   :  { %3158 = vst [vmem:[#allocation64_spill] sm:$0xff] %v2669_v17  ;;  %1012 = vmatpush.msrb.mxu1 %v421_v8  ;;  %994 = vmatpush.msrb.mxu0 %v349_v56  ;;  %v2679_v9 = vld [vmem:[#allocation13 + $0xd0] sm:$0xff]  ;;  %v2685_v8 = vld [vmem:[#allocation13 + $0xd8] sm:$0xff] }
 0x591   :  { %972 = vmatpush.msrb.mxu3 %v2665_v25  ;;  %3159 = vst [vmem:[#allocation65_spill] sm:$0xff] %v2671_v22  ;;  %954 = vmatpush.msrb.mxu2 %v2669_v17  ;;  %v413_v25 = vld [vmem:[#allocation13 + $0x318] sm:$0xff]  ;;  %v2689_v17 = vld [vmem:[#allocation13 + $0x2d0] sm:$0xff] }
 0x592   :  { %3160 = vst [vmem:[#allocation66_spill] sm:$0xff] %v2675_v29  ;;  %1013 = vmatpush.msrb.mxu1 %v417_v5  ;;  %v409_v54 = vld [vmem:[#allocation13 + $0x2f8] sm:$0xff]  ;;  %995 = vmatpush.msrb.mxu0 %v345_v19 }
 0x593   :  { %973 = vmatpush.msrb.mxu3 %v2671_v22  ;;  %3161 = vst [vmem:[#allocation67_spill] sm:$0xff] %v2677_v28  ;;  %955 = vmatpush.msrb.mxu2 %v2675_v29  ;;  %v2687_v22 = vld [vmem:[#allocation13 + $0xb0] sm:$0xff]  ;;  %v2693_v5 = vld [vmem:[#allocation13 + $0xb8] sm:$0xff] }
 0x594   :  { %3162 = vst [vmem:[#allocation68_spill] sm:$0xff] %v2679_v9  ;;  %1014 = vmatpush.msrb.mxu1 %v413_v25  ;;  %v405_v56 = vld [vmem:[#allocation13 + $0x2d8] sm:$0xff]  ;;  %996 = vmatpush.msrb.mxu0 %v2685_v8  ;;  %v2698_v29 = vld [vmem:[#allocation13 + $0x2b0] sm:$0xff] }
 0x595   :  { %974 = vmatpush.msrb.mxu3 %v2677_v28  ;;  %3164 = vst [vmem:[#allocation70_spill] sm:$0xff] %v2685_v8  ;;  %956 = vmatpush.msrb.mxu2 %v2679_v9  ;;  %v2696_v28 = vld [vmem:[#allocation13 + $0x90] sm:$0xff]  ;;  %v2702_v25 = vld [vmem:[#allocation13 + $0x98] sm:$0xff] }
 0x596   :  { %3165 = vst [vmem:[#allocation71_spill] sm:$0xff] %v2687_v22  ;;  %1015 = vmatpush.msrb.mxu1 %v409_v54  ;;  %v401_v9 = vld [vmem:[#allocation13 + $0x2b8] sm:$0xff]  ;;  %997 = vmatpush.msrb.mxu0 %v2693_v5  ;;  %v2709_v54 = vld [vmem:[#allocation13 + $0x290] sm:$0xff] }
 0x597   :  { %3166 = vst [vmem:[#allocation72_spill] sm:$0xff] %v2689_v17  ;;  %975 = vmatpush.msrb.mxu3 %v2681_v2  ;;  %957 = vmatpush.msrb.mxu2 %v2687_v22  ;;  %v2707_v2 = vld [vmem:[#allocation13 + $0x70] sm:$0xff]  ;;  %v2713_v22 = vld [vmem:[#allocation13 + $0x78] sm:$0xff] }
 0x598   :  { %3167 = vst [vmem:[#allocation73_spill] sm:$0xff] %v2693_v5  ;;  %1016 = vmatpush.msrb.mxu1 %v405_v56  ;;  %998 = vmatpush.msrb.mxu0 %v2702_v25  ;;  %v2720_v56 = vld [vmem:[#allocation13 + $0x50] sm:$0xff] }
 0x599   :  { %3168 = vst [vmem:[#allocation74_spill] sm:$0xff] %v2696_v28  ;;  %976 = vmatpush.msrb.mxu3 %v2689_v17  ;;  %958 = vmatpush.msrb.mxu2 %v2696_v28  ;;  %v397_v17 = vld [vmem:[#allocation13 + $0x298] sm:$0xff]  ;;  %v2722_v5 = vld [vmem:[#allocation13 + $0x270] sm:$0xff] }
 0x59a   :  { %3169 = vst [vmem:[#allocation75_spill] sm:$0xff] %v2698_v29  ;;  %1017 = vmatpush.msrb.mxu1 %v401_v9  ;;  %999 = vmatpush.msrb.mxu0 %v2713_v22  ;;  %v2734_v9 = vld [vmem:[#allocation13 + $0x30] sm:$0xff] }
 0x59b   :  { %3170 = vst [vmem:[#allocation76_spill] sm:$0xff] %v2702_v25  ;;  %977 = vmatpush.msrb.mxu3 %v2698_v29  ;;  %959 = vmatpush.msrb.mxu2 %v2707_v2  ;;  %v2725_v29 = vld [vmem:[#allocation13 + $0x58] sm:$0xff]  ;;  %v2736_v25 = vld [vmem:[#allocation13 + $0x250] sm:$0xff] }
 0x59c   :  { %3171 = vst [vmem:[#allocation77_spill] sm:$0xff] %v2707_v2  ;;  %1018 = vmatpush.msrb.mxu1 %v397_v17  ;;  %v2740_v17 = vld [vmem:[#allocation13 + $0x38] sm:$0xff]  ;;  %1000 = vmatpush.msrb.mxu0 %v2725_v29 }
 0x59d   :  { %3172 = vst [vmem:[#allocation78_spill] sm:$0xff] %v2709_v54  ;;  %978 = vmatpush.msrb.mxu3 %v2709_v54  ;;  %960 = vmatpush.msrb.mxu2 %v2720_v56  ;;  %v2745_v54 = vld [vmem:[#allocation13 + $0x230] sm:$0xff] }
 0x59e   :  { %3173 = vst [vmem:[#allocation79_spill] sm:$0xff] %v2713_v22  ;;  %1019 = vmatpush.msrb.mxu1 %v393_v32  ;;  %v2743_v22 = vld [vmem:[#allocation13 + $0x10] sm:$0xff]  ;;  %1001 = vmatpush.msrb.mxu0 %v2740_v17  ;;  %v381_v32 = vld [vmem:[#allocation13 + $0x218] sm:$0xff] }
 0x59f   :  { %3174 = vst [vmem:[#allocation80_spill] sm:$0xff] %v2720_v56  ;;  %979 = vmatpush.msrb.mxu3 %v2722_v5  ;;  %961 = vmatpush.msrb.mxu2 %v2734_v9  ;;  %v385_v56 = vld [vmem:[#allocation13 + $0x238] sm:$0xff] }
 0x5a0   :  { %3175 = vst [vmem:[#allocation81_spill] sm:$0xff] %v2722_v5  ;;  %v2752_v5 = vld [vmem:[#allocation13 + $0x210] sm:$0xff] }
 0x5a1   :  { %3176 = vst [vmem:[#allocation82_spill] sm:$0xff] %v2725_v29  ;;  %980 = vmatpush.msrb.mxu3 %v2736_v25  ;;  %962 = vmatpush.msrb.mxu2 %v2743_v22 }
 0x5a2   :  { %3177 = vst [vmem:[#allocation83_spill] sm:$0xff] %v2734_v9  ;;  %v1797_v9 = vld [vmem:[#allocation2 + $0x70] sm:$0xff] }
 0x5a3   :  { %3178 = vst [vmem:[#allocation84_spill] sm:$0xff] %v2736_v25  ;;  %981 = vmatpush.msrb.mxu3 %v2745_v54  ;;  %v1795_v25 = vld [vmem:[#allocation2 + $0x78] sm:$0xff] }
 0x5a4   :  { %3179 = vst [vmem:[#allocation85_spill] sm:$0xff] %v2740_v17  ;;  %v1794_v17 = vld [vmem:[#allocation7 + $0xf0] sm:$0xff] }
 0x5a5   :  { %3180 = vst [vmem:[#allocation86_spill] sm:$0xff] %v2743_v22  ;;  %982 = vmatpush.msrb.mxu3 %v2752_v5  ;;  %v1796_v22 = vld [vmem:[#allocation7 + $0xe0] sm:$0xff] }
 0x5a6   :  { %3181 = vst [vmem:[#allocation87_spill] sm:$0xff] %v2745_v54 }
 0x5a7   :  { %3183 = vst [vmem:[#allocation89_spill] sm:$0xff] %v2752_v5  ;;  %v1799_v5 = vld [vmem:[#allocation2 + $0x68] sm:$0xff] }
 0x5ef   :  { %v829_v19 = vpop.xlane.xlu2 %828 }
 0x5f0   :  { %v2704_v23 = vmul.f32 0.03125, %v829_v19 }
 0x5f1   :  { %v833_v8 = vpop.xlane.xlu0 %832 }
 0x5f2   :  { %v836_v60 = vmul.f32 %v2704_v23, %v2704_v23  ;;  %v834_v19 = vmul.f32 0.03125, %v833_v8  ;;  %v2730_v8 = vld [vmem:[%s3108_s8] sm:$0xff] }
 0x5f3   :  { %903 = vmatmul.f32.vlgmr.msra.gmra.mxu3 %v2730_v8  ;;  %943 = vmatmul.f32.vlgmr.msra.gmra.mxu1 %v2730_v8 }
 0x5f4   :  { %v837_v28 = vsub.f32 %v834_v19, %v836_v60  ;;  %v389_v19 = vld [vmem:[#allocation13 + $0x258] sm:$0xff]  ;;  %1154 = vmatpush.msra.mxu3 %v1794_v17  ;;  %v1802_v17 = vld [vmem:[#allocation7 + $0xb0] sm:$0xff] }
 0x5f5   :  { %1020 = vmatpush.msrb.mxu1 %v389_v19 }
 0x5f6   :  { %v838_v60 = vadd.f32 1e-12, %v837_v28  ;;  %v2749_v28 = vld [vmem:[#allocation13 + $0x18] sm:$0xff]  ;;  %1155 = vmatpush.msra.mxu3 %v1796_v22  ;;  %v835_v22 = vsub.f32 %v2574_v63, %v2704_v23  ;;  %v1808_v23 = vld [vmem:[#allocation7 + $0x80] sm:$0xff] }
 0x5f7   :  { %3182 = vst [vmem:[#allocation88_spill] sm:$0xff] %v2749_v28  ;;  %1002 = vmatpush.msrb.mxu0 %v2749_v28  ;;  %1021 = vmatpush.msrb.mxu1 %v385_v56  ;;  %v1798_v28 = vld [vmem:[#allocation7 + $0xd0] sm:$0xff] }
 0x5f8   :  { %1755 = vrsqrt.f32 %v838_v60  ;;  %1156 = vmatpush.msra.mxu3 %v1798_v28  ;;  %vm845_vm10 = vweird.f32 %v838_v60  ;;  %v1805_v28 = vld [vmem:[#allocation2 + $0x50] sm:$0xff] }
 0x5f9   :  { %1022 = vmatpush.msrb.mxu1 %v381_v32  ;;  %v1800_v32 = vld [vmem:[#allocation7 + $0xc0] sm:$0xff] }
 0x5fa   :  { %1157 = vmatpush.msra.mxu3 %v1800_v32 }
 0x5fb   :  { %983 = vmatmul.f32.vlgmr.msrb.gmra.mxu3 %v2730_v8  ;;  %1023 = vmatmul.f32.vlgmr.msrb.gmra.mxu1 %v2730_v8 }
 0x5fc   :  { %1206 = vmatpush.msra.mxu1 %v1795_v25  ;;  %1158 = vmatpush.msra.mxu3 %v1802_v17  ;;  %v1803_v25 = vld [vmem:[#allocation2 + $0x58] sm:$0xff] }
 0x5fd   :  { %v1812_v17 = vld [vmem:[#allocation7 + $0xf8] sm:$0xff] }
 0x5fe   :  { %v1756_v29 = vpop.eup %1755  ;;  %1207 = vmatpush.msra.mxu1 %v1797_v9 }
 0x5ff   :  { %v840_v19 = vmul.f32 %v1756_v29, %v838_v60  ;;  %vm846_vm9 = vweird.f32 %v1756_v29  ;;  %v1806_v60 = vld [vmem:[#allocation7 + $0x90] sm:$0xff] }
 0x600   :  { %1208 = vmatpush.msra.mxu1 %v1799_v5  ;;  %vm847_vm11 = vmor %vm845_vm10, %vm846_vm9  ;;  %v1741_v5 = vld [vmem:[%s3012_s18] ss:$0 sm:$0xff] }
 0x601   :  { %v841_v54 = vmul.f32 %v1756_v29, %v840_v19  ;;  %v1807_v19 = vld [vmem:[#allocation2 + $0x48] sm:$0xff] }
 0x602   :  { %1209 = vmatpush.msra.mxu1 %v1801_v48 }
 0x603   :  { %v842_v56 = vmul.f32 0.5, %v841_v54  ;;  %v1804_v54 = vld [vmem:[#allocation7 + $0xa0] sm:$0xff] }
 0x604   :  { %1210 = vmatpush.msra.mxu1 %v1803_v25  ;;  %1159 = vmatpush.msra.mxu3 %v1804_v54  ;;  %v1813_v25 = vld [vmem:[#allocation7 + $0x60] sm:$0xff]  ;;  %v1815_v54 = vld [vmem:[#allocation7 + $0xe8] sm:$0xff] }
 0x605   :  { %v843_v2 = vsub.f32 1.5, %v842_v56  ;;  %v1809_v56 = vld [vmem:[#allocation2 + $0x40] sm:$0xff] }
 0x606   :  { %1211 = vmatpush.msra.mxu1 %v1805_v28  ;;  %1160 = vmatpush.msra.mxu3 %v1806_v60  ;;  %v1818_v28 = vld [vmem:[#allocation7 + $0xd8] sm:$0xff]  ;;  %v1820_v60 = vld [vmem:[#allocation2 + $0x20] sm:$0xff] }
 0x607   :  { %v844_v7 = vmul.f32 %v1756_v29, %v843_v2  ;;  %v2768_v2 = vld [vmem:[%s3013_s19] ss:$0 sm:$0xff] }
 0x608   :  { %1212 = vmatpush.msra.mxu1 %v1807_v19  ;;  %1161 = vmatpush.msra.mxu3 %v1808_v23  ;;  %v1821_v19 = vld [vmem:[#allocation7 + $0xc8] sm:$0xff]  ;;  %v1823_v23 = vld [vmem:[#allocation7 + $0xb8] sm:$0xff] }
 0x609   :  { %v848_v9 = vsel %vm847_vm11, %v1756_v29, %v844_v7  ;;  %v1810_v29 = vld [vmem:[#allocation7 + $0x70] sm:$0xff]  ;;  %v1811_v7 = vld [vmem:[#allocation2 + $0x38] sm:$0xff] }
 0x60a   :  { %v849_v48 = vmul.f32 %v848_v9, %v835_v22  ;;  %1213 = vmatpush.msra.mxu1 %v1809_v56  ;;  %1162 = vmatpush.msra.mxu3 %v1810_v29  ;;  %v1814_v22 = vld [vmem:[#allocation2 + $0x30] sm:$0xff]  ;;  %v1817_v9 = vld [vmem:[#allocation2 + $0x28] sm:$0xff]  ;;  %v1824_v56 = vld [vmem:[#allocation7 + $0x20] sm:$0xff] }
 0x60b   :  { %v1825_v29 = vld [vmem:[#allocation2 + $0x18] sm:$0xff] }
 0x60c   :  { %v853_v63 = vmul.f32 %v1741_v5, %v849_v48  ;;  %1214 = vmatpush.msra.mxu1 %v1811_v7  ;;  %1163 = vmatpush.msra.mxu3 %v1813_v25  ;;  %v1816_v5 = vld [vmem:[#allocation7 + $0x50] sm:$0xff]  ;;  %v1819_v48 = vld [vmem:[#allocation7 + $0x40] sm:$0xff]  ;;  %v1826_v7 = vld [vmem:[#allocation7 + $0xa8] sm:$0xff] }
 0x60d   :  { %v1828_v25 = vld [vmem:[#allocation2 + $0x10] sm:$0xff] }
 0x60e   :  { %v857_v32 = vadd.f32 %v2768_v2, %v853_v63  ;;  %1215 = vmatpush.msra.mxu1 %v1814_v22  ;;  %1164 = vmatpush.msra.mxu3 %v1816_v5  ;;  %v1822_v63 = vld [vmem:[#allocation7 + $0x30] sm:$0xff]  ;;  %v1829_v22 = vld [vmem:[#allocation7 + $0x98] sm:$0xff]  ;;  %v1831_v5 = vld [vmem:[#allocation2 + $0x8] sm:$0xff] }
 0x610   :  { %883 = vmatmul.f32.vlgmr.msra.gmra.mxu2 %v857_v32  ;;  %923 = vmatmul.f32.vlgmr.msra.gmra.mxu0 %v857_v32 }
 0x611   :  { %1177 = vmatpush.msra.mxu0 %v1812_v17  ;;  %1216 = vmatpush.msra.mxu1 %v1817_v9  ;;  %v1827_v17 = vld [vmem:[#allocation7 + $0x10] sm:$0xff]  ;;  %v1832_v9 = vld [vmem:[#allocation8 + $0x78] sm:$0xff] }
 0x612   :  { %1165 = vmatpush.msra.mxu3 %v1819_v48  ;;  %v1835_v48 = vld [vmem:[#allocation8 + $0x70] sm:$0xff] }
 0x613   :  { %1178 = vmatpush.msra.mxu0 %v1815_v54  ;;  %1217 = vmatpush.msra.mxu1 %v1820_v60  ;;  %v1830_v54 = vld [vmem:[#allocation7] sm:$0xff]  ;;  %v1836_v60 = vld [vmem:[#allocation7 + $0x78] sm:$0xff] }
 0x614   :  { %1166 = vmatpush.msra.mxu3 %v1822_v63  ;;  %v1838_v63 = vld [vmem:[#allocation7 + $0x68] sm:$0xff] }
 0x615   :  { %1179 = vmatpush.msra.mxu0 %v1818_v28  ;;  %1218 = vmatpush.msra.mxu1 %v1825_v29  ;;  %v1834_v28 = vld [vmem:[#allocation2] sm:$0xff]  ;;  %v1841_v29 = vld [vmem:[#allocation8 + $0x58] sm:$0xff] }
 0x616   :  { %1167 = vmatpush.msra.mxu3 %v1824_v56  ;;  %v1840_v56 = vld [vmem:[#allocation7 + $0x58] sm:$0xff] }
 0x617   :  { %1180 = vmatpush.msra.mxu0 %v1821_v19  ;;  %1219 = vmatpush.msra.mxu1 %v1828_v25  ;;  %v1837_v19 = vld [vmem:[#allocation8 + $0x68] sm:$0xff] }
 0x618   :  { %963 = vmatmul.f32.vlgmr.msrb.gmra.mxu2 %v857_v32  ;;  %1003 = vmatmul.f32.vlgmr.msrb.gmra.mxu0 %v857_v32  ;;  %v1833_v32 = vld [vmem:[#allocation7 + $0x88] sm:$0xff] }
 0x619   :  { %1181 = vmatpush.msra.mxu0 %v1823_v23  ;;  %1168 = vmatpush.msra.mxu3 %v1827_v17  ;;  %v1839_v23 = vld [vmem:[#allocation8 + $0x60] sm:$0xff]  ;;  %v1843_v17 = vld [vmem:[#allocation8 + $0x50] sm:$0xff]  ;;  %v1845_v25 = vld [vmem:[#allocation8 + $0x48] sm:$0xff] }
 0x61a   :  { %1220 = vmatpush.msra.mxu1 %v1831_v5  ;;  %v1851_v5 = vld [vmem:[#allocation8 + $0x30] sm:$0xff] }
 0x61b   :  { %1182 = vmatpush.msra.mxu0 %v1826_v7  ;;  %1169 = vmatpush.msra.mxu3 %v1830_v54  ;;  %v1842_v7 = vld [vmem:[#allocation7 + $0x48] sm:$0xff]  ;;  %v1849_v54 = vld [vmem:[#allocation8 + $0x38] sm:$0xff] }
 0x61c   :  { %1221 = vmatpush.msra.mxu1 %v1834_v28 }
 0x61d   :  { %1183 = vmatpush.msra.mxu0 %v1829_v22  ;;  %1293 = vmatpush.msrb.mxu3 %v1832_v9  ;;  %v1847_v22 = vld [vmem:[#allocation8 + $0x40] sm:$0xff] }
 0x61e   :  { %1402 = vmatpush.msrb.mxu1 %v2449_v4  ;;  %v1844_v4 = vld [vmem:[#allocation7 + $0x38] sm:$0xff] }
 0x61f   :  { %1184 = vmatpush.msra.mxu0 %v1833_v32  ;;  %1294 = vmatpush.msrb.mxu3 %v1835_v48 }
 0x620   :  { %1403 = vmatpush.msrb.mxu1 %v2452_v6  ;;  %v1846_v6 = vld [vmem:[#allocation7 + $0x28] sm:$0xff] }
 0x621   :  { %1185 = vmatpush.msra.mxu0 %v1836_v60  ;;  %1295 = vmatpush.msrb.mxu3 %v1837_v19 }
 0x622   :  { %1404 = vmatpush.msrb.mxu1 %v2455_v10  ;;  %v1848_v10 = vld [vmem:[#allocation7 + $0x18] sm:$0xff] }
 0x623   :  { %1186 = vmatpush.msra.mxu0 %v1838_v63  ;;  %1296 = vmatpush.msrb.mxu3 %v1839_v23 }
 0x624   :  { %1405 = vmatpush.msrb.mxu1 %v2461_v12  ;;  %v1850_v12 = vld [vmem:[#allocation7 + $0x8] sm:$0xff] }
 0x625   :  { %1187 = vmatpush.msra.mxu0 %v1840_v56  ;;  %1297 = vmatpush.msrb.mxu3 %v1841_v29 }
 0x626   :  { %1406 = vmatpush.msrb.mxu1 %v2464_v13  ;;  %v1852_v13 = vld [vmem:[#allocation8 + $0x28] sm:$0xff] }
 0x627   :  { %1188 = vmatpush.msra.mxu0 %v1842_v7  ;;  %1298 = vmatpush.msrb.mxu3 %v1843_v17 }
 0x628   :  { %1407 = vmatpush.msrb.mxu1 %v2469_v16  ;;  %v1853_v16 = vld [vmem:[#allocation8 + $0x20] sm:$0xff] }
 0x629   :  { %1189 = vmatpush.msra.mxu0 %v1844_v4  ;;  %1299 = vmatpush.msrb.mxu3 %v1845_v25 }
 0x62a   :  { %1408 = vmatpush.msrb.mxu1 %v2473_v18  ;;  %v1854_v18 = vld [vmem:[#allocation8 + $0x18] sm:$0xff] }
 0x62b   :  { %1190 = vmatpush.msra.mxu0 %v1846_v6  ;;  %1300 = vmatpush.msrb.mxu3 %v1847_v22 }
 0x62c   :  { %1409 = vmatpush.msrb.mxu1 %v2476_v21 }
 0x62d   :  { %1191 = vmatpush.msra.mxu0 %v1848_v10  ;;  %1301 = vmatpush.msrb.mxu3 %v1849_v54 }
 0x62e   :  { %1410 = vmatpush.msrb.mxu1 %v2479_v24 }
 0x62f   :  { %1192 = vmatpush.msra.mxu0 %v1850_v12  ;;  %1302 = vmatpush.msrb.mxu3 %v1851_v5 }
 0x630   :  { %1411 = vmatpush.msrb.mxu1 %v2482_v27 }
 0x631   :  { %1338 = vmatpush.msrb.mxu0 %v2392_v33  ;;  %1303 = vmatpush.msrb.mxu3 %v1852_v13  ;;  %v1855_v33 = vld [vmem:[#allocation8 + $0x10] sm:$0xff] }
 0x632   :  { %1412 = vmatpush.msrb.mxu1 %v2485_v31 }
 0x633   :  { %1339 = vmatpush.msrb.mxu0 %v2395_v34  ;;  %1304 = vmatpush.msrb.mxu3 %v1853_v16  ;;  %v1856_v34 = vld [vmem:[#allocation8 + $0x8] sm:$0xff] }
 0x634   :  { %1413 = vmatpush.msrb.mxu1 %v2488_v49 }
 0x635   :  { %1340 = vmatpush.msrb.mxu0 %v2398_v35  ;;  %1305 = vmatpush.msrb.mxu3 %v1854_v18  ;;  %v1857_v35 = vld [vmem:[#allocation8] sm:$0xff] }
 0x636   :  { %1414 = vmatpush.msrb.mxu1 %v2491_v50 }
 0x637   :  { %1341 = vmatpush.msrb.mxu0 %v2401_v36  ;;  %1306 = vmatpush.msrb.mxu3 %v1855_v33  ;;  %v2806_v36 = vld [vmem:[%s3015_s21] sm:$0xf] }
 0x638   :  { %1415 = vmatpush.msrb.mxu1 %v2493_v52  ;;  %v861_v48 = vperm.slane %v2806_v36, 2 }
 0x639   :  { %1342 = vmatpush.msrb.mxu0 %v2404_v0  ;;  %1307 = vmatpush.msrb.mxu3 %v1856_v34  ;;  %v860_v0 = vperm.slane %v2806_v36, 1 }
 0x63a   :  { %1416 = vmatpush.msrb.mxu1 %v2496_v55  ;;  %v862_v55 = vperm.slane %v2806_v36, 3 }
 0x63b   :  { %1343 = vmatpush.msrb.mxu0 %v2407_v37  ;;  %1308 = vmatpush.msrb.mxu3 %v1857_v35 }
 0x63c   :  { %1417 = vmatpush.msrb.mxu1 %v2499_v57 }
 0x63d   :  { %1344 = vmatpush.msrb.mxu0 %v2410_v38 }
 0x63f   :  { %1345 = vmatpush.msrb.mxu0 %v2413_v39 }
 0x641   :  { %1346 = vmatpush.msrb.mxu0 %v2416_v40 }
 0x643   :  { %1347 = vmatpush.msrb.mxu0 %v2419_v41  ;;  %v859_v41 = vperm.slane %v2806_v36, 0 }
 0x645   :  { %1348 = vmatpush.msrb.mxu0 %v2422_v42 }
 0x647   :  { %1349 = vmatpush.msrb.mxu0 %v2425_v43 }
 0x649   :  { %1350 = vmatpush.msrb.mxu0 %v2427_v44 }
 0x64b   :  { %1351 = vmatpush.msrb.mxu0 %v2430_v45 }
 0x64d   :  { %1352 = vmatpush.msrb.mxu0 %v2433_v46 }
 0x64f   :  { %1353 = vmatpush.msrb.mxu0 %v2436_v47 }
 0x670   :  { %v944_v38 = vpop.f32.mrf.mxu1 }
 0x676   :  { %v904_v44 = vpop.f32.mrf.mxu3 }
 0x678   :  { %v1024_v7 = vpop.f32.mrf.mxu1 }
 0x67e   :  { %v984_v6 = vpop.f32.mrf.mxu3 }
 0x68d   :  { %v924_v37 = vpop.f32.mrf.mxu0 }
 0x68e   :  { %v925_v39 = vadd.f32 %v924_v37, %v860_v0 }
 0x690   :  { %v945_v40 = vadd.f32 %v944_v38, %v925_v39 }
 0x692   :  { %v1705_v42 = vmul.f32 -1.442695, %v945_v40 }
 0x693   :  { %v884_v43 = vpop.f32.mrf.mxu2 }
 0x694   :  { %1757 = vpow2.f32 %v1705_v42  ;;  %v885_v45 = vadd.f32 %v884_v43, %v859_v41 }
 0x695   :  { %v1004_v32 = vpop.f32.mrf.mxu0 }
 0x696   :  { %v905_v46 = vadd.f32 %v904_v44, %v885_v45  ;;  %v1005_v63 = vadd.f32 %v1004_v32, %v862_v55 }
 0x698   :  { %v1704_v47 = vmul.f32 -1.442695, %v905_v46  ;;  %v1025_v22 = vadd.f32 %v1024_v7, %v1005_v63  ;;  %v2835_v63 = vld [vmem:[%s3017_s23] ss:$0 sm:$0xff]  ;;  %v1859_v7 = vld [vmem:[#allocation5 + $0x78] sm:$0xff] }
 0x69a   :  { %v1758_v21 = vpop.eup %1757  ;;  %1759 = vpow2.f32 %v1704_v47 }
 0x69b   :  { %v1049_v24 = vadd.f32 1.0, %v1758_v21  ;;  %v964_v19 = vpop.f32.mrf.mxu2 }
 0x69c   :  { %v965_v4 = vadd.f32 %v964_v19, %v861_v48 }
 0x69d   :  { %1761 = vrcp.f32 %v1049_v24  ;;  %v1061_v5 = vand.u32 2147483648, %v1049_v24  ;;  %vm1055_vm3 = vweird.f32 %v1049_v24  ;;  %v1059_v18 = vand.u32 2147483647, %v1049_v24 }
 0x69e   :  { %v985_v16 = vadd.f32 %v984_v6, %v965_v4  ;;  %v1861_v4 = vld [vmem:[#allocation5 + $0x68] sm:$0xff] }
 0x69f   :  { %v1062_v35 = vor.u32 1.1754944e-38, %v1061_v5  ;;  %vm1060_vm5 = vcmp.eq.f32.partialorder %v1059_v18, 8.507059e+37  ;;  %v1863_v6 = vld [vmem:[%s3109_s10 + $0x8] sm:$0xff]  ;;  %v1868_v5 = vld [vmem:[%s3109_s10 + $0x10] sm:$0xff] }
 0x6a0   :  { %v1760_v27 = vpop.eup %1759  ;;  %v1871_v18 = vld [vmem:[#allocation5 + $0x28] sm:$0xff] }
 0x6a1   :  { %v1030_v31 = vadd.f32 1.0, %v1760_v27 }
 0x6a3   :  { %1763 = vrcp.f32 %v1030_v31  ;;  %v1762_v49 = vpop.eup %1761  ;;  %v1042_v60 = vand.u32 2147483648, %v1030_v31  ;;  %v1040_v56 = vand.u32 2147483647, %v1030_v31  ;;  %vm1036_vm13 = vweird.f32 %v1030_v31 }
 0x6a4   :  { %v1051_v50 = vmul.f32 %v1762_v49, %v1049_v24  ;;  %vm1056_vm2 = vweird.f32 %v1762_v49 }
 0x6a5   :  { %v1043_v25 = vor.u32 1.1754944e-38, %v1042_v60  ;;  %vm1041_vm15 = vcmp.eq.f32.partialorder %v1040_v56, 8.507059e+37  ;;  %vm1057_vm4 = vmor %vm1055_vm3, %vm1056_vm2 }
 0x6a6   :  { %v1052_v9 = vsub.f32 1.0, %v1051_v50 }
 0x6a8   :  { %v1053_v29 = vmul.f32 %v1762_v49, %v1052_v9 }
 0x6a9   :  { %v1764_v52 = vpop.eup %1763 }
 0x6aa   :  { %v1032_v57 = vmul.f32 %v1764_v52, %v1030_v31  ;;  %vm1037_vm12 = vweird.f32 %v1764_v52  ;;  %v1054_v12 = vadd.f32 %v1762_v49, %v1053_v29  ;;  %v1858_v29 = vld [vmem:[%s3109_s10] sm:$0xff] }
 0x6ab   :  { %vm1038_vm14 = vmor %vm1036_vm13, %vm1037_vm12 }
 0x6ac   :  { %v1033_v28 = vsub.f32 1.0, %v1032_v57  ;;  %v1058_v34 = vsel %vm1057_vm4, %v1762_v49, %v1054_v12  ;;  %v1867_v12 = vld [vmem:[#allocation5 + $0x40] sm:$0xff] }
 0x6ad   :  { %v1063_v37 = vsel %vm1060_vm5, %v1062_v35, %v1058_v34  ;;  %v1873_v34 = vld [vmem:[%s3109_s10 + $0x18] sm:$0xff] }
 0x6ae   :  { %v1034_v23 = vmul.f32 %v1764_v52, %v1033_v28  ;;  %v1068_v38 = vsub.f32 1.0, %v1063_v37  ;;  %v1070_v42 = vmul.f32 %v2730_v8, %v1063_v37  ;;  %v2830_v28 = vld [vmem:[%s3016_s22] ss:$0 sm:$0xff]  ;;  %v1874_v35 = vld [vmem:[#allocation5 + $0x18] sm:$0xff]  ;;  %v1875_v37 = vld [vmem:[#allocation5 + $0x10] sm:$0xff] }
 0x6b0   :  { %v1035_v17 = vadd.f32 %v1764_v52, %v1034_v23 }
 0x6b2   :  { %v1039_v10 = vsel %vm1038_vm14, %v1764_v52, %v1035_v17  ;;  %v1860_v17 = vld [vmem:[#allocation5 + $0x70] sm:$0xff] }
 0x6b3   :  { %v1044_v54 = vsel %vm1041_vm15, %v1043_v25, %v1039_v10  ;;  %v1862_v25 = vld [vmem:[#allocation5 + $0x60] sm:$0xff]  ;;  %v1865_v10 = vld [vmem:[#allocation5 + $0x50] sm:$0xff] }
 0x6b4   :  { %v1065_v13 = vmul.f32 %v1044_v54, %v1025_v22  ;;  %v1864_v22 = vld [vmem:[#allocation5 + $0x58] sm:$0xff]  ;;  %v1866_v54 = vld [vmem:[#allocation5 + $0x48] sm:$0xff] }
 0x6b6   :  { %v1066_v33 = vadd.f32 %v1065_v13, %v985_v16  ;;  %v1869_v13 = vld [vmem:[#allocation5 + $0x38] sm:$0xff]  ;;  %v1870_v16 = vld [vmem:[#allocation5 + $0x30] sm:$0xff] }
 0x6b8   :  { %1765 = vtanh.f32 %v1066_v33  ;;  %v1872_v33 = vld [vmem:[#allocation5 + $0x20] sm:$0xff] }
 0x6be   :  { %v1766_v39 = vpop.eup %1765 }
 0x6bf   :  { %v1069_v40 = vmul.f32 %v1766_v39, %v1068_v38  ;;  %v1876_v38 = vld [vmem:[#allocation5 + $0x8] sm:$0xff]  ;;  %v1877_v39 = vld [vmem:[#allocation5] sm:$0xff] }
 0x6c1   :  { %v2821_v43 = vadd.f32 %v1070_v42, %v1069_v40 }
 0x6c3   :  { %1072 = vadd.xlane.f32.xlu1 %v2821_v43  ;;  %v1075_v44 = vmul.f32 %v2821_v43, %v2821_v43 }
 0x6c5   :  { %1076 = vadd.xlane.f32.xlu2 %v1075_v44 }
 0x736   :  { %v1073_v45 = vpop.xlane.xlu1 %1072 }
 0x737   :  { %v1074_v46 = vmul.f32 0.03125, %v1073_v45  ;;  %v1878_v45 = vld [vmem:[#allocation13 + $0x1e8] sm:$0xff] }
 0x738   :  { %v1077_v47 = vpop.xlane.xlu2 %1076 }
 0x739   :  { %v1080_v21 = vmul.f32 %v1074_v46, %v1074_v46  ;;  %v1078_v24 = vmul.f32 0.03125, %v1077_v47  ;;  %v1079_v32 = vsub.f32 %v2821_v43, %v1074_v46  ;;  %v3198_v47 = vld [vmem:[#allocation44_spill] sm:$0xff] }
 0x73b   :  { %v1081_v27 = vsub.f32 %v1078_v24, %v1080_v21  ;;  %v3199_v21 = vld [vmem:[#allocation51_spill] sm:$0xff]  ;;  %v3200_v24 = vld [vmem:[#allocation48_spill] sm:$0xff] }
 0x73d   :  { %v1082_v31 = vadd.f32 1e-12, %v1081_v27 }
 0x73f   :  { %1767 = vrsqrt.f32 %v1082_v31  ;;  %vm1089_vm7 = vweird.f32 %v1082_v31 }
 0x745   :  { %v1768_v49 = vpop.eup %1767 }
 0x746   :  { %v1084_v50 = vmul.f32 %v1768_v49, %v1082_v31  ;;  %vm1090_vm6 = vweird.f32 %v1768_v49 }
 0x747   :  { %vm1091_vm8 = vmor %vm1089_vm7, %vm1090_vm6 }
 0x748   :  { %v1085_v52 = vmul.f32 %v1768_v49, %v1084_v50 }
 0x74a   :  { %v1086_v8 = vmul.f32 0.5, %v1085_v52  ;;  %v1879_v52 = vld [vmem:[%s3114_s26] ss:$0 sm:$0xff] }
 0x74c   :  { %v1087_v57 = vsub.f32 1.5, %v1086_v8 }
 0x74e   :  { %v1088_v9 = vmul.f32 %v1768_v49, %v1087_v57  ;;  %v3202_v57 = vld [vmem:[#allocation22_spill] sm:$0xff] }
 0x750   :  { %v1092_v60 = vsel %vm1091_vm8, %v1768_v49, %v1088_v9  ;;  %v3201_v49 = vld [vmem:[#allocation21_spill] sm:$0xff] }
 0x751   :  { %v1093_v19 = vmul.f32 %v1092_v60, %v1079_v32 }
 0x753   :  { %v1097_v23 = vmul.f32 %v2830_v28, %v1093_v19 }
 0x755   :  { %v2839_v56 = vadd.f32 %v2835_v63, %v1097_v23  ;;  %v1880_v23 = vld [vmem:[#allocation13 + $0x3e8] sm:$0xff] }
 0x757   :  { %1117 = vmatpush.msra.mxu2 %v2839_v56 }
 0x758   :  { %1706 = vmatmul.msk.f32.vlgmr.msra.gmra.mxu2 %vm467_vm0, %v1858_v29  ;;  %v3203_v29 = vld [vmem:[#allocation23_spill] sm:$0xff] }
 0x759   :  { %1131 = vmatpush.msrb.mxu2 %v1859_v7 }
 0x75b   :  { %1132 = vmatpush.msrb.mxu2 %v1860_v17  ;;  %v1881_v17 = vld [vmem:[#allocation13 + $0x3c8] sm:$0xff] }
 0x75d   :  { %1133 = vmatpush.msrb.mxu2 %v1861_v4 }
 0x75f   :  { %1134 = vmatpush.msrb.mxu2 %v1862_v25 }
 0x760   :  { %1707 = vmatmul.msk.f32.gmra.mxu2 %vm467_vm0, %v1863_v6  ;;  %v1882_v6 = vld [vmem:[#allocation13 + $0x3a8] sm:$0xff] }
 0x761   :  { %1135 = vmatpush.msrb.mxu2 %v1864_v22 }
 0x763   :  { %1136 = vmatpush.msrb.mxu2 %v1865_v10  ;;  %v1883_v10 = vld [vmem:[#allocation13 + $0x388] sm:$0xff] }
 0x765   :  { %1137 = vmatpush.msrb.mxu2 %v1866_v54  ;;  %v1884_v54 = vld [vmem:[#allocation13 + $0x368] sm:$0xff] }
 0x767   :  { %1138 = vmatpush.msrb.mxu2 %v1867_v12  ;;  %v1885_v12 = vld [vmem:[#allocation13 + $0x348] sm:$0xff] }
 0x768   :  { %1708 = vmatmul.msk.f32.gmra.mxu2 %vm467_vm0, %v1868_v5  ;;  %v1886_v5 = vld [vmem:[#allocation13 + $0x328] sm:$0xff] }
 0x769   :  { %1139 = vmatpush.msrb.mxu2 %v1869_v13  ;;  %v1887_v13 = vld [vmem:[#allocation13 + $0x308] sm:$0xff] }
 0x76b   :  { %1140 = vmatpush.msrb.mxu2 %v1870_v16  ;;  %v3204_v16 = vld [vmem:[#allocation29_spill] sm:$0xff] }
 0x76d   :  { %1141 = vmatpush.msrb.mxu2 %v1871_v18  ;;  %v3205_v18 = vld [vmem:[#allocation32_spill] sm:$0xff] }
 0x76f   :  { %1142 = vmatpush.msrb.mxu2 %v1872_v33  ;;  %v3206_v33 = vld [vmem:[#allocation36_spill] sm:$0xff] }
 0x770   :  { %1709 = vmatmul.msk.f32.gmra.mxu2 %vm467_vm0, %v1873_v34  ;;  %v3207_v34 = vld [vmem:[#allocation39_spill] sm:$0xff] }
 0x771   :  { %1143 = vmatpush.msrb.mxu2 %v1874_v35  ;;  %v3208_v35 = vld [vmem:[#allocation42_spill] sm:$0xff] }
 0x773   :  { %1144 = vmatpush.msrb.mxu2 %v1875_v37  ;;  %v3209_v37 = vld [vmem:[#allocation45_spill] sm:$0xff] }
 0x775   :  { %1145 = vmatpush.msrb.mxu2 %v1876_v38  ;;  %v3210_v38 = vld [vmem:[#allocation49_spill] sm:$0xff] }
 0x777   :  { %1146 = vmatpush.msrb.mxu2 %v1877_v39  ;;  %v3211_v39 = vld [vmem:[#allocation52_spill] sm:$0xff] }
 0x7db   :  { %v1119_v40 = vpop.f32.mrf.mxu2 }
 0x7dc   :  { %1147 = vmatmul.f32.vlgmr.msrb.gmra.mxu2 %v1119_v40 }
 0x7e3   :  { %v1122_v42 = vpop.f32.mrf.mxu2 }
 0x7e4   :  { %1150 = vmatmul.f32.gmra.mxu2 %v1122_v42 }
 0x7eb   :  { %v1125_v44 = vpop.f32.mrf.mxu2 }
 0x7ec   :  { %1170 = vmatmul.f32.vlgmr.msra.gmra.mxu3 %v1125_v44  ;;  %1193 = vmatmul.f32.vlgmr.msra.gmra.mxu0 %v1125_v44 }
 0x7ed   :  { %1467 = vmatpush.msra.mxu3 %v2504_v3  ;;  %1487 = vmatpush.msra.mxu0 %v1878_v45  ;;  %v3184_v3 = vld [vmem:[#allocation26_spill] sm:$0xff] }
 0x7ef   :  { %1468 = vmatpush.msra.mxu3 %v2509_v11  ;;  %1488 = vmatpush.msra.mxu0 %v2506_v1  ;;  %v3185_v1 = vld [vmem:[#allocation28_spill] sm:$0xff]  ;;  %v3186_v11 = vld [vmem:[#allocation27_spill] sm:$0xff] }
 0x7f1   :  { %1469 = vmatpush.msra.mxu3 %v2514_v20  ;;  %1489 = vmatpush.msra.mxu0 %v2511_v15  ;;  %v3187_v15 = vld [vmem:[#allocation31_spill] sm:$0xff]  ;;  %v3188_v20 = vld [vmem:[#allocation30_spill] sm:$0xff] }
 0x7f3   :  { %v1128_v46 = vpop.f32.mrf.mxu2  ;;  %1470 = vmatpush.msra.mxu3 %v2520_v30  ;;  %1490 = vmatpush.msra.mxu0 %v2517_v26  ;;  %v3189_v26 = vld [vmem:[#allocation34_spill] sm:$0xff]  ;;  %v3190_v30 = vld [vmem:[#allocation33_spill] sm:$0xff] }
 0x7f4   :  { %1173 = vmatmul.f32.gmra.mxu3 %v1128_v46  ;;  %1196 = vmatmul.f32.gmra.mxu0 %v1128_v46 }
 0x7f5   :  { %1471 = vmatpush.msra.mxu3 %v2526_v53  ;;  %1491 = vmatpush.msra.mxu0 %v2523_v51  ;;  %v3191_v51 = vld [vmem:[#allocation37_spill] sm:$0xff]  ;;  %v3192_v53 = vld [vmem:[#allocation35_spill] sm:$0xff] }
 0x7f7   :  { %1472 = vmatpush.msra.mxu3 %v2532_v59  ;;  %1492 = vmatpush.msra.mxu0 %v2529_v58  ;;  %v3193_v58 = vld [vmem:[#allocation40_spill] sm:$0xff]  ;;  %v3194_v59 = vld [vmem:[#allocation38_spill] sm:$0xff] }
 0x7f9   :  { %1473 = vmatpush.msra.mxu3 %v2538_v62  ;;  %1493 = vmatpush.msra.mxu0 %v2535_v61  ;;  %v3195_v61 = vld [vmem:[#allocation43_spill] sm:$0xff]  ;;  %v3196_v62 = vld [vmem:[#allocation41_spill] sm:$0xff] }
 0x7fb   :  { %1474 = vmatpush.msra.mxu3 %v2544_v14  ;;  %1494 = vmatpush.msra.mxu0 %v3184_v3  ;;  %v3197_v14 = vld [vmem:[#allocation47_spill] sm:$0xff] }
 0x7fd   :  { %1475 = vmatpush.msra.mxu3 %v3185_v1  ;;  %1495 = vmatpush.msra.mxu0 %v3186_v11 }
 0x7ff   :  { %1476 = vmatpush.msra.mxu3 %v3187_v15  ;;  %1496 = vmatpush.msra.mxu0 %v3188_v20 }
 0x801   :  { %1477 = vmatpush.msra.mxu3 %v3189_v26  ;;  %1497 = vmatpush.msra.mxu0 %v3190_v30 }
 0x803   :  { %1478 = vmatpush.msra.mxu3 %v3191_v51  ;;  %1498 = vmatpush.msra.mxu0 %v3192_v53 }
 0x805   :  { %1479 = vmatpush.msra.mxu3 %v3193_v58  ;;  %1499 = vmatpush.msra.mxu0 %v3194_v59 }
 0x807   :  { %1480 = vmatpush.msra.mxu3 %v3195_v61  ;;  %1500 = vmatpush.msra.mxu0 %v3196_v62 }
 0x809   :  { %1481 = vmatpush.msra.mxu3 %v3197_v14  ;;  %1501 = vmatpush.msra.mxu0 %v3198_v47  ;;  %v3212_v47 = vld [vmem:[#allocation24_spill] sm:$0xff] }
 0x80b   :  { %1482 = vmatpush.msra.mxu3 %v3199_v21  ;;  %1502 = vmatpush.msra.mxu0 %v3200_v24  ;;  %v3213_v24 = vld [vmem:[#allocation20_spill] sm:$0xff] }
 0x85f   :  { %v1148_v27 = vpop.f32.mrf.mxu2 }
 0x860   :  { %v1149_v8 = vadd.f32 %v1879_v52, %v1148_v27 }
 0x867   :  { %v1151_v60 = vpop.f32.mrf.mxu2 }
 0x868   :  { %v1152_v4 = vadd.f32 %v1879_v52, %v1151_v60  ;;  %v1889_v60 = vld [vmem:[#allocation13 + $0x1e0] sm:$0xff] }
 0x869   :  { %v1194_v51 = vpop.f32.mrf.mxu0 }
 0x86a   :  { %v1195_v27 = vadd.f32 %v1194_v51, %v3213_v24  ;;  %v3238_v24 = vld [vmem:[#allocation67_spill] sm:$0xff] }
 0x86f   :  { %v1171_v31 = vpop.f32.mrf.mxu3 }
 0x870   :  { %v1172_v50 = vadd.f32 %v1171_v31, %v3201_v49  ;;  %v3214_v31 = vld [vmem:[#allocation25_spill] sm:$0xff] }
 0x871   :  { %v1197_v62 = vpop.f32.mrf.mxu0 }
 0x872   :  { %v1200_v9 = vadd.f32 %v1172_v50, %v3202_v57  ;;  %v1198_v21 = vadd.f32 %v1197_v62, %v3212_v47  ;;  %v3234_v62 = vld [vmem:[#allocation59_spill] sm:$0xff] }
 0x873   :  { %v3236_v47 = vld [vmem:[#allocation63_spill] sm:$0xff] }
 0x874   :  { %v1204_v32 = vmul.f32 %v1200_v9, %v1149_v8  ;;  %v1203_v49 = vadd.f32 %v1198_v21, %v3214_v31  ;;  %v1888_v9 = vld [vmem:[%s3119_s0] sm:$0xff]  ;;  %v3237_v21 = vld [vmem:[#allocation65_spill] sm:$0xff] }
 0x876   :  { %1222 = vmatmul.f32.vlgmr.msra.gmra.mxu1 %v1204_v32 }
 0x877   :  { %v1174_v19 = vpop.f32.mrf.mxu3  ;;  %1507 = vmatpush.msra.mxu1 %v1880_v23  ;;  %v1891_v23 = vld [vmem:[#allocation13 + $0x1a0] sm:$0xff] }
 0x878   :  { %v1175_v7 = vadd.f32 %v1174_v19, %v3203_v29  ;;  %v1890_v19 = vld [vmem:[#allocation13 + $0x1c0] sm:$0xff] }
 0x879   :  { %1508 = vmatpush.msra.mxu1 %v1881_v17  ;;  %v1892_v29 = vld [vmem:[#allocation13 + $0x180] sm:$0xff] }
 0x87a   :  { %v1202_v25 = vadd.f32 %v1175_v7, %v3202_v57  ;;  %v1201_v57 = vadd.f32 %v1195_v27, %v3214_v31  ;;  %v1893_v7 = vld [vmem:[#allocation13 + $0x160] sm:$0xff]  ;;  %v3239_v27 = vld [vmem:[#allocation69_spill] sm:$0xff]  ;;  %v3240_v31 = vld [vmem:[#allocation72_spill] sm:$0xff] }
 0x87b   :  { %1509 = vmatpush.msra.mxu1 %v1882_v6  ;;  %v1894_v17 = vld [vmem:[#allocation13 + $0x140] sm:$0xff] }
 0x87c   :  { %v1205_v22 = vmul.f32 %v1202_v25, %v1152_v4  ;;  %v1895_v4 = vld [vmem:[#allocation13 + $0x120] sm:$0xff] }
 0x87d   :  { %1510 = vmatpush.msra.mxu1 %v1883_v10  ;;  %v1896_v25 = vld [vmem:[#allocation13 + $0x100] sm:$0xff] }
 0x87e   :  { %1225 = vmatmul.f32.gmra.mxu1 %v1205_v22  ;;  %v1897_v6 = vld [vmem:[#allocation13 + $0xe0] sm:$0xff] }
 0x87f   :  { %1511 = vmatpush.msra.mxu1 %v1884_v54  ;;  %v1898_v22 = vld [vmem:[#allocation13 + $0xc0] sm:$0xff] }
 0x880   :  { %v1899_v10 = vld [vmem:[#allocation13 + $0xa0] sm:$0xff] }
 0x881   :  { %1512 = vmatpush.msra.mxu1 %v1885_v12  ;;  %v1900_v54 = vld [vmem:[#allocation13 + $0x80] sm:$0xff] }
 0x882   :  { %v1901_v12 = vld [vmem:[#allocation13 + $0x60] sm:$0xff] }
 0x883   :  { %1513 = vmatpush.msra.mxu1 %v1886_v5  ;;  %v1902_v5 = vld [vmem:[#allocation13 + $0x40] sm:$0xff] }
 0x885   :  { %1514 = vmatpush.msra.mxu1 %v1887_v13  ;;  %v1903_v13 = vld [vmem:[#allocation13 + $0x20] sm:$0xff] }
 0x887   :  { %1515 = vmatpush.msra.mxu1 %v3204_v16  ;;  %v3215_v16 = vld [vmem:[#allocation46_spill] sm:$0xff] }
 0x889   :  { %1516 = vmatpush.msra.mxu1 %v3205_v18  ;;  %v3216_v18 = vld [vmem:[#allocation50_spill] sm:$0xff] }
 0x88b   :  { %1517 = vmatpush.msra.mxu1 %v3206_v33  ;;  %v3217_v33 = vld [vmem:[#allocation53_spill] sm:$0xff] }
 0x88d   :  { %1518 = vmatpush.msra.mxu1 %v3207_v34  ;;  %v3218_v34 = vld [vmem:[#allocation54_spill] sm:$0xff] }
 0x88f   :  { %1519 = vmatpush.msra.mxu1 %v3208_v35  ;;  %v3219_v35 = vld [vmem:[#allocation56_spill] sm:$0xff] }
 0x891   :  { %1520 = vmatpush.msra.mxu1 %v3209_v37  ;;  %v3220_v37 = vld [vmem:[#allocation58_spill] sm:$0xff] }
 0x893   :  { %1521 = vmatpush.msra.mxu1 %v3210_v38  ;;  %v3221_v38 = vld [vmem:[#allocation60_spill] sm:$0xff] }
 0x895   :  { %1522 = vmatpush.msra.mxu1 %v3211_v39  ;;  %v3222_v39 = vld [vmem:[#allocation62_spill] sm:$0xff] }
 0x8f3   :  { %v1223_v40 = vpop.f32.mrf.mxu1 }
 0x8f4   :  { %v1229_v44 = vmul.f32 0.35355338, %v1223_v40  ;;  %v3223_v40 = vld [vmem:[#allocation64_spill] sm:$0xff] }
 0x8fb   :  { %v1226_v42 = vpop.f32.mrf.mxu1 }
 0x8fc   :  { %v1230_v45 = vmul.f32 0.35355338, %v1226_v42  ;;  %v3224_v42 = vld [vmem:[#allocation66_spill] sm:$0xff] }
 0x8fe   :  { %v1231_v46 = vmax.f32 %v1229_v44, %v1230_v45 }
 0x900   :  { %1232 = vmax.xlane.f32.xlu1 %v1231_v46  ;;  %v3227_v46 = vld [vmem:[#allocation74_spill] sm:$0xff] }
 0x973   :  { %v1233_v3 = vpop.xlane.xlu1 %1232 }
 0x974   :  { %v1234_v1 = vrot.slane %v1233_v3, 4 }
 0x976   :  { %v1235_v11 = vmax.f32 %v1233_v3, %v1234_v1  ;;  %v3228_v3 = vld [vmem:[#allocation77_spill] sm:$0xff]  ;;  %v3229_v1 = vld [vmem:[#allocation80_spill] sm:$0xff] }
 0x978   :  { %v1236_v15 = vrot.slane %v1235_v11, 2 }
 0x97a   :  { %v1237_v20 = vmax.f32 %v1235_v11, %v1236_v15  ;;  %v3230_v11 = vld [vmem:[#allocation83_spill] sm:$0xff]  ;;  %v3231_v15 = vld [vmem:[#allocation86_spill] sm:$0xff] }
 0x97c   :  { %v1238_v26 = vrot.slane %v1237_v20, 1 }
 0x97e   :  { %v1239_v30 = vmax.f32 %v1237_v20, %v1238_v26 }
 0x980   :  { %1717 = vpush %v1239_v30 }
 0x9b1   :  { %s1718_s26 = spop %1717 }
 0x9b2   :  { %v1241_v53 = vstv %s1718_s26 }
 0x9b3   :  { %v1242_v58 = vsub.f32 %v1229_v44, %v1241_v53  ;;  %v1243_v59 = vsub.f32 %v1230_v45, %v1241_v53  ;;  %v3225_v44 = vld [vmem:[#allocation68_spill] sm:$0xff]  ;;  %v3226_v45 = vld [vmem:[#allocation71_spill] sm:$0xff] }
 0x9b5   :  { %v1246_v61 = vmul.f32 1.442695, %v1243_v59  ;;  %v1244_v14 = vmul.f32 1.442695, %v1242_v58  ;;  %v1904_v58 = vld [vmem:[#allocation13 + $0x3f0] sm:$0xff]  ;;  %v3232_v59 = vld [vmem:[#allocation55_spill] sm:$0xff] }
 0x9b7   :  { %1769 = vpow2.f32 %v1246_v61  ;;  %v3233_v61 = vld [vmem:[#allocation57_spill] sm:$0xff] }
 0x9b8   :  { %1771 = vpow2.f32 %v1244_v14  ;;  %v3235_v14 = vld [vmem:[#allocation61_spill] sm:$0xff] }
 0x9bd   :  { %v1770_v50 = vpop.eup %1769 }
 0x9be   :  { %1264 = vmatpush.msra.mxu2 %v1770_v50  ;;  %v1249_v52 = vmul.f32 %v1770_v50, %v1203_v49  ;;  %v1772_v8 = vpop.eup %1771  ;;  %v3241_v49 = vld [vmem:[#allocation75_spill] sm:$0xff]  ;;  %v3242_v50 = vld [vmem:[#allocation78_spill] sm:$0xff] }
 0x9bf   :  { %v1248_v32 = vmul.f32 %v1772_v8, %v1201_v57  ;;  %v3245_v57 = vld [vmem:[#allocation87_spill] sm:$0xff] }
 0x9c0   :  { %1265 = vmatpush.msra.mxu2 %v1772_v8  ;;  %v3244_v8 = vld [vmem:[#allocation84_spill] sm:$0xff] }
 0x9c1   :  { %1710 = vmatmul.msk.f32.vlgmr.msra.gmra.mxu2 %vm636_vm1, %v1888_v9 }
 0x9c2   :  { %1284 = vmatpush.msrb.mxu2 %v1249_v52  ;;  %v3243_v52 = vld [vmem:[#allocation81_spill] sm:$0xff] }
 0x9c4   :  { %1285 = vmatpush.msrb.mxu2 %v1248_v32 }
 0x9c6   :  { %1447 = vmatpush.msra.mxu2 %v1889_v60  ;;  %v1905_v60 = vld [vmem:[%s3005_s11] ss:$0 sm:$0xff] }
 0x9c8   :  { %1448 = vmatpush.msra.mxu2 %v1890_v19 }
 0x9c9   :  { %1711 = vmatmul.msk.f32.vlgmr.msrb.gmra.mxu2 %vm636_vm1, %v1888_v9  ;;  %v3246_v9 = vld [vmem:[#allocation89_spill] sm:$0xff] }
 0x9ca   :  { %1449 = vmatpush.msra.mxu2 %v1891_v23 }
 0x9cc   :  { %1450 = vmatpush.msra.mxu2 %v1892_v29 }
 0x9ce   :  { %1451 = vmatpush.msra.mxu2 %v1893_v7 }
 0x9d0   :  { %1452 = vmatpush.msra.mxu2 %v1894_v17 }
 0x9d2   :  { %1453 = vmatpush.msra.mxu2 %v1895_v4 }
 0x9d4   :  { %1454 = vmatpush.msra.mxu2 %v1896_v25 }
 0x9d6   :  { %1455 = vmatpush.msra.mxu2 %v1897_v6 }
 0x9d8   :  { %1456 = vmatpush.msra.mxu2 %v1898_v22 }
 0x9da   :  { %1457 = vmatpush.msra.mxu2 %v1899_v10 }
 0x9dc   :  { %1458 = vmatpush.msra.mxu2 %v1900_v54 }
 0x9de   :  { %1459 = vmatpush.msra.mxu2 %v1901_v12 }
 0x9e0   :  { %1460 = vmatpush.msra.mxu2 %v1902_v5 }
 0x9e2   :  { %1461 = vmatpush.msra.mxu2 %v1903_v13 }
 0x9e4   :  { %1462 = vmatpush.msra.mxu2 %v3215_v16 }
 0x9e6   :  { %1527 = vmatpush.msrb.mxu2 %v3216_v18 }
 0x9e8   :  { %1528 = vmatpush.msrb.mxu2 %v3217_v33 }
 0x9ea   :  { %1529 = vmatpush.msrb.mxu2 %v3218_v34 }
 0x9ec   :  { %1530 = vmatpush.msrb.mxu2 %v3219_v35  ;;  %v1906_v35 = vld [vmem:[%s3006_s12] ss:$0 sm:$0xff] }
 0x9ee   :  { %1531 = vmatpush.msrb.mxu2 %v3220_v37 }
 0x9f0   :  { %1532 = vmatpush.msrb.mxu2 %v3221_v38  ;;  %v1907_v38 = vld [vmem:[%s3007_s13] ss:$0 sm:$0xff] }
 0x9f2   :  { %1533 = vmatpush.msrb.mxu2 %v3222_v39 }
 0x9f4   :  { %1534 = vmatpush.msrb.mxu2 %v3223_v40  ;;  %v1908_v40 = vld [vmem:[#allocation13 + $0x1f8] sm:$0xff] }
 0x9f6   :  { %1535 = vmatpush.msrb.mxu2 %v3224_v42  ;;  %v1909_v42 = vld [vmem:[#allocation13 + $0x1d8] sm:$0xff] }
 0x9f8   :  { %1536 = vmatpush.msrb.mxu2 %v3225_v44  ;;  %v1910_v44 = vld [vmem:[#allocation13 + $0x1b8] sm:$0xff] }
 0x9fa   :  { %1537 = vmatpush.msrb.mxu2 %v3226_v45  ;;  %v1911_v45 = vld [vmem:[#allocation13 + $0x198] sm:$0xff] }
 0x9fc   :  { %1538 = vmatpush.msrb.mxu2 %v3227_v46  ;;  %v1912_v46 = vld [vmem:[#allocation13 + $0x178] sm:$0xff] }
 0x9fe   :  { %1539 = vmatpush.msrb.mxu2 %v3228_v3  ;;  %v1913_v3 = vld [vmem:[#allocation13 + $0x158] sm:$0xff] }
 0xa00   :  { %1540 = vmatpush.msrb.mxu2 %v3229_v1  ;;  %v1914_v1 = vld [vmem:[#allocation13 + $0x138] sm:$0xff] }
 0xa02   :  { %1541 = vmatpush.msrb.mxu2 %v3230_v11  ;;  %v1915_v11 = vld [vmem:[#allocation13 + $0x118] sm:$0xff] }
 0xa04   :  { %1542 = vmatpush.msrb.mxu2 %v3231_v15  ;;  %v1916_v15 = vld [vmem:[#allocation13 + $0xf8] sm:$0xff] }
 0xa44   :  { %v1267_v20 = vpop.f32.mrf.mxu2 }
 0xa45   :  { %v1290_v26 = vadd.f32 1e-16, %v1267_v20  ;;  %v3247_v20 = vld [vmem:[#allocation70_spill] sm:$0xff] }
 0xa47   :  { %1773 = vrcp.f32 %v1290_v26  ;;  %v3248_v26 = vld [vmem:[#allocation73_spill] sm:$0xff] }
 0xa4c   :  { %v1287_v30 = vpop.f32.mrf.mxu2 }
 0xa4d   :  { %v1774_v51 = vpop.eup %1773 }
 0xa4e   :  { %v1292_v53 = vmul.f32 %v1774_v51, %v1287_v30  ;;  %v3249_v30 = vld [vmem:[#allocation76_spill] sm:$0xff]  ;;  %v3250_v51 = vld [vmem:[#allocation79_spill] sm:$0xff] }
 0xa50   :  { %1309 = vmatmul.f32.vlgmr.msrb.gmra.mxu3 %v1292_v53  ;;  %v3251_v53 = vld [vmem:[#allocation82_spill] sm:$0xff] }
 0xa51   :  { %1547 = vmatpush.msrb.mxu3 %v1904_v58  ;;  %v3252_v58 = vld [vmem:[#allocation85_spill] sm:$0xff] }
 0xa53   :  { %1548 = vmatpush.msrb.mxu3 %v3232_v59  ;;  %v3253_v59 = vld [vmem:[#allocation88_spill] sm:$0xff] }
 0xa55   :  { %1549 = vmatpush.msrb.mxu3 %v3233_v61 }
 0xa57   :  { %1550 = vmatpush.msrb.mxu3 %v3234_v62  ;;  %v1917_v62 = vld [vmem:[%s3009_s15] ss:$0 sm:$0xff] }
 0xa58   :  { %1483 = vmatmul.f32.vlgmr.msra.gmra.mxu3 %v2821_v43 }
 0xa59   :  { %1551 = vmatpush.msrb.mxu3 %v3235_v14 }
 0xa5b   :  { %1552 = vmatpush.msrb.mxu3 %v3236_v47 }
 0xa5d   :  { %1553 = vmatpush.msrb.mxu3 %v3237_v21 }
 0xa5f   :  { %1554 = vmatpush.msrb.mxu3 %v3238_v24 }
 0xa61   :  { %1555 = vmatpush.msrb.mxu3 %v3239_v27 }
 0xa63   :  { %1556 = vmatpush.msrb.mxu3 %v3240_v31 }
 0xa65   :  { %1557 = vmatpush.msrb.mxu3 %v3241_v49 }
 0xa67   :  { %1558 = vmatpush.msrb.mxu3 %v3242_v50 }
 0xa69   :  { %1559 = vmatpush.msrb.mxu3 %v3243_v52 }
 0xa6b   :  { %1560 = vmatpush.msrb.mxu3 %v3244_v8 }
 0xa6d   :  { %1561 = vmatpush.msrb.mxu3 %v3245_v57 }
 0xa6f   :  { %1562 = vmatpush.msrb.mxu3 %v3246_v9 }
 0xa70   :  { %1563 = vmatmul.f32.vlgmr.msrb.gmra.mxu3 %v2821_v43 }
 0xad3   :  { %v1310_v32 = vpop.f32.mrf.mxu3 }
 0xad4   :  { %v1311_v19 = vadd.f32 %v1905_v60, %v1310_v32 }
 0xad6   :  { %v1313_v23 = vadd.f32 %v1311_v19, %v2839_v56 }
 0xad8   :  { %1314 = vadd.xlane.f32.xlu2 %v1313_v23  ;;  %v1317_v29 = vmul.f32 %v1313_v23, %v1313_v23 }
 0xada   :  { %1318 = vadd.xlane.f32.xlu1 %v1317_v29 }
 0xb4b   :  { %v1315_v7 = vpop.xlane.xlu2 %1314 }
 0xb4c   :  { %v1316_v17 = vmul.f32 0.03125, %v1315_v7 }
 0xb4d   :  { %v1319_v4 = vpop.xlane.xlu1 %1318 }
 0xb4e   :  { %v1322_v25 = vmul.f32 %v1316_v17, %v1316_v17  ;;  %v1320_v6 = vmul.f32 0.03125, %v1319_v4  ;;  %v1321_v56 = vsub.f32 %v1313_v23, %v1316_v17 }
 0xb50   :  { %v1323_v22 = vsub.f32 %v1320_v6, %v1322_v25 }
 0xb52   :  { %v1324_v10 = vadd.f32 1e-12, %v1323_v22 }
 0xb54   :  { %1775 = vrsqrt.f32 %v1324_v10  ;;  %vm1331_vm1 = vweird.f32 %v1324_v10 }
 0xb5a   :  { %v1776_v54 = vpop.eup %1775 }
 0xb5b   :  { %v1326_v12 = vmul.f32 %v1776_v54, %v1324_v10  ;;  %vm1332_vm0 = vweird.f32 %v1776_v54 }
 0xb5c   :  { %vm1333_vm9 = vmor %vm1331_vm1, %vm1332_vm0 }
 0xb5d   :  { %v1327_v5 = vmul.f32 %v1776_v54, %v1326_v12 }
 0xb5f   :  { %v1328_v13 = vmul.f32 0.5, %v1327_v5 }
 0xb61   :  { %v1329_v16 = vsub.f32 1.5, %v1328_v13 }
 0xb63   :  { %v1330_v18 = vmul.f32 %v1776_v54, %v1329_v16 }
 0xb65   :  { %v1334_v33 = vsel %vm1333_vm9, %v1776_v54, %v1330_v18 }
 0xb66   :  { %v1335_v34 = vmul.f32 %v1334_v33, %v1321_v56 }
 0xb68   :  { %v1336_v37 = vmul.f32 %v1906_v35, %v1335_v34 }
 0xb6a   :  { %v2957_v39 = vadd.f32 %v1907_v38, %v1336_v37 }
 0xb6c   :  { %1354 = vmatmul.f32.vlgmr.msrb.gmra.mxu0 %v2957_v39 }
 0xb6d   :  { %1567 = vmatpush.msrb.mxu0 %v1908_v40 }
 0xb6f   :  { %1568 = vmatpush.msrb.mxu0 %v1909_v42 }
 0xb71   :  { %1569 = vmatpush.msrb.mxu0 %v1910_v44 }
 0xb73   :  { %1570 = vmatpush.msrb.mxu0 %v1911_v45 }
 0xb75   :  { %1571 = vmatpush.msrb.mxu0 %v1912_v46  ;;  %v1918_v46 = vld [vmem:[#allocation13 + $0x3f8] sm:$0xff] }
 0xb77   :  { %1572 = vmatpush.msrb.mxu0 %v1913_v3  ;;  %v1919_v3 = vld [vmem:[#allocation13 + $0x3d8] sm:$0xff] }
 0xb79   :  { %1573 = vmatpush.msrb.mxu0 %v1914_v1  ;;  %v1920_v1 = vld [vmem:[#allocation13 + $0x3b8] sm:$0xff] }
 0xb7b   :  { %1574 = vmatpush.msrb.mxu0 %v1915_v11  ;;  %v1921_v11 = vld [vmem:[#allocation13 + $0x398] sm:$0xff] }
 0xb7d   :  { %1575 = vmatpush.msrb.mxu0 %v1916_v15  ;;  %v1922_v15 = vld [vmem:[#allocation13 + $0x378] sm:$0xff] }
 0xb7f   :  { %1576 = vmatpush.msrb.mxu0 %v3247_v20  ;;  %v1923_v20 = vld [vmem:[#allocation13 + $0x358] sm:$0xff] }
 0xb81   :  { %1577 = vmatpush.msrb.mxu0 %v3248_v26  ;;  %v1924_v26 = vld [vmem:[#allocation13 + $0x338] sm:$0xff] }
 0xb83   :  { %1578 = vmatpush.msrb.mxu0 %v3249_v30  ;;  %v1925_v30 = vld [vmem:[#allocation13 + $0x318] sm:$0xff] }
 0xb85   :  { %1579 = vmatpush.msrb.mxu0 %v3250_v51  ;;  %v1926_v51 = vld [vmem:[#allocation13 + $0x2f8] sm:$0xff] }
 0xb87   :  { %1580 = vmatpush.msrb.mxu0 %v3251_v53  ;;  %v1927_v53 = vld [vmem:[#allocation13 + $0x2d8] sm:$0xff] }
 0xb89   :  { %1581 = vmatpush.msrb.mxu0 %v3252_v58  ;;  %v1928_v58 = vld [vmem:[#allocation13 + $0x2b8] sm:$0xff] }
 0xb8b   :  { %1582 = vmatpush.msrb.mxu0 %v3253_v59  ;;  %v1929_v59 = vld [vmem:[#allocation13 + $0x298] sm:$0xff] }
 0xbe9   :  { %v1355_v61 = vpop.f32.mrf.mxu0 }
 0xbea   :  { %v1356_v14 = vadd.f32 %v1917_v62, %v1355_v61  ;;  %v1930_v61 = vld [vmem:[#allocation13 + $0x278] sm:$0xff] }
 0xbeb   :  { %v1931_v62 = vld [vmem:[#allocation13 + $0x258] sm:$0xff] }
 0xbec   :  { %v1359_v47 = vmul.f32 0.70710856, %v1356_v14  ;;  %v1358_v42 = vmul.f32 0.5, %v1356_v14  ;;  %v1932_v14 = vld [vmem:[#allocation13 + $0x238] sm:$0xff] }
 0xbee   :  { %v1360_v21 = vmul.f32 %v1359_v47, %v1359_v47 }
 0xbf0   :  { %v1361_v24 = vmin.f32 %v1360_v21, 16.0 }
 0xbf2   :  { %v1362_v27 = vmul.f32 2.1237322e-06, %v1361_v24  ;;  %v1373_v31 = vmul.f32 3.8918573e-05, %v1361_v24 }
 0xbf4   :  { %v1363_v49 = vadd.f32 0.00028619796, %v1362_v27  ;;  %v1374_v50 = vadd.f32 0.001143296, %v1373_v31 }
 0xbf6   :  { %v1364_v52 = vmul.f32 %v1363_v49, %v1361_v24  ;;  %v1375_v8 = vmul.f32 %v1374_v50, %v1361_v24 }
 0xbf8   :  { %v1376_v57 = vadd.f32 0.014752088, %v1375_v8  ;;  %v1365_v9 = vadd.f32 0.0036580483, %v1364_v52 }
 0xbfa   :  { %v1377_v32 = vmul.f32 %v1376_v57, %v1361_v24  ;;  %v1366_v19 = vmul.f32 %v1365_v9, %v1361_v24 }
 0xbfc   :  { %v1378_v60 = vadd.f32 0.112945676, %v1377_v32  ;;  %v1367_v7 = vadd.f32 0.05243302, %v1366_v19 }
 0xbfe   :  { %v1379_v23 = vmul.f32 %v1378_v60, %v1361_v24  ;;  %v1368_v25 = vmul.f32 %v1367_v7, %v1361_v24 }
 0xc00   :  { %v1380_v29 = vadd.f32 0.4994258, %v1379_v23  ;;  %v1369_v6 = vadd.f32 0.18741608, %v1368_v25 }
 0xc02   :  { %v1381_v17 = vmul.f32 %v1380_v29, %v1361_v24  ;;  %v1370_v10 = vmul.f32 %v1369_v6, %v1361_v24  ;;  %v1934_v24 = vld [vmem:[%s3011_s17] ss:$0 sm:$0xff] }
 0xc04   :  { %v1382_v4 = vadd.f32 1.0, %v1381_v17  ;;  %v1371_v13 = vadd.f32 1.1283791, %v1370_v10 }
 0xc06   :  { %1777 = vrcp.f32 %v1382_v4  ;;  %v1394_v5 = vand.u32 2147483648, %v1382_v4  ;;  %v1392_v18 = vand.u32 2147483647, %v1382_v4  ;;  %vm1388_vm11 = vweird.f32 %v1382_v4 }
 0xc07   :  { %v1372_v34 = vmul.f32 %v1371_v13, %v1359_v47  ;;  %v1933_v47 = vld [vmem:[#allocation13 + $0x218] sm:$0xff] }
 0xc08   :  { %v1395_v33 = vor.u32 1.1754944e-38, %v1394_v5  ;;  %vm1393_vm13 = vcmp.eq.f32.partialorder %v1392_v18, 8.507059e+37 }
 0xc0c   :  { %v1778_v22 = vpop.eup %1777 }
 0xc0d   :  { %v1384_v54 = vmul.f32 %v1778_v22, %v1382_v4  ;;  %vm1389_vm10 = vweird.f32 %v1778_v22 }
 0xc0e   :  { %vm1390_vm12 = vmor %vm1388_vm11, %vm1389_vm10 }
 0xc0f   :  { %v1385_v12 = vsub.f32 1.0, %v1384_v54 }
 0xc11   :  { %v1386_v16 = vmul.f32 %v1778_v22, %v1385_v12 }
 0xc13   :  { %v1387_v56 = vadd.f32 %v1778_v22, %v1386_v16 }
 0xc15   :  { %v1391_v35 = vsel %vm1390_vm12, %v1778_v22, %v1387_v56  ;;  %v1935_v22 = vld [vmem:[%s3012_s18] ss:$0 sm:$0xff]  ;;  %s2152_s18 = smov [#allocation14]  }
 0xc16   :  { %v1396_v37 = vsel %vm1393_vm13, %v1395_v33, %v1391_v35  ;;  %s1682_s21 = sshll.u32 %s2152_s18, 4  ;;  %s1683_s21 = int_to_ptr.vmem [resolvable:$true] %s1682_s21 }
 0xc17   :  { %v1397_v38 = vmul.f32 %v1396_v37, %v1372_v34  ;;  %v1484_v34 = vpop.f32.mrf.mxu3 }
 0xc19   :  { %v1712_v40 = vclamps-f32 %v1397_v38, 1.0 }
 0xc1b   :  { %v1400_v44 = vadd.f32 1.0, %v1712_v40 }
 0xc1d   :  { %v1401_v45 = vmul.f32 %v1400_v44, %v1358_v42 }
 0xc1f   :  { %1418 = vmatmul.f32.vlgmr.msrb.gmra.mxu1 %v1401_v45 }
 0xc20   :  { %1587 = vmatpush.msrb.mxu1 %v1918_v46 }
 0xc22   :  { %1588 = vmatpush.msrb.mxu1 %v1919_v3 }
 0xc24   :  { %1589 = vmatpush.msrb.mxu1 %v1920_v1 }
 0xc26   :  { %1590 = vmatpush.msrb.mxu1 %v1921_v11 }
 0xc27   :  { %1523 = vmatmul.f32.vlgmr.msra.gmra.mxu1 %v2821_v43 }
 0xc28   :  { %1591 = vmatpush.msrb.mxu1 %v1922_v15 }
 0xc2a   :  { %1592 = vmatpush.msrb.mxu1 %v1923_v20 }
 0xc2c   :  { %1593 = vmatpush.msrb.mxu1 %v1924_v26 }
 0xc2e   :  { %1594 = vmatpush.msrb.mxu1 %v1925_v30 }
 0xc30   :  { %1595 = vmatpush.msrb.mxu1 %v1926_v51 }
 0xc32   :  { %1596 = vmatpush.msrb.mxu1 %v1927_v53 }
 0xc34   :  { %1597 = vmatpush.msrb.mxu1 %v1928_v58 }
 0xc36   :  { %1598 = vmatpush.msrb.mxu1 %v1929_v59 }
 0xc38   :  { %1599 = vmatpush.msrb.mxu1 %v1930_v61 }
 0xc3a   :  { %1600 = vmatpush.msrb.mxu1 %v1931_v62 }
 0xc3c   :  { %1601 = vmatpush.msrb.mxu1 %v1932_v14 }
 0xc3e   :  { %1602 = vmatpush.msrb.mxu1 %v1933_v47  ;;  %v1564_v47 = vpop.f32.mrf.mxu3 }
 0xc3f   :  { %1603 = vmatmul.f32.vlgmr.msrb.gmra.mxu1 %v2821_v43 }
 0xc9c   :  { %v1419_v21 = vpop.f32.mrf.mxu1 }
 0xc9d   :  { %v1420_v27 = vadd.f32 %v1934_v24, %v1419_v21 }
 0xc9f   :  { %v1422_v31 = vadd.f32 %v1420_v27, %v2957_v39 }
 0xca1   :  { %1423 = vadd.xlane.f32.xlu2 %v1422_v31  ;;  %v1426_v49 = vmul.f32 %v1422_v31, %v1422_v31 }
 0xca3   :  { %1427 = vadd.xlane.f32.xlu1 %v1426_v49 }
 0xca4   :  { %v1524_v13 = vpop.f32.mrf.mxu1 }
 0xcbc   :  { %v1604_v59 = vpop.f32.mrf.mxu1 }
 0xd14   :  { %v1424_v50 = vpop.xlane.xlu2 %1423 }
 0xd15   :  { %v1425_v52 = vmul.f32 0.03125, %v1424_v50 }
 0xd16   :  { %v1428_v8 = vpop.xlane.xlu1 %1427 }
 0xd17   :  { %v1431_v57 = vmul.f32 %v1425_v52, %v1425_v52  ;;  %v1429_v9 = vmul.f32 0.03125, %v1428_v8  ;;  %v1430_v39 = vsub.f32 %v1422_v31, %v1425_v52 }
 0xd19   :  { %v1432_v32 = vsub.f32 %v1429_v9, %v1431_v57 }
 0xd1b   :  { %v1433_v60 = vadd.f32 1e-12, %v1432_v32 }
 0xd1d   :  { %1779 = vrsqrt.f32 %v1433_v60  ;;  %vm1440_vm15 = vweird.f32 %v1433_v60 }
 0xd23   :  { %v1780_v19 = vpop.eup %1779 }
 0xd24   :  { %v1435_v23 = vmul.f32 %v1780_v19, %v1433_v60  ;;  %vm1441_vm14 = vweird.f32 %v1780_v19 }
 0xd25   :  { %vm1442_vm2 = vmor %vm1440_vm15, %vm1441_vm14 }
 0xd26   :  { %v1436_v29 = vmul.f32 %v1780_v19, %v1435_v23 }
 0xd28   :  { %v1437_v7 = vmul.f32 0.5, %v1436_v29 }
 0xd2a   :  { %v1438_v17 = vsub.f32 1.5, %v1437_v7 }
 0xd2c   :  { %v1439_v4 = vmul.f32 %v1780_v19, %v1438_v17 }
 0xd2e   :  { %v1443_v25 = vsel %vm1442_vm2, %v1780_v19, %v1439_v4 }
 0xd2f   :  { %v1444_v6 = vmul.f32 %v1443_v25, %v1430_v39 }
 0xd31   :  { %v1445_v10 = vmul.f32 %v1935_v22, %v1444_v6 }
 0xd33   :  { %v1446_v54 = vadd.f32 %v2768_v2, %v1445_v10 }
 0xd35   :  { %1463 = vmatmul.f32.vlgmr.msra.gmra.mxu2 %v1446_v54  ;;  %1503 = vmatmul.f32.vlgmr.msra.gmra.mxu0 %v1446_v54 }
 0xd3d   :  { %1543 = vmatmul.f32.vlgmr.msrb.gmra.mxu2 %v1446_v54  ;;  %1583 = vmatmul.f32.vlgmr.msrb.gmra.mxu0 %v1446_v54 }
 0xdb2   :  { %v1504_v12 = vpop.f32.mrf.mxu0 }
 0xdb3   :  { %v1505_v5 = vadd.f32 %v1504_v12, %v860_v0 }
 0xdb5   :  { %v1525_v16 = vadd.f32 %v1524_v13, %v1505_v5 }
 0xdb7   :  { %v1714_v18 = vmul.f32 -1.442695, %v1525_v16 }
 0xdb8   :  { %v1464_v56 = vpop.f32.mrf.mxu2 }
 0xdb9   :  { %1781 = vpow2.f32 %v1714_v18  ;;  %v1465_v33 = vadd.f32 %v1464_v56, %v859_v41 }
 0xdba   :  { %v1584_v3 = vpop.f32.mrf.mxu0 }
 0xdbb   :  { %v1485_v35 = vadd.f32 %v1484_v34, %v1465_v33  ;;  %v1585_v41 = vadd.f32 %v1584_v3, %v862_v55 }
 0xdbd   :  { %v1713_v37 = vmul.f32 -1.442695, %v1485_v35  ;;  %v1605_v62 = vadd.f32 %v1604_v59, %v1585_v41 }
 0xdbf   :  { %v1782_v2 = vpop.eup %1781  ;;  %1783 = vpow2.f32 %v1713_v37 }
 0xdc0   :  { %v1629_v38 = vadd.f32 1.0, %v1782_v2  ;;  %v1544_v20 = vpop.f32.mrf.mxu2 }
 0xdc1   :  { %v1545_v58 = vadd.f32 %v1544_v20, %v861_v48 }
 0xdc2   :  { %1785 = vrcp.f32 %v1629_v38  ;;  %v1641_v31 = vand.u32 2147483648, %v1629_v38  ;;  %vm1635_vm8 = vweird.f32 %v1629_v38  ;;  %v1639_v49 = vand.u32 2147483647, %v1629_v38 }
 0xdc3   :  { %v1565_v27 = vadd.f32 %v1564_v47, %v1545_v58 }
 0xdc4   :  { %v1642_v36 = vor.u32 1.1754944e-38, %v1641_v31  ;;  %vm1640_vm1 = vcmp.eq.f32.partialorder %v1639_v49, 8.507059e+37 }
 0xdc5   :  { %v1784_v40 = vpop.eup %1783 }
 0xdc6   :  { %v1610_v42 = vadd.f32 1.0, %v1784_v40 }
 0xdc8   :  { %1787 = vrcp.f32 %v1610_v42  ;;  %v1786_v44 = vpop.eup %1785  ;;  %v1622_v15 = vand.u32 2147483648, %v1610_v42  ;;  %v1620_v30 = vand.u32 2147483647, %v1610_v42  ;;  %vm1616_vm4 = vweird.f32 %v1610_v42 }
 0xdc9   :  { %v1631_v0 = vmul.f32 %v1786_v44, %v1629_v38  ;;  %vm1636_vm7 = vweird.f32 %v1786_v44 }
 0xdca   :  { %v1623_v61 = vor.u32 1.1754944e-38, %v1622_v15  ;;  %vm1621_vm6 = vcmp.eq.f32.partialorder %v1620_v30, 8.507059e+37  ;;  %vm1637_vm0 = vmor %vm1635_vm8, %vm1636_vm7 }
 0xdcb   :  { %v1632_v1 = vsub.f32 1.0, %v1631_v0 }
 0xdcd   :  { %v1633_v51 = vmul.f32 %v1786_v44, %v1632_v1 }
 0xdce   :  { %v1788_v45 = vpop.eup %1787 }
 0xdcf   :  { %v1612_v46 = vmul.f32 %v1788_v45, %v1610_v42  ;;  %vm1617_vm3 = vweird.f32 %v1788_v45  ;;  %v1634_v24 = vadd.f32 %v1786_v44, %v1633_v51 }
 0xdd0   :  { %vm1618_vm5 = vmor %vm1616_vm4, %vm1617_vm3 }
 0xdd1   :  { %v1613_v11 = vsub.f32 1.0, %v1612_v46  ;;  %v1638_v52 = vsel %vm1637_vm0, %v1786_v44, %v1634_v24 }
 0xdd2   :  { %v1643_v48 = vsel %vm1640_vm1, %v1642_v36, %v1638_v52 }
 0xdd3   :  { %v1614_v26 = vmul.f32 %v1788_v45, %v1613_v11  ;;  %v1648_v8 = vsub.f32 1.0, %v1643_v48  ;;  %v1650_v32 = vmul.f32 %v1643_v48, %v2821_v43 }
 0xdd5   :  { %v1615_v53 = vadd.f32 %v1788_v45, %v1614_v26 }
 0xdd7   :  { %v1619_v14 = vsel %vm1618_vm5, %v1788_v45, %v1615_v53 }
 0xdd8   :  { %v1624_v21 = vsel %vm1621_vm6, %v1623_v61, %v1619_v14 }
 0xdd9   :  { %v1645_v55 = vmul.f32 %v1624_v21, %v1605_v62 }
 0xddb   :  { %v1646_v50 = vadd.f32 %v1645_v55, %v1565_v27 }
 0xddd   :  { %1789 = vtanh.f32 %v1646_v50 }
 0xde3   :  { %v1790_v57 = vpop.eup %1789 }
 0xde4   :  { %v1649_v9 = vmul.f32 %v1790_v57, %v1648_v8 }
 0xde6   :  { %v1651_v60 = vadd.f32 %v1650_v32, %v1649_v9 }
 0xde8   :  { %1652 = vadd.xlane.f32.xlu2 %v1651_v60  ;;  %v1655_v19 = vmul.f32 %v1651_v60, %v1651_v60 }
 0xdea   :  { %1656 = vadd.xlane.f32.xlu1 %v1655_v19 }
 0xe5b   :  { %v1653_v23 = vpop.xlane.xlu2 %1652 }
 0xe5c   :  { %v1654_v29 = vmul.f32 0.03125, %v1653_v23 }
 0xe5d   :  { %v1657_v7 = vpop.xlane.xlu1 %1656 }
 0xe5e   :  { %v1660_v17 = vmul.f32 %v1654_v29, %v1654_v29  ;;  %v1658_v4 = vmul.f32 0.03125, %v1657_v7  ;;  %v1659_v43 = vsub.f32 %v1651_v60, %v1654_v29 }
 0xe60   :  { %v1661_v39 = vsub.f32 %v1658_v4, %v1660_v17 }
 0xe62   :  { %v1662_v25 = vadd.f32 1e-12, %v1661_v39 }
 0xe64   :  { %1791 = vrsqrt.f32 %v1662_v25  ;;  %vm1669_vm10 = vweird.f32 %v1662_v25 }
 0xe6a   :  { %v1792_v6 = vpop.eup %1791 }
 0xe6b   :  { %v1664_v22 = vmul.f32 %v1792_v6, %v1662_v25  ;;  %vm1670_vm9 = vweird.f32 %v1792_v6 }
 0xe6c   :  { %vm1671_vm11 = vmor %vm1669_vm10, %vm1670_vm9 }
 0xe6d   :  { %v1665_v10 = vmul.f32 %v1792_v6, %v1664_v22 }
 0xe6f   :  { %v1666_v54 = vmul.f32 0.5, %v1665_v10 }
 0xe71   :  { %v1667_v12 = vsub.f32 1.5, %v1666_v54 }
 0xe73   :  { %v1668_v5 = vmul.f32 %v1792_v6, %v1667_v12 }
 0xe75   :  { %v1672_v13 = vsel %vm1671_vm11, %v1792_v6, %v1668_v5 }
 0xe76   :  { %v1673_v16 = vmul.f32 %v1672_v13, %v1659_v43 }
 0xe78   :  { %v1674_v18 = vmul.f32 %v2830_v28, %v1673_v16 }
 0xe7a   :  { %v1675_v56 = vadd.f32 %v2835_v63, %v1674_v18 }
 0xe7c   :  { %1676 = vst [vmem:[#allocation14] sm:$0xff] %v1675_v56 }
 0xe7d   :  { %1687 = dma.vmem_to_hbm [thread:$0]  %s1683_s21, 128, %s1685_s25, [#allocation4]  }
 0xe7e   :  { %2136 = dma.done.wait [#allocation4], 128  }
 0xe7f   :  { %2137 = vsyncadd [#allocation4], 4294967168 }
 0xe80   :  { %1692 = vsyncpa [#allocation3], 1 }
 0xe81   :  { %1693 = vsyncpa [#allocation6], 1 }
 0xe82   :  { %1694 = vsyncpa [#allocation9], 1 }
 0xe83   :  { %1695 = vsyncpa [#allocation12], 1 }
 0xe84   :  { %1696 = vsyncpa [#allocation4], 1 }

</bundles_post_ra>
